<compile_context>
chip_gen: v7x
topology: tpu7x:2x2x1
jax: 0.10.0
libtpu: 0.0.40
codegen_flags: <defaults>
</compile_context>

<pallas_src>
import functools

import jax
import jax.numpy as jnp
from jax.experimental import pallas as pl
from jax.experimental.pallas import tpu as pltpu


def _round_up(x, m):
    return (x + m - 1) // m * m


_TM_MAX = 512    # M (rows) tile cap
_TN_MAX = 256    # Cout tile cap (>=128 -> lane-dense stores; 512 -> 2 tiles)
_TK_MAX = 2048   # K reduction tile cap
_VMEM_LIMIT = 48 * 1024 * 1024  # fits v7x (64 MiB physical) with headroom


# ----------------------------------------------------------------------------
# Kernel 1: tiled (patches @ W), f32 accumulator seeded with the bias,
# fused activation, bf16 (or f32) output.  grid = (M_tiles, N_tiles, K_tiles).
# ----------------------------------------------------------------------------
def _conv_mm_kernel(p_ref, w_ref, b_ref, o_ref, acc_ref, *, activation):
    # p_ref: (tm, tk) bf16   w_ref: (tk, tn) bf16   b_ref: (1, tn) f32
    # o_ref: (tm, tn)        acc_ref: (tm, tn) f32 VMEM scratch
    k = pl.program_id(2)

    @pl.when(k == 0)
    def _():
        # Seed the accumulator with the broadcast bias (no epilogue add).
        acc_ref[...] = jnp.broadcast_to(b_ref[...], acc_ref.shape)

    acc_ref[...] += jnp.dot(
        p_ref[...], w_ref[...], preferred_element_type=jnp.float32
    )

    @pl.when(k == pl.num_programs(2) - 1)
    def _():
        acc = acc_ref[...]
        if activation == "leaky_relu":
            acc = jnp.where(acc > 0, acc, jnp.float32(0.2) * acc)
        elif activation == "sigmoid":
            acc = 1.0 / (1.0 + jnp.exp(-acc))   # exact sigmoid
        o_ref[...] = acc.astype(o_ref.dtype)


def _pick_tk(k_dim):
    """Largest legal K tile <= _TK_MAX, preferring no padding."""
    if k_dim <= _TK_MAX:
        return k_dim, k_dim                      # single K tile, full dim
    for cand in range(_TK_MAX, 127, -128):
        if k_dim % cand == 0:
            return cand, k_dim                   # exact divisor, no padding
    tk = _TK_MAX
    return tk, _round_up(k_dim, tk)              # last resort: zero-pad K


def _pallas_conv_matmul(patches, w_mat, bias, activation, out_dtype):
    """patches: (M, K) bf16.  w_mat: (K, Cout) bf16.  bias: (Cout,) f32."""
    m, k_dim = patches.shape
    cout = w_mat.shape[1]

    # bf16 blocks: second-minor dim must be a multiple of 16 (or full dim).
    tm = _TM_MAX if m >= _TM_MAX else _round_up(m, 16)
    m_p = _round_up(m, tm)
    tk, k_p = _pick_tk(k_dim)
    if cout <= _TN_MAX:
        tn, cout_p = cout, cout                  # full-dim block (e.g. 64)
    else:
        tn = _TN_MAX
        cout_p = _round_up(cout, tn)

    if m_p != m or k_p != k_dim:
        patches = jnp.pad(patches, ((0, m_p - m), (0, k_p - k_dim)))
    if k_p != k_dim or cout_p != cout:
        w_mat = jnp.pad(w_mat, ((0, k_p - k_dim), (0, cout_p - cout)))
    bias2d = bias.reshape(1, cout)
    if cout_p != cout:
        bias2d = jnp.pad(bias2d, ((0, 0), (0, cout_p - cout)))

    grid = (m_p // tm, cout_p // tn, k_p // tk)
    kernel = functools.partial(_conv_mm_kernel, activation=activation)

    out = pl.pallas_call(
        kernel,
        out_shape=jax.ShapeDtypeStruct((m_p, cout_p), out_dtype),
        grid_spec=pltpu.PrefetchScalarGridSpec(
            num_scalar_prefetch=0,
            grid=grid,
            in_specs=[
                pl.BlockSpec((tm, tk), lambda i, j, k: (i, k)),
                # NOTE: with K innermost this weight tile is re-streamed per
                # (i, j) output tile; tm is large so M_tiles stays small.
                pl.BlockSpec((tk, tn), lambda i, j, k: (k, j)),
                pl.BlockSpec((1, tn), lambda i, j, k: (0, j)),
            ],
            out_specs=pl.BlockSpec((tm, tn), lambda i, j, k: (i, j)),
            scratch_shapes=[pltpu.VMEM((tm, tn), jnp.float32)],
        ),
        compiler_params=pltpu.CompilerParams(
            dimension_semantics=("parallel", "parallel", "arbitrary"),
            vmem_limit_bytes=_VMEM_LIMIT,
        ),
    )(patches, w_mat, bias2d)

    if m_p != m or cout_p != cout:
        out = out[:m, :cout]
    return out


# ----------------------------------------------------------------------------
# Kernel 2: single-output-channel conv (final layer).  VPU multiply + XLU
# lane reduction over K — no MXU columns wasted, no 128x weight padding.
# ----------------------------------------------------------------------------
def _conv_reduce_kernel(p_ref, w_ref, b_ref, o_ref, *, activation):
    # p_ref: (tm, K) bf16   w_ref: (1, K) bf16   b_ref: (1, 1) f32
    # o_ref: (tm, 1) f32
    prod = p_ref[...].astype(jnp.float32) * w_ref[...].astype(jnp.float32)
    acc = jnp.sum(prod, axis=-1, keepdims=True) + b_ref[...]
    if activation == "leaky_relu":
        acc = jnp.where(acc > 0, acc, jnp.float32(0.2) * acc)
    elif activation == "sigmoid":
        acc = 1.0 / (1.0 + jnp.exp(-acc))       # exact sigmoid
    o_ref[...] = acc.astype(o_ref.dtype)


def _pallas_conv_reduce(patches, w_vec, bias, activation, out_dtype):
    """patches: (M, K) bf16.  w_vec: (K,) bf16.  bias: (1,) f32 -> (M, 1)."""
    m, k_dim = patches.shape
    tm = 128 if m >= 128 else _round_up(m, 16)
    m_p = _round_up(m, tm)
    if m_p != m:
        patches = jnp.pad(patches, ((0, m_p - m), (0, 0)))
    w2d = w_vec.reshape(1, k_dim)
    b2d = bias.reshape(1, 1)

    out = pl.pallas_call(
        functools.partial(_conv_reduce_kernel, activation=activation),
        out_shape=jax.ShapeDtypeStruct((m_p, 1), out_dtype),
        grid_spec=pltpu.PrefetchScalarGridSpec(
            num_scalar_prefetch=0,
            grid=(m_p // tm,),
            in_specs=[
                pl.BlockSpec((tm, k_dim), lambda i: (i, 0)),
                pl.BlockSpec((1, k_dim), lambda i: (0, 0)),
                pl.BlockSpec((1, 1), lambda i: (0, 0)),
            ],
            out_specs=pl.BlockSpec((tm, 1), lambda i: (i, 0)),
        ),
        compiler_params=pltpu.CompilerParams(
            dimension_semantics=("parallel",),
            vmem_limit_bytes=_VMEM_LIMIT,
        ),
    )(patches, w2d, b2d)
    return out[:m] if m_p != m else out


# ----------------------------------------------------------------------------
# Glue: NHWC patch extraction (runs directly on bf16 activations).
# ----------------------------------------------------------------------------
def _extract_patches_nhwc(x, kh, kw, stride, pad):
    n, h, w, c = x.shape
    xp = jnp.pad(x, ((0, 0), (pad, pad), (pad, pad), (0, 0)))
    ho = (h + 2 * pad - kh) // stride + 1
    wo = (w + 2 * pad - kw) // stride + 1
    cols = []
    for i in range(kh):
        for j in range(kw):
            cols.append(
                xp[:, i:i + stride * ho:stride, j:j + stride * wo:stride, :]
            )
    patches = jnp.stack(cols, axis=3)              # (N, Ho, Wo, kh*kw, C)
    return patches.reshape(n * ho * wo, kh * kw * c), ho, wo


def conv2d_pallas_nhwc(x, weight, bias, stride, pad, activation, out_dtype):
    """x: (N, H, W, Cin) bf16 NHWC.  weight: (Cout, Cin, kh, kw) f32."""
    n = x.shape[0]
    cout, cin, kh, kw = weight.shape
    patches, ho, wo = _extract_patches_nhwc(x, kh, kw, stride, pad)
    # Match patch K-ordering (kh, kw, Cin): weight -> (kh, kw, Cin, Cout).
    w_mat = jnp.transpose(weight, (2, 3, 1, 0)).reshape(kh * kw * cin, cout)
    w_mat = w_mat.astype(jnp.bfloat16)
    b = bias.astype(jnp.float32)
    if cout == 1:
        out = _pallas_conv_reduce(patches, w_mat.reshape(-1), b,
                                  activation, out_dtype)
    else:
        out = _pallas_conv_matmul(patches, w_mat, b, activation, out_dtype)
    return out.reshape(n, ho, wo, cout)            # stays NHWC (lane-dense)


# ----------------------------------------------------------------------------
# Model definition / parameters
# ----------------------------------------------------------------------------
_LAYER_CFG = [
    # (Cout, Cin, k, stride, pad, activation)
    (64, 3, 4, 2, 1, "leaky_relu"),
    (128, 64, 4, 2, 1, "leaky_relu"),
    (256, 128, 4, 2, 1, "leaky_relu"),
    (512, 256, 4, 2, 1, "leaky_relu"),
    (1, 512, 3, 1, 1, "sigmoid"),
]


def init_params(key):
    params = []
    for (cout, cin, k, _, _, _) in _LAYER_CFG:
        key, kw_, kb_ = jax.random.split(key, 3)
        fan_in = cin * k * k
        bound = 1.0 / float(fan_in) ** 0.5
        w = jax.random.uniform(kw_, (cout, cin, k, k), jnp.float32, -bound, bound)
        b = jax.random.uniform(kb_, (cout,), jnp.float32, -bound, bound)
        params.append((w, b))
    return params


@jax.jit
def discriminator_forward(params, x_nchw):
    # PyTorch I/O boundary is NCHW f32; run NHWC + bf16 internally
    # (all matmul accumulation stays f32).
    x = jnp.transpose(x_nchw.astype(jnp.float32), (0, 2, 3, 1))
    x = x.astype(jnp.bfloat16)
    n_layers = len(_LAYER_CFG)
    for idx, ((w, b), (_, _, _, stride, pad, act)) in enumerate(
            zip(params, _LAYER_CFG)):
        out_dtype = jnp.float32 if idx == n_layers - 1 else jnp.bfloat16
        x = conv2d_pallas_nhwc(x, w, b, stride, pad, act, out_dtype)
        # nn.Dropout(0.5): identity in eval mode (see TODO at top of file).
    return jnp.transpose(x, (0, 3, 1, 2))          # back to NCHW, f32


# ----------------------------------------------------------------------------
# Pure-JAX reference (f32) for validation
# ----------------------------------------------------------------------------
def _reference_forward(params, x_nchw):
    x = x_nchw.astype(jnp.float32)
    for (w, b), (_, _, _, stride, pad, act) in zip(params, _LAYER_CFG):
        x = jax.lax.conv_general_dilated(
            x, w, window_strides=(stride, stride),
            padding=[(pad, pad), (pad, pad)],
            dimension_numbers=("NCHW", "OIHW", "NCHW"),
        ) + b.reshape(1, -1, 1, 1)
        if act == "leaky_relu":
            x = jnp.where(x > 0, x, 0.2 * x)
        else:
            x = jax.nn.sigmoid(x)
    return x


# ----------------------------------------------------------------------------
if __name__ == "__main__":
    key = jax.random.PRNGKey(0)
    k_param, k_x = jax.random.split(key)
    params = init_params(k_param)

    # Small input consistent with the module: NCHW, 3 input channels.
    x = jax.random.normal(k_x, (2, 3, 16, 16), dtype=jnp.float32)

    out = discriminator_forward(params, x)
    out = jax.block_until_ready(out)

    assert out.shape == (2, 1, 1, 1), out.shape
    assert bool(jnp.all((out >= 0.0) & (out <= 1.0)))  # sigmoid range

    ref = _reference_forward(params, x)
    assert bool(jnp.allclose(out, ref, atol=5e-2, rtol=5e-2)), (
        "max abs diff vs reference: "
        + str(float(jnp.max(jnp.abs(out - ref))))
    )

    print("KERNEL_OK")
</pallas_src>

<mosaic_0001>
module attributes {stable_mosaic.version = 11 : i64} {
  func.func @_conv_mm_kernel(%arg0: i32, %arg1: i32, %arg2: i32, %arg3: memref<128x48xbf16, #tpu.memory_space<vmem>>, %arg4: memref<48x64xbf16, #tpu.memory_space<vmem>>, %arg5: memref<1x64xf32, #tpu.memory_space<vmem>>, %arg6: memref<128x64xbf16, #tpu.memory_space<vmem>>, %arg7: memref<128x64xf32, #tpu.memory_space<vmem>>) attributes {dimension_semantics = [#tpu.dimension_semantics<parallel>, #tpu.dimension_semantics<parallel>, #tpu.dimension_semantics<arbitrary>], iteration_bounds = array<i64: 1, 1, 1>, scalar_prefetch = 0 : i64, scratch_operands = 1 : i64, tpu.core_type = #tpu.core_type<tc>, window_params = [{transform_indices = @transform_0, window_bounds = array<i64: 128, 48>}, {transform_indices = @transform_1, window_bounds = array<i64: 48, 64>}, {transform_indices = @transform_2, window_bounds = array<i64: 1, 64>}, {transform_indices = @transform_3, window_bounds = array<i64: 128, 64>}]} {
    %c0_i32 = arith.constant 0 : i32
    %0 = arith.cmpi eq, %arg2, %c0_i32 : i32
    %1 = arith.extui %0 : i1 to i32
    %c0_i32_0 = arith.constant 0 : i32
    %2 = arith.cmpi ne, %1, %c0_i32_0 : i32
    scf.if %2 {
      %c0_10 = arith.constant 0 : index
      %c0_11 = arith.constant 0 : index
      %12 = vector.load %arg5[%c0_10, %c0_11] : memref<1x64xf32, #tpu.memory_space<vmem>>, vector<1x64xf32>
      %13 = vector.shape_cast %12 : vector<1x64xf32> to vector<1x64xf32>
      %14 = vector.broadcast %13 : vector<1x64xf32> to vector<128x64xf32>
      %c0_12 = arith.constant 0 : index
      %c0_13 = arith.constant 0 : index
      %15 = vector.load %arg7[%c0_12, %c0_13] : memref<128x64xf32, #tpu.memory_space<vmem>>, vector<128x64xf32>
      tpu.vector_store %arg7[%c0_12, %c0_13], %14 {strides = array<i32>} : memref<128x64xf32, #tpu.memory_space<vmem>>, vector<128x64xf32>,
    } else {
    }
    %c0 = arith.constant 0 : index
    %c0_1 = arith.constant 0 : index
    %3 = vector.load %arg7[%c0, %c0_1] : memref<128x64xf32, #tpu.memory_space<vmem>>, vector<128x64xf32>
    %c0_2 = arith.constant 0 : index
    %c0_3 = arith.constant 0 : index
    %4 = vector.load %arg3[%c0_2, %c0_3] : memref<128x48xbf16, #tpu.memory_space<vmem>>, vector<128x48xbf16>
    %c0_4 = arith.constant 0 : index
    %c0_5 = arith.constant 0 : index
    %5 = vector.load %arg4[%c0_4, %c0_5] : memref<48x64xbf16, #tpu.memory_space<vmem>>, vector<48x64xbf16>
    %cst = arith.constant dense<0.000000e+00> : vector<128x64xf32>
    %6 = tpu.matmul %4, %5, %cst {dimension_numbers = #tpu.dot_dimension_numbers<[1], [0], [0], [1], [0, 0, 1, 1], [], []>} : vector<128x48xbf16>, vector<48x64xbf16>, vector<128x64xf32> -> vector<128x64xf32>
    %7 = arith.addf %3, %6 : vector<128x64xf32>
    %c0_6 = arith.constant 0 : index
    %c0_7 = arith.constant 0 : index
    %8 = vector.load %arg7[%c0_6, %c0_7] : memref<128x64xf32, #tpu.memory_space<vmem>>, vector<128x64xf32>
    tpu.vector_store %arg7[%c0_6, %c0_7], %7 {strides = array<i32>} : memref<128x64xf32, #tpu.memory_space<vmem>>, vector<128x64xf32>,
    %c0_i32_8 = arith.constant 0 : i32
    %9 = arith.cmpi eq, %arg2, %c0_i32_8 : i32
    %10 = arith.extui %9 : i1 to i32
    %c0_i32_9 = arith.constant 0 : i32
    %11 = arith.cmpi ne, %10, %c0_i32_9 : i32
    scf.if %11 {
      %c0_10 = arith.constant 0 : index
      %c0_11 = arith.constant 0 : index
      %12 = vector.load %arg7[%c0_10, %c0_11] : memref<128x64xf32, #tpu.memory_space<vmem>>, vector<128x64xf32>
      %cst_12 = arith.constant 0.000000e+00 : f32
      %13 = vector.broadcast %cst_12 : f32 to vector<128x64xf32>
      %14 = arith.cmpf ogt, %12, %13 : vector<128x64xf32>
      %cst_13 = arith.constant 2.000000e-01 : f32
      %15 = vector.broadcast %cst_13 : f32 to vector<128x64xf32>
      %16 = arith.mulf %15, %12 : vector<128x64xf32>
      %17 = arith.select %14, %12, %16 : vector<128x64xi1>, vector<128x64xf32>
      %18 = arith.truncf %17 : vector<128x64xf32> to vector<128x64xbf16>
      %c0_14 = arith.constant 0 : index
      %c0_15 = arith.constant 0 : index
      %19 = vector.load %arg6[%c0_14, %c0_15] : memref<128x64xbf16, #tpu.memory_space<vmem>>, vector<128x64xbf16>
      tpu.vector_store %arg6[%c0_14, %c0_15], %18 {strides = array<i32>} : memref<128x64xbf16, #tpu.memory_space<vmem>>, vector<128x64xbf16>,
    } else {
    }
    return
  }
  func.func @transform_0(%arg0: i32, %arg1: i32, %arg2: i32) -> (i32, i32) {
    %c0_i32 = arith.constant 0 : i32
    return %arg0, %arg2 : i32, i32
  }
  func.func @transform_1(%arg0: i32, %arg1: i32, %arg2: i32) -> (i32, i32) {
    %c0_i32 = arith.constant 0 : i32
    return %arg2, %arg1 : i32, i32
  }
  func.func @transform_2(%arg0: i32, %arg1: i32, %arg2: i32) -> (i32, i32) {
    %c0_i32 = arith.constant 0 : i32
    %c0_i32_0 = arith.constant 0 : i32
    return %c0_i32, %arg1 : i32, i32
  }
  func.func @transform_3(%arg0: i32, %arg1: i32, %arg2: i32) -> (i32, i32) {
    %c0_i32 = arith.constant 0 : i32
    return %arg0, %arg1 : i32, i32
  }
}

module attributes {stable_mosaic.version = 11 : i64} {
  func.func @_conv_mm_kernel(%arg0: i32, %arg1: i32, %arg2: i32, %arg3: memref<32x1024xbf16, #tpu.memory_space<vmem>>, %arg4: memref<1024x128xbf16, #tpu.memory_space<vmem>>, %arg5: memref<1x128xf32, #tpu.memory_space<vmem>>, %arg6: memref<32x128xbf16, #tpu.memory_space<vmem>>, %arg7: memref<32x128xf32, #tpu.memory_space<vmem>>) attributes {dimension_semantics = [#tpu.dimension_semantics<parallel>, #tpu.dimension_semantics<parallel>, #tpu.dimension_semantics<arbitrary>], iteration_bounds = array<i64: 1, 1, 1>, scalar_prefetch = 0 : i64, scratch_operands = 1 : i64, tpu.core_type = #tpu.core_type<tc>, window_params = [{transform_indices = @transform_0, window_bounds = array<i64: 32, 1024>}, {transform_indices = @transform_1, window_bounds = array<i64: 1024, 128>}, {transform_indices = @transform_2, window_bounds = array<i64: 1, 128>}, {transform_indices = @transform_3, window_bounds = array<i64: 32, 128>}]} {
    %c0_i32 = arith.constant 0 : i32
    %0 = arith.cmpi eq, %arg2, %c0_i32 : i32
    %1 = arith.extui %0 : i1 to i32
    %c0_i32_0 = arith.constant 0 : i32
    %2 = arith.cmpi ne, %1, %c0_i32_0 : i32
    scf.if %2 {
      %c0_10 = arith.constant 0 : index
      %c0_11 = arith.constant 0 : index
      %12 = vector.load %arg5[%c0_10, %c0_11] : memref<1x128xf32, #tpu.memory_space<vmem>>, vector<1x128xf32>
      %13 = vector.shape_cast %12 : vector<1x128xf32> to vector<1x128xf32>
      %14 = vector.broadcast %13 : vector<1x128xf32> to vector<32x128xf32>
      %c0_12 = arith.constant 0 : index
      %c0_13 = arith.constant 0 : index
      %15 = vector.load %arg7[%c0_12, %c0_13] : memref<32x128xf32, #tpu.memory_space<vmem>>, vector<32x128xf32>
      tpu.vector_store %arg7[%c0_12, %c0_13], %14 {strides = array<i32>} : memref<32x128xf32, #tpu.memory_space<vmem>>, vector<32x128xf32>,
    } else {
    }
    %c0 = arith.constant 0 : index
    %c0_1 = arith.constant 0 : index
    %3 = vector.load %arg7[%c0, %c0_1] : memref<32x128xf32, #tpu.memory_space<vmem>>, vector<32x128xf32>
    %c0_2 = arith.constant 0 : index
    %c0_3 = arith.constant 0 : index
    %4 = vector.load %arg3[%c0_2, %c0_3] : memref<32x1024xbf16, #tpu.memory_space<vmem>>, vector<32x1024xbf16>
    %c0_4 = arith.constant 0 : index
    %c0_5 = arith.constant 0 : index
    %5 = vector.load %arg4[%c0_4, %c0_5] : memref<1024x128xbf16, #tpu.memory_space<vmem>>, vector<1024x128xbf16>
    %cst = arith.constant dense<0.000000e+00> : vector<32x128xf32>
    %6 = tpu.matmul %4, %5, %cst {dimension_numbers = #tpu.dot_dimension_numbers<[1], [0], [0], [1], [0, 0, 1, 1], [], []>} : vector<32x1024xbf16>, vector<1024x128xbf16>, vector<32x128xf32> -> vector<32x128xf32>
    %7 = arith.addf %3, %6 : vector<32x128xf32>
    %c0_6 = arith.constant 0 : index
    %c0_7 = arith.constant 0 : index
    %8 = vector.load %arg7[%c0_6, %c0_7] : memref<32x128xf32, #tpu.memory_space<vmem>>, vector<32x128xf32>
    tpu.vector_store %arg7[%c0_6, %c0_7], %7 {strides = array<i32>} : memref<32x128xf32, #tpu.memory_space<vmem>>, vector<32x128xf32>,
    %c0_i32_8 = arith.constant 0 : i32
    %9 = arith.cmpi eq, %arg2, %c0_i32_8 : i32
    %10 = arith.extui %9 : i1 to i32
    %c0_i32_9 = arith.constant 0 : i32
    %11 = arith.cmpi ne, %10, %c0_i32_9 : i32
    scf.if %11 {
      %c0_10 = arith.constant 0 : index
      %c0_11 = arith.constant 0 : index
      %12 = vector.load %arg7[%c0_10, %c0_11] : memref<32x128xf32, #tpu.memory_space<vmem>>, vector<32x128xf32>
      %cst_12 = arith.constant 0.000000e+00 : f32
      %13 = vector.broadcast %cst_12 : f32 to vector<32x128xf32>
      %14 = arith.cmpf ogt, %12, %13 : vector<32x128xf32>
      %cst_13 = arith.constant 2.000000e-01 : f32
      %15 = vector.broadcast %cst_13 : f32 to vector<32x128xf32>
      %16 = arith.mulf %15, %12 : vector<32x128xf32>
      %17 = arith.select %14, %12, %16 : vector<32x128xi1>, vector<32x128xf32>
      %18 = arith.truncf %17 : vector<32x128xf32> to vector<32x128xbf16>
      %c0_14 = arith.constant 0 : index
      %c0_15 = arith.constant 0 : index
      %19 = vector.load %arg6[%c0_14, %c0_15] : memref<32x128xbf16, #tpu.memory_space<vmem>>, vector<32x128xbf16>
      tpu.vector_store %arg6[%c0_14, %c0_15], %18 {strides = array<i32>} : memref<32x128xbf16, #tpu.memory_space<vmem>>, vector<32x128xbf16>,
    } else {
    }
    return
  }
  func.func @transform_0(%arg0: i32, %arg1: i32, %arg2: i32) -> (i32, i32) {
    %c0_i32 = arith.constant 0 : i32
    return %arg0, %arg2 : i32, i32
  }
  func.func @transform_1(%arg0: i32, %arg1: i32, %arg2: i32) -> (i32, i32) {
    %c0_i32 = arith.constant 0 : i32
    return %arg2, %arg1 : i32, i32
  }
  func.func @transform_2(%arg0: i32, %arg1: i32, %arg2: i32) -> (i32, i32) {
    %c0_i32 = arith.constant 0 : i32
    %c0_i32_0 = arith.constant 0 : i32
    return %c0_i32, %arg1 : i32, i32
  }
  func.func @transform_3(%arg0: i32, %arg1: i32, %arg2: i32) -> (i32, i32) {
    %c0_i32 = arith.constant 0 : i32
    return %arg0, %arg1 : i32, i32
  }
}

module attributes {stable_mosaic.version = 11 : i64} {
  func.func @_conv_mm_kernel(%arg0: i32, %arg1: i32, %arg2: i32, %arg3: memref<16x2048xbf16, #tpu.memory_space<vmem>>, %arg4: memref<2048x256xbf16, #tpu.memory_space<vmem>>, %arg5: memref<1x256xf32, #tpu.memory_space<vmem>>, %arg6: memref<16x256xbf16, #tpu.memory_space<vmem>>, %arg7: memref<16x256xf32, #tpu.memory_space<vmem>>) attributes {dimension_semantics = [#tpu.dimension_semantics<parallel>, #tpu.dimension_semantics<parallel>, #tpu.dimension_semantics<arbitrary>], iteration_bounds = array<i64: 1, 1, 1>, scalar_prefetch = 0 : i64, scratch_operands = 1 : i64, tpu.core_type = #tpu.core_type<tc>, window_params = [{transform_indices = @transform_0, window_bounds = array<i64: 16, 2048>}, {transform_indices = @transform_1, window_bounds = array<i64: 2048, 256>}, {transform_indices = @transform_2, window_bounds = array<i64: 1, 256>}, {transform_indices = @transform_3, window_bounds = array<i64: 16, 256>}]} {
    %c0_i32 = arith.constant 0 : i32
    %0 = arith.cmpi eq, %arg2, %c0_i32 : i32
    %1 = arith.extui %0 : i1 to i32
    %c0_i32_0 = arith.constant 0 : i32
    %2 = arith.cmpi ne, %1, %c0_i32_0 : i32
    scf.if %2 {
      %c0_10 = arith.constant 0 : index
      %c0_11 = arith.constant 0 : index
      %12 = vector.load %arg5[%c0_10, %c0_11] : memref<1x256xf32, #tpu.memory_space<vmem>>, vector<1x256xf32>
      %13 = vector.shape_cast %12 : vector<1x256xf32> to vector<1x256xf32>
      %14 = vector.broadcast %13 : vector<1x256xf32> to vector<16x256xf32>
      %c0_12 = arith.constant 0 : index
      %c0_13 = arith.constant 0 : index
      %15 = vector.load %arg7[%c0_12, %c0_13] : memref<16x256xf32, #tpu.memory_space<vmem>>, vector<16x256xf32>
      tpu.vector_store %arg7[%c0_12, %c0_13], %14 {strides = array<i32>} : memref<16x256xf32, #tpu.memory_space<vmem>>, vector<16x256xf32>,
    } else {
    }
    %c0 = arith.constant 0 : index
    %c0_1 = arith.constant 0 : index
    %3 = vector.load %arg7[%c0, %c0_1] : memref<16x256xf32, #tpu.memory_space<vmem>>, vector<16x256xf32>
    %c0_2 = arith.constant 0 : index
    %c0_3 = arith.constant 0 : index
    %4 = vector.load %arg3[%c0_2, %c0_3] : memref<16x2048xbf16, #tpu.memory_space<vmem>>, vector<16x2048xbf16>
    %c0_4 = arith.constant 0 : index
    %c0_5 = arith.constant 0 : index
    %5 = vector.load %arg4[%c0_4, %c0_5] : memref<2048x256xbf16, #tpu.memory_space<vmem>>, vector<2048x256xbf16>
    %cst = arith.constant dense<0.000000e+00> : vector<16x256xf32>
    %6 = tpu.matmul %4, %5, %cst {dimension_numbers = #tpu.dot_dimension_numbers<[1], [0], [0], [1], [0, 0, 1, 1], [], []>} : vector<16x2048xbf16>, vector<2048x256xbf16>, vector<16x256xf32> -> vector<16x256xf32>
    %7 = arith.addf %3, %6 : vector<16x256xf32>
    %c0_6 = arith.constant 0 : index
    %c0_7 = arith.constant 0 : index
    %8 = vector.load %arg7[%c0_6, %c0_7] : memref<16x256xf32, #tpu.memory_space<vmem>>, vector<16x256xf32>
    tpu.vector_store %arg7[%c0_6, %c0_7], %7 {strides = array<i32>} : memref<16x256xf32, #tpu.memory_space<vmem>>, vector<16x256xf32>,
    %c0_i32_8 = arith.constant 0 : i32
    %9 = arith.cmpi eq, %arg2, %c0_i32_8 : i32
    %10 = arith.extui %9 : i1 to i32
    %c0_i32_9 = arith.constant 0 : i32
    %11 = arith.cmpi ne, %10, %c0_i32_9 : i32
    scf.if %11 {
      %c0_10 = arith.constant 0 : index
      %c0_11 = arith.constant 0 : index
      %12 = vector.load %arg7[%c0_10, %c0_11] : memref<16x256xf32, #tpu.memory_space<vmem>>, vector<16x256xf32>
      %cst_12 = arith.constant 0.000000e+00 : f32
      %13 = vector.broadcast %cst_12 : f32 to vector<16x256xf32>
      %14 = arith.cmpf ogt, %12, %13 : vector<16x256xf32>
      %cst_13 = arith.constant 2.000000e-01 : f32
      %15 = vector.broadcast %cst_13 : f32 to vector<16x256xf32>
      %16 = arith.mulf %15, %12 : vector<16x256xf32>
      %17 = arith.select %14, %12, %16 : vector<16x256xi1>, vector<16x256xf32>
      %18 = arith.truncf %17 : vector<16x256xf32> to vector<16x256xbf16>
      %c0_14 = arith.constant 0 : index
      %c0_15 = arith.constant 0 : index
      %19 = vector.load %arg6[%c0_14, %c0_15] : memref<16x256xbf16, #tpu.memory_space<vmem>>, vector<16x256xbf16>
      tpu.vector_store %arg6[%c0_14, %c0_15], %18 {strides = array<i32>} : memref<16x256xbf16, #tpu.memory_space<vmem>>, vector<16x256xbf16>,
    } else {
    }
    return
  }
  func.func @transform_0(%arg0: i32, %arg1: i32, %arg2: i32) -> (i32, i32) {
    %c0_i32 = arith.constant 0 : i32
    return %arg0, %arg2 : i32, i32
  }
  func.func @transform_1(%arg0: i32, %arg1: i32, %arg2: i32) -> (i32, i32) {
    %c0_i32 = arith.constant 0 : i32
    return %arg2, %arg1 : i32, i32
  }
  func.func @transform_2(%arg0: i32, %arg1: i32, %arg2: i32) -> (i32, i32) {
    %c0_i32 = arith.constant 0 : i32
    %c0_i32_0 = arith.constant 0 : i32
    return %c0_i32, %arg1 : i32, i32
  }
  func.func @transform_3(%arg0: i32, %arg1: i32, %arg2: i32) -> (i32, i32) {
    %c0_i32 = arith.constant 0 : i32
    return %arg0, %arg1 : i32, i32
  }
}

module attributes {stable_mosaic.version = 11 : i64} {
  func.func @_conv_mm_kernel(%arg0: i32, %arg1: i32, %arg2: i32, %arg3: memref<16x2048xbf16, #tpu.memory_space<vmem>>, %arg4: memref<2048x256xbf16, #tpu.memory_space<vmem>>, %arg5: memref<1x256xf32, #tpu.memory_space<vmem>>, %arg6: memref<16x256xbf16, #tpu.memory_space<vmem>>, %arg7: memref<16x256xf32, #tpu.memory_space<vmem>>) attributes {dimension_semantics = [#tpu.dimension_semantics<parallel>, #tpu.dimension_semantics<parallel>, #tpu.dimension_semantics<arbitrary>], iteration_bounds = array<i64: 1, 2, 2>, scalar_prefetch = 0 : i64, scratch_operands = 1 : i64, tpu.core_type = #tpu.core_type<tc>, window_params = [{transform_indices = @transform_0, window_bounds = array<i64: 16, 2048>}, {transform_indices = @transform_1, window_bounds = array<i64: 2048, 256>}, {transform_indices = @transform_2, window_bounds = array<i64: 1, 256>}, {transform_indices = @transform_3, window_bounds = array<i64: 16, 256>}]} {
    %c0_i32 = arith.constant 0 : i32
    %0 = arith.cmpi eq, %arg2, %c0_i32 : i32
    %1 = arith.extui %0 : i1 to i32
    %c0_i32_0 = arith.constant 0 : i32
    %2 = arith.cmpi ne, %1, %c0_i32_0 : i32
    scf.if %2 {
      %c0_9 = arith.constant 0 : index
      %c0_10 = arith.constant 0 : index
      %12 = vector.load %arg5[%c0_9, %c0_10] : memref<1x256xf32, #tpu.memory_space<vmem>>, vector<1x256xf32>
      %13 = vector.shape_cast %12 : vector<1x256xf32> to vector<1x256xf32>
      %14 = vector.broadcast %13 : vector<1x256xf32> to vector<16x256xf32>
      %c0_11 = arith.constant 0 : index
      %c0_12 = arith.constant 0 : index
      %15 = vector.load %arg7[%c0_11, %c0_12] : memref<16x256xf32, #tpu.memory_space<vmem>>, vector<16x256xf32>
      tpu.vector_store %arg7[%c0_11, %c0_12], %14 {strides = array<i32>} : memref<16x256xf32, #tpu.memory_space<vmem>>, vector<16x256xf32>,
    } else {
    }
    %c0 = arith.constant 0 : index
    %c0_1 = arith.constant 0 : index
    %3 = vector.load %arg7[%c0, %c0_1] : memref<16x256xf32, #tpu.memory_space<vmem>>, vector<16x256xf32>
    %c0_2 = arith.constant 0 : index
    %c0_3 = arith.constant 0 : index
    %4 = vector.load %arg3[%c0_2, %c0_3] : memref<16x2048xbf16, #tpu.memory_space<vmem>>, vector<16x2048xbf16>
    %c0_4 = arith.constant 0 : index
    %c0_5 = arith.constant 0 : index
    %5 = vector.load %arg4[%c0_4, %c0_5] : memref<2048x256xbf16, #tpu.memory_space<vmem>>, vector<2048x256xbf16>
    %cst = arith.constant dense<0.000000e+00> : vector<16x256xf32>
    %6 = tpu.matmul %4, %5, %cst {dimension_numbers = #tpu.dot_dimension_numbers<[1], [0], [0], [1], [0, 0, 1, 1], [], []>} : vector<16x2048xbf16>, vector<2048x256xbf16>, vector<16x256xf32> -> vector<16x256xf32>
    %7 = arith.addf %3, %6 : vector<16x256xf32>
    %c0_6 = arith.constant 0 : index
    %c0_7 = arith.constant 0 : index
    %8 = vector.load %arg7[%c0_6, %c0_7] : memref<16x256xf32, #tpu.memory_space<vmem>>, vector<16x256xf32>
    tpu.vector_store %arg7[%c0_6, %c0_7], %7 {strides = array<i32>} : memref<16x256xf32, #tpu.memory_space<vmem>>, vector<16x256xf32>,
    %c1_i32 = arith.constant 1 : i32
    %9 = arith.cmpi eq, %arg2, %c1_i32 : i32
    %10 = arith.extui %9 : i1 to i32
    %c0_i32_8 = arith.constant 0 : i32
    %11 = arith.cmpi ne, %10, %c0_i32_8 : i32
    scf.if %11 {
      %c0_9 = arith.constant 0 : index
      %c0_10 = arith.constant 0 : index
      %12 = vector.load %arg7[%c0_9, %c0_10] : memref<16x256xf32, #tpu.memory_space<vmem>>, vector<16x256xf32>
      %cst_11 = arith.constant 0.000000e+00 : f32
      %13 = vector.broadcast %cst_11 : f32 to vector<16x256xf32>
      %14 = arith.cmpf ogt, %12, %13 : vector<16x256xf32>
      %cst_12 = arith.constant 2.000000e-01 : f32
      %15 = vector.broadcast %cst_12 : f32 to vector<16x256xf32>
      %16 = arith.mulf %15, %12 : vector<16x256xf32>
      %17 = arith.select %14, %12, %16 : vector<16x256xi1>, vector<16x256xf32>
      %18 = arith.truncf %17 : vector<16x256xf32> to vector<16x256xbf16>
      %c0_13 = arith.constant 0 : index
      %c0_14 = arith.constant 0 : index
      %19 = vector.load %arg6[%c0_13, %c0_14] : memref<16x256xbf16, #tpu.memory_space<vmem>>, vector<16x256xbf16>
      tpu.vector_store %arg6[%c0_13, %c0_14], %18 {strides = array<i32>} : memref<16x256xbf16, #tpu.memory_space<vmem>>, vector<16x256xbf16>,
    } else {
    }
    return
  }
  func.func @transform_0(%arg0: i32, %arg1: i32, %arg2: i32) -> (i32, i32) {
    %c0_i32 = arith.constant 0 : i32
    return %arg0, %arg2 : i32, i32
  }
  func.func @transform_1(%arg0: i32, %arg1: i32, %arg2: i32) -> (i32, i32) {
    %c0_i32 = arith.constant 0 : i32
    return %arg2, %arg1 : i32, i32
  }
  func.func @transform_2(%arg0: i32, %arg1: i32, %arg2: i32) -> (i32, i32) {
    %c0_i32 = arith.constant 0 : i32
    %c0_i32_0 = arith.constant 0 : i32
    return %c0_i32, %arg1 : i32, i32
  }
  func.func @transform_3(%arg0: i32, %arg1: i32, %arg2: i32) -> (i32, i32) {
    %c0_i32 = arith.constant 0 : i32
    return %arg0, %arg1 : i32, i32
  }
}

module attributes {stable_mosaic.version = 11 : i64} {
  func.func @_conv_reduce_kernel(%arg0: i32, %arg1: memref<16x4608xbf16, #tpu.memory_space<vmem>>, %arg2: memref<1x4608xbf16, #tpu.memory_space<vmem>>, %arg3: memref<1x1xf32, #tpu.memory_space<vmem>>, %arg4: memref<16x1xf32, #tpu.memory_space<vmem>>) attributes {dimension_semantics = [#tpu.dimension_semantics<parallel>], iteration_bounds = array<i64: 1>, scalar_prefetch = 0 : i64, scratch_operands = 0 : i64, tpu.core_type = #tpu.core_type<tc>, window_params = [{transform_indices = @transform_0, window_bounds = array<i64: 16, 4608>}, {pipeline_mode = #tpu.pipeline_mode<synchronous>, transform_indices = @transform_1, window_bounds = array<i64: 1, 4608>}, {pipeline_mode = #tpu.pipeline_mode<synchronous>, transform_indices = @transform_2, window_bounds = array<i64: 1, 1>}, {transform_indices = @transform_3, window_bounds = array<i64: 16, 1>}]} {
    %c0 = arith.constant 0 : index
    %c0_0 = arith.constant 0 : index
    %0 = vector.load %arg1[%c0, %c0_0] : memref<16x4608xbf16, #tpu.memory_space<vmem>>, vector<16x4608xbf16>
    %1 = arith.extf %0 : vector<16x4608xbf16> to vector<16x4608xf32>
    %c0_1 = arith.constant 0 : index
    %c0_2 = arith.constant 0 : index
    %2 = vector.load %arg2[%c0_1, %c0_2] : memref<1x4608xbf16, #tpu.memory_space<vmem>>, vector<1x4608xbf16>
    %3 = arith.extf %2 : vector<1x4608xbf16> to vector<1x4608xf32>
    %4 = vector.broadcast %3 : vector<1x4608xf32> to vector<16x4608xf32>
    %5 = arith.mulf %1, %4 : vector<16x4608xf32>
    %cst = arith.constant dense<0.000000e+00> : vector<16xf32>
    %6 = vector.multi_reduction <add>, %5, %cst [1] : vector<16x4608xf32> to vector<16xf32>
    %7 = vector.shape_cast %6 : vector<16xf32> to vector<16x1xf32>
    %c0_3 = arith.constant 0 : index
    %c0_4 = arith.constant 0 : index
    %8 = vector.load %arg3[%c0_3, %c0_4] : memref<1x1xf32, #tpu.memory_space<vmem>>, vector<1x1xf32>
    %9 = vector.broadcast %8 : vector<1x1xf32> to vector<16x1xf32>
    %10 = arith.addf %7, %9 : vector<16x1xf32>
    %cst_5 = arith.constant 0.000000e+00 : f32
    %11 = vector.broadcast %cst_5 : f32 to vector<16x1xf32>
    %12 = arith.subf %11, %10 : vector<16x1xf32>
    %13 = math.exp %12 : vector<16x1xf32>
    %cst_6 = arith.constant 1.000000e+00 : f32
    %14 = vector.broadcast %cst_6 : f32 to vector<16x1xf32>
    %15 = arith.addf %14, %13 : vector<16x1xf32>
    %cst_7 = arith.constant 1.000000e+00 : f32
    %16 = vector.broadcast %cst_7 : f32 to vector<16x1xf32>
    %17 = arith.divf %16, %15 : vector<16x1xf32>
    %c0_8 = arith.constant 0 : index
    %c0_9 = arith.constant 0 : index
    %18 = vector.load %arg4[%c0_8, %c0_9] : memref<16x1xf32, #tpu.memory_space<vmem>>, vector<16x1xf32>
    tpu.vector_store %arg4[%c0_8, %c0_9], %17 {strides = array<i32>} : memref<16x1xf32, #tpu.memory_space<vmem>>, vector<16x1xf32>,
    return
  }
  func.func @transform_0(%arg0: i32) -> (i32, i32) {
    %c0_i32 = arith.constant 0 : i32
    %c0_i32_0 = arith.constant 0 : i32
    return %arg0, %c0_i32 : i32, i32
  }
  func.func @transform_1(%arg0: i32) -> (i32, i32) {
    %c0_i32 = arith.constant 0 : i32
    %c0_i32_0 = arith.constant 0 : i32
    %c0_i32_1 = arith.constant 0 : i32
    return %c0_i32, %c0_i32_0 : i32, i32
  }
  func.func @transform_2(%arg0: i32) -> (i32, i32) {
    %c0_i32 = arith.constant 0 : i32
    %c0_i32_0 = arith.constant 0 : i32
    %c0_i32_1 = arith.constant 0 : i32
    return %c0_i32, %c0_i32_0 : i32, i32
  }
  func.func @transform_3(%arg0: i32) -> (i32, i32) {
    %c0_i32 = arith.constant 0 : i32
    %c0_i32_0 = arith.constant 0 : i32
    return %arg0, %c0_i32 : i32, i32
  }
}

</mosaic_0001>

<bundles_post_ra>
// kernel: discriminator_forward.5
= control target key start
LH: loop header
LB: loop body
LE: loop exit
PB: predicated region body
PF: predicated region fallthrough
CT: control target
= control target key end

     0   :  { %8 = vsyncpa [#allocation4], 0  ;;  %s586_s12 = smov [#allocation3]   ;;  %s761_s0 = inlined_call_operand.vmem [shape: bf16[128,48], index: 0, kind: input, shape index: {}]   ;;  %s762_s1 = inlined_call_operand.vmem [shape: bf16[48,64], index: 1, kind: input, shape index: {}]   ;;  %s763_s2 = inlined_call_operand.hbm [shape: f32[1,64], index: 2, kind: input, shape index: {}]   ;;  %s764_s3 = inlined_call_operand.vmem [shape: bf16[128,64], index: 3, kind: output, shape index: {}]  }
   0x1   :  { %s19_s13 = sshll.u32 %s586_s12, 4  ;;  %s562_s16 = scalar_lea.hbm %s763_s2, 16  ;;  %s20_s13 = int_to_ptr.vmem [resolvable:$true] %s19_s13 }
   0x2   :  { %p563_p0 = scmp.ne.s32.totalorder %s763_s2, %s562_s16  ;;  %p566_p1 = scmp.lt.u32.totalorder %s562_s16, %s763_s2 }
   0x4   :  { %p568_p2 = pnand %p566_p1, %p563_p0 }
   0x6   :  { %571 = shalt.err (!%p568_p2)
}
   0x7   :  { %s572_s21 = scalar_lea.vmem %s20_s13, 16  ;;  %s576_s22 = scalar_lea.vmem %s20_s13, 32 }
   0x8   :  { %p573_p3 = scmp.ne.s32.totalorder %s20_s13, %s572_s21  ;;  %p577_p4 = scmp.lt.s32.totalorder %s20_s13, %s20_s13 }
   0x9   :  { %p578_p5 = scmp.lt.s32.totalorder %s576_s22, %s572_s21 }
   0xb   :  { %p579_p6 = por %p578_p5, %p577_p4 }
   0xd   :  { %p580_p7 = pnand %p579_p6, %p573_p3 }
   0xf   :  { %583 = shalt.err (!%p580_p7)
}
  0x10   :  { %22 = dma.hbm_to_vmem [thread:$0]  %s763_s2, 16, %s20_s13, [#allocation4]  }
  0x11   :  { %584 = dma.done.wait [#allocation4], 16  }
  0x12   :  { %585 = vsyncadd [#allocation4], 4294967280  ;;  %v551_v0 = vld [vmem:[%s762_s1] sm:$0xff]   ;;  %v552_v1 = vld [vmem:[%s762_s1 + $0x8] sm:$0xff]   ;;  %vm151_vm0 = vcmask 392192   ;;  %vm38_vm1 = vcmask 523264  }
  0x13   :  { %522 = vmatprep.subr.bf16.mxu0 %v551_v0  ;;  %544 = vmatprep.subr.bf16.mxu1 %v551_v0  ;;  %v553_v2 = vld [vmem:[%s762_s1 + $0x10] sm:$0xff]   ;;  %v554_v3 = vld [vmem:[%s761_s0] sm:$0xff]   ;;  %v556_v5 = vld [vmem:[%s761_s0 + $0x8] sm:$0xff]   ;;  %vm437_vm4 = vcmask 519168  }
  0x14   :  { %523 = vmatpush3.bf16.msra.mxu0 %v551_v0  ;;  %547 = vmatpush3.bf16.msra.mxu1 %v551_v0  ;;  %v555_v4 = vld [vmem:[%s761_s0 + $0x20] sm:$0xff]   ;;  %v557_v6 = vld [vmem:[%s761_s0 + $0x28] sm:$0xff]   ;;  %v558_v7 = vld [vmem:[%s761_s0 + $0x10] sm:$0xff]  }
  0x15   :  { %524 = vmatprep.subr.bf16.mxu0 %v552_v1  ;;  %545 = vmatprep.subr.bf16.mxu1 %v552_v1  ;;  %v559_v8 = vld [vmem:[%s761_s0 + $0x30] sm:$0xff]   ;;  %v459_v9 = vld [vmem:[#allocation3] ss:$0 sm:$0xff]  ;;  %v560_v10 = vld [vmem:[%s761_s0 + $0x18] sm:$0xff]  }
  0x16   :  { %528 = vmatprep.mubr.msk.bf16.mxu0 %vm151_vm0, %v554_v3  ;;  %536 = vmatprep.mubr.msk.bf16.mxu1 %vm151_vm0, %v555_v4  ;;  %41 = vst.msk [vmem:[#allocation2 + $0x10] sm:$0xff] %vm38_vm1, %v459_v9  ;;  %39 = vst.msk [vmem:[#allocation2] sm:$0xff] %vm38_vm1, %v459_v9  ;;  %v561_v11 = vld [vmem:[%s761_s0 + $0x38] sm:$0xff]  }
  0x17   :  { %40 = vst.msk [vmem:[#allocation2 + $0x8] sm:$0xff] %vm38_vm1, %v459_v9  ;;  %42 = vst.msk [vmem:[#allocation2 + $0x18] sm:$0xff] %vm38_vm1, %v459_v9 }
  0x18   :  { %525 = vmatpush3.bf16.msra.mxu0 %v552_v1  ;;  %548 = vmatpush3.bf16.msra.mxu1 %v552_v1  ;;  %43 = vst.msk [vmem:[#allocation2 + $0x20] sm:$0xff] %vm38_vm1, %v459_v9  ;;  %44 = vst.msk [vmem:[#allocation2 + $0x28] sm:$0xff] %vm38_vm1, %v459_v9 }
  0x19   :  { %526 = vmatprep.subr.bf16.mxu0 %v553_v2  ;;  %546 = vmatprep.subr.bf16.mxu1 %v553_v2  ;;  %45 = vst.msk [vmem:[#allocation2 + $0x30] sm:$0xff] %vm38_vm1, %v459_v9  ;;  %46 = vst.msk [vmem:[#allocation2 + $0x38] sm:$0xff] %vm38_vm1, %v459_v9 }
  0x1a   :  { %47 = vst.msk [vmem:[#allocation2 + $0x40] sm:$0xff] %vm38_vm1, %v459_v9  ;;  %48 = vst.msk [vmem:[#allocation2 + $0x48] sm:$0xff] %vm38_vm1, %v459_v9 }
  0x1b   :  { %49 = vst.msk [vmem:[#allocation2 + $0x50] sm:$0xff] %vm38_vm1, %v459_v9  ;;  %50 = vst.msk [vmem:[#allocation2 + $0x58] sm:$0xff] %vm38_vm1, %v459_v9 }
  0x1c   :  { %527 = vmatpush3.bf16.msra.mxu0 %v553_v2  ;;  %549 = vmatpush3.bf16.msra.mxu1 %v553_v2  ;;  %51 = vst.msk [vmem:[#allocation2 + $0x60] sm:$0xff] %vm38_vm1, %v459_v9  ;;  %52 = vst.msk [vmem:[#allocation2 + $0x68] sm:$0xff] %vm38_vm1, %v459_v9 }
  0x1d   :  { %53 = vst.msk [vmem:[#allocation2 + $0x70] sm:$0xff] %vm38_vm1, %v459_v9  ;;  %54 = vst.msk [vmem:[#allocation2 + $0x78] sm:$0xff] %vm38_vm1, %v459_v9  ;;  %v57_v12 = vld [vmem:[#allocation2 + $0x10] sm:$0xff]  ;;  %v55_v14 = vld [vmem:[#allocation2] sm:$0xff] }
  0x1e   :  { %v58_v18 = vld [vmem:[#allocation2 + $0x18] sm:$0xff]  ;;  %v56_v24 = vld [vmem:[#allocation2 + $0x8] sm:$0xff] }
  0x1f   :  { %529 = vmatmul.mubr.msk.bf16.vlgmr.msra.gmra.mrb[0].mxu0 %vm151_vm0, %v556_v5  ;;  %537 = vmatmul.mubr.msk.bf16.vlgmr.msra.gmra.mrb[0].mxu1 %vm151_vm0, %v557_v6  ;;  %v59_v38 = vld [vmem:[#allocation2 + $0x20] sm:$0xff] }
  0x20   :  { %532 = vmatprep.mubr.msk.bf16.mxu0 %vm151_vm0, %v558_v7  ;;  %540 = vmatprep.mubr.msk.bf16.mxu1 %vm151_vm0, %v559_v8  ;;  %v61_v36 = vld [vmem:[#allocation2 + $0x30] sm:$0xff]  ;;  %v62_v46 = vld [vmem:[#allocation2 + $0x38] sm:$0xff] }
  0x21   :  { %v63_v15 = vld [vmem:[#allocation2 + $0x40] sm:$0xff]  ;;  %v64_v25 = vld [vmem:[#allocation2 + $0x48] sm:$0xff] }
  0x22   :  { %v65_v13 = vld [vmem:[#allocation2 + $0x50] sm:$0xff]  ;;  %v66_v19 = vld [vmem:[#allocation2 + $0x58] sm:$0xff] }
  0x23   :  { %v67_v39 = vld [vmem:[#allocation2 + $0x60] sm:$0xff] }
  0x24   :  { %v69_v37 = vld [vmem:[#allocation2 + $0x70] sm:$0xff]  ;;  %v70_v47 = vld [vmem:[#allocation2 + $0x78] sm:$0xff] }
  0x27   :  { %533 = vmatmul.mubr.msk.bf16.gmra.mrb[4].mxu0 %vm151_vm0, %v560_v10  ;;  %541 = vmatmul.mubr.msk.bf16.gmra.mrb[4].mxu1 %vm151_vm0, %v561_v11  ;;  %v60_v10 = vld [vmem:[#allocation2 + $0x28] sm:$0xff] }
  0xf2   :  { %v530_v16 = vpop.f32.mrb[0].mxu0  ;;  %v538_v17 = vpop.f32.mrb[0].mxu1 }
  0xf3   :  { %v275_v20 = vadd.f32 %v530_v16, %v57_v12  ;;  %v283_v21 = vadd.f32 %v538_v17, %v65_v13  ;;  %v210_v22 = vpop.f32.mrb[1].mxu0  ;;  %v242_v23 = vpop.f32.mrb[1].mxu1 }
  0xf4   :  { %v273_v26 = vadd.f32 %v210_v22, %v55_v14  ;;  %v281_v27 = vadd.f32 %v242_v23, %v63_v15  ;;  %v531_v28 = vpop.f32.mrb[2].mxu0  ;;  %v539_v29 = vpop.f32.mrb[2].mxu1 }
  0xf5   :  { %292 = vst.msk [vmem:[#allocation2 + $0x10] sm:$0xff] %vm38_vm1, %v275_v20  ;;  %300 = vst.msk [vmem:[#allocation2 + $0x50] sm:$0xff] %vm38_vm1, %v283_v21  ;;  %v276_v30 = vadd.f32 %v531_v28, %v58_v18  ;;  %v284_v31 = vadd.f32 %v539_v29, %v66_v19  ;;  %v213_v32 = vpop.f32.mrb[3].mxu0  ;;  %v245_v33 = vpop.f32.mrb[3].mxu1 }
  0xf6   :  { %290 = vst.msk [vmem:[#allocation2] sm:$0xff] %vm38_vm1, %v273_v26  ;;  %298 = vst.msk [vmem:[#allocation2 + $0x40] sm:$0xff] %vm38_vm1, %v281_v27  ;;  %v274_v34 = vadd.f32 %v213_v32, %v56_v24  ;;  %v282_v35 = vadd.f32 %v245_v33, %v64_v25 }
  0xf7   :  { %293 = vst.msk [vmem:[#allocation2 + $0x18] sm:$0xff] %vm38_vm1, %v276_v30  ;;  %301 = vst.msk [vmem:[#allocation2 + $0x58] sm:$0xff] %vm38_vm1, %v284_v31 }
  0xf8   :  { %291 = vst.msk [vmem:[#allocation2 + $0x8] sm:$0xff] %vm38_vm1, %v274_v34  ;;  %299 = vst.msk [vmem:[#allocation2 + $0x48] sm:$0xff] %vm38_vm1, %v282_v35 }
  0xfa   :  { %v534_v40 = vpop.f32.mrb[4].mxu0  ;;  %v542_v41 = vpop.f32.mrb[4].mxu1 }
  0xfb   :  { %v279_v42 = vadd.f32 %v534_v40, %v61_v36  ;;  %v287_v43 = vadd.f32 %v542_v41, %v69_v37  ;;  %v226_v44 = vpop.f32.mrb[5].mxu0  ;;  %v258_v45 = vpop.f32.mrb[5].mxu1 }
  0xfc   :  { %v311_v48 = vld [vmem:[#allocation2 + $0x10] sm:$0xff]  ;;  %v277_v50 = vadd.f32 %v226_v44, %v59_v38  ;;  %v285_v51 = vadd.f32 %v258_v45, %v67_v39  ;;  %v535_v52 = vpop.f32.mrb[6].mxu0  ;;  %v543_v53 = vpop.f32.mrb[6].mxu1  ;;  %v68_v39 = vld [vmem:[#allocation2 + $0x68] sm:$0xff] }
  0xfd   :  { %v319_v49 = vld [vmem:[#allocation2 + $0x50] sm:$0xff]  ;;  %vm327_vm2 = vcmp.gt.f32.partialorder %v311_v48, 0.0  ;;  %v343_v54 = vmul.f32 0.2, %v311_v48  ;;  %296 = vst.msk [vmem:[#allocation2 + $0x30] sm:$0xff] %vm38_vm1, %v279_v42  ;;  %304 = vst.msk [vmem:[#allocation2 + $0x70] sm:$0xff] %vm38_vm1, %v287_v43  ;;  %v280_v59 = vadd.f32 %v535_v52, %v62_v46  ;;  %v288_v60 = vadd.f32 %v543_v53, %v70_v47 }
  0xfe   :  { %vm335_vm3 = vcmp.gt.f32.partialorder %v319_v49, 0.0  ;;  %v351_v55 = vmul.f32 0.2, %v319_v49  ;;  %v309_v56 = vld [vmem:[#allocation2] sm:$0xff]  ;;  %v312_v58 = vld [vmem:[#allocation2 + $0x18] sm:$0xff]  ;;  %294 = vst.msk [vmem:[#allocation2 + $0x20] sm:$0xff] %vm38_vm1, %v277_v50 }
  0xff   :  { %v317_v57 = vld [vmem:[#allocation2 + $0x40] sm:$0xff]  ;;  %302 = vst.msk [vmem:[#allocation2 + $0x60] sm:$0xff] %vm38_vm1, %v285_v51  ;;  %v229_v61 = vpop.f32.mrb[7].mxu0  ;;  %v688_v62 = vpop.f32.mrb[7].mxu1  ;;  %v359_v63 = vsel %vm327_vm2, %v311_v48, %v343_v54  ;;  %vm325_vm5 = vcmp.gt.f32.partialorder %v309_v56, 0.0  ;;  %v320_v2 = vld [vmem:[#allocation2 + $0x58] sm:$0xff] }
 0x100   :  { %v367_v0 = vsel %vm335_vm3, %v319_v49, %v351_v55  ;;  %v341_v1 = vmul.f32 0.2, %v309_v56  ;;  %v310_v3 = vld [vmem:[#allocation2 + $0x8] sm:$0xff]  ;;  %v497_v4 = vpack.c.bf16 %v359_v63, %v359_v63  ;;  %vm333_vm6 = vcmp.gt.f32.partialorder %v317_v57, 0.0  ;;  %297 = vst.msk [vmem:[#allocation2 + $0x38] sm:$0xff] %vm38_vm1, %v280_v59  ;;  %305 = vst.msk [vmem:[#allocation2 + $0x78] sm:$0xff] %vm38_vm1, %v288_v60 }
 0x101   :  { %v505_v5 = vpack.c.bf16 %v367_v0, %v367_v0  ;;  %v349_v6 = vmul.f32 0.2, %v317_v57  ;;  %v318_v7 = vld [vmem:[#allocation2 + $0x48] sm:$0xff]  ;;  %vm328_vm7 = vcmp.gt.f32.partialorder %v312_v58, 0.0  ;;  %v344_v9 = vmul.f32 0.2, %v312_v58 }
 0x102   :  { %v357_v8 = vsel %vm325_vm5, %v309_v56, %v341_v1  ;;  %vm336_vm8 = vcmp.gt.f32.partialorder %v320_v2, 0.0  ;;  %440 = vst.msk [vmem:[%s764_s3 + $0x8] sm:$0xf] %vm437_vm4, %v497_v4  ;;  %v352_v13 = vmul.f32 0.2, %v320_v2  ;;  %vm326_vm9 = vcmp.gt.f32.partialorder %v310_v3, 0.0 }
 0x103   :  { %448 = vst.msk [vmem:[%s764_s3 + $0x28] sm:$0xf] %vm437_vm4, %v505_v5  ;;  %v495_v11 = vpack.c.bf16 %v357_v8, %v357_v8  ;;  %v365_v12 = vsel %vm333_vm6, %v317_v57, %v349_v6  ;;  %v360_v15 = vsel %vm328_vm7, %v312_v58, %v344_v9  ;;  %v342_v16 = vmul.f32 0.2, %v310_v3 }
 0x104   :  { %v503_v14 = vpack.c.bf16 %v365_v12, %v365_v12  ;;  %vm334_vm10 = vcmp.gt.f32.partialorder %v318_v7, 0.0  ;;  %v498_v17 = vpack.c.bf16 %v360_v15, %v360_v15  ;;  %v368_v18 = vsel %vm336_vm8, %v320_v2, %v352_v13  ;;  %v315_v20 = vld [vmem:[#allocation2 + $0x30] sm:$0xff] }
 0x105   :  { %438 = vst.msk [vmem:[%s764_s3] sm:$0xf] %vm437_vm4, %v495_v11  ;;  %v350_v19 = vmul.f32 0.2, %v318_v7  ;;  %v323_v21 = vld [vmem:[#allocation2 + $0x70] sm:$0xff]  ;;  %v278_v22 = vadd.f32 %v229_v61, %v60_v10  ;;  %v506_v23 = vpack.c.bf16 %v368_v18, %v368_v18  ;;  %v358_v24 = vsel %vm326_vm9, %v310_v3, %v342_v16  ;;  %v313_v26 = vld [vmem:[#allocation2 + $0x20] sm:$0xff] }
 0x106   :  { %446 = vst.msk [vmem:[%s764_s3 + $0x20] sm:$0xf] %vm437_vm4, %v503_v14  ;;  %vm331_vm11 = vcmp.gt.f32.partialorder %v315_v20, 0.0  ;;  %v347_v25 = vmul.f32 0.2, %v315_v20  ;;  %v321_v27 = vld [vmem:[#allocation2 + $0x60] sm:$0xff]  ;;  %v496_v28 = vpack.c.bf16 %v358_v24, %v358_v24  ;;  %v286_v48 = vadd.f32 %v688_v62, %v68_v39 }
 0x107   :  { %441 = vst.msk [vmem:[%s764_s3 + $0xc] sm:$0xf] %vm437_vm4, %v498_v17  ;;  %v366_v29 = vsel %vm334_vm10, %v318_v7, %v350_v19  ;;  %vm339_vm12 = vcmp.gt.f32.partialorder %v323_v21, 0.0  ;;  %v355_v30 = vmul.f32 0.2, %v323_v21  ;;  %vm329_vm13 = vcmp.gt.f32.partialorder %v313_v26, 0.0 }
 0x108   :  { %295 = vst.msk [vmem:[#allocation2 + $0x28] sm:$0xff] %vm38_vm1, %v278_v22  ;;  %v504_v31 = vpack.c.bf16 %v366_v29, %v366_v29  ;;  %v363_v32 = vsel %vm331_vm11, %v315_v20, %v347_v25  ;;  %v345_v33 = vmul.f32 0.2, %v313_v26  ;;  %v316_v34 = vld [vmem:[#allocation2 + $0x38] sm:$0xff]  ;;  %vm337_vm14 = vcmp.gt.f32.partialorder %v321_v27, 0.0  ;;  %303 = vst.msk [vmem:[#allocation2 + $0x68] sm:$0xff] %vm38_vm1, %v286_v48 }
 0x109   :  { %449 = vst.msk [vmem:[%s764_s3 + $0x2c] sm:$0xf] %vm437_vm4, %v506_v23  ;;  %v324_v35 = vld [vmem:[#allocation2 + $0x78] sm:$0xff]  ;;  %439 = vst.msk [vmem:[%s764_s3 + $0x4] sm:$0xf] %vm437_vm4, %v496_v28  ;;  %v501_v36 = vpack.c.bf16 %v363_v32, %v363_v32  ;;  %v371_v37 = vsel %vm339_vm12, %v323_v21, %v355_v30  ;;  %vm332_vm15 = vcmp.gt.f32.partialorder %v316_v34, 0.0 }
 0x10a   :  { %v353_v38 = vmul.f32 0.2, %v321_v27  ;;  %447 = vst.msk [vmem:[%s764_s3 + $0x24] sm:$0xf] %vm437_vm4, %v504_v31  ;;  %v509_v40 = vpack.c.bf16 %v371_v37, %v371_v37  ;;  %v361_v41 = vsel %vm329_vm13, %v313_v26, %v345_v33  ;;  %v348_v42 = vmul.f32 0.2, %v316_v34 }
 0x10b   :  { %444 = vst.msk [vmem:[%s764_s3 + $0x18] sm:$0xf] %vm437_vm4, %v501_v36  ;;  %v499_v43 = vpack.c.bf16 %v361_v41, %v361_v41  ;;  %vm340_vm0 = vcmp.gt.f32.partialorder %v324_v35, 0.0  ;;  %v356_v45 = vmul.f32 0.2, %v324_v35 }
 0x10c   :  { %v369_v44 = vsel %vm337_vm14, %v321_v27, %v353_v38  ;;  %452 = vst.msk [vmem:[%s764_s3 + $0x38] sm:$0xf] %vm437_vm4, %v509_v40  ;;  %v364_v47 = vsel %vm332_vm15, %v316_v34, %v348_v42 }
 0x10d   :  { %v507_v46 = vpack.c.bf16 %v369_v44, %v369_v44  ;;  %442 = vst.msk [vmem:[%s764_s3 + $0x10] sm:$0xf] %vm437_vm4, %v499_v43  ;;  %v502_v49 = vpack.c.bf16 %v364_v47, %v364_v47  ;;  %v372_v50 = vsel %vm340_vm0, %v324_v35, %v356_v45 }
 0x10e   :  { %v510_v51 = vpack.c.bf16 %v372_v50, %v372_v50 }
 0x10f   :  { %450 = vst.msk [vmem:[%s764_s3 + $0x30] sm:$0xf] %vm437_vm4, %v507_v46  ;;  %v314_v52 = vld [vmem:[#allocation2 + $0x28] sm:$0xff]  ;;  %445 = vst.msk [vmem:[%s764_s3 + $0x1c] sm:$0xf] %vm437_vm4, %v502_v49 }
 0x110   :  { %vm330_vm2 = vcmp.gt.f32.partialorder %v314_v52, 0.0  ;;  %v346_v53 = vmul.f32 0.2, %v314_v52  ;;  %453 = vst.msk [vmem:[%s764_s3 + $0x3c] sm:$0xf] %vm437_vm4, %v510_v51  ;;  %v322_v56 = vld [vmem:[#allocation2 + $0x68] sm:$0xff] }
 0x111   :  { %vm338_vm1 = vcmp.gt.f32.partialorder %v322_v56, 0.0  ;;  %v354_v57 = vmul.f32 0.2, %v322_v56 }
 0x112   :  { %v362_v54 = vsel %vm330_vm2, %v314_v52, %v346_v53 }
 0x113   :  { %v500_v55 = vpack.c.bf16 %v362_v54, %v362_v54  ;;  %v370_v58 = vsel %vm338_vm1, %v322_v56, %v354_v57 }
 0x114   :  { %v508_v59 = vpack.c.bf16 %v370_v58, %v370_v58 }
 0x115   :  { %443 = vst.msk [vmem:[%s764_s3 + $0x14] sm:$0xf] %vm437_vm4, %v500_v55 }
 0x116   :  { %451 = vst.msk [vmem:[%s764_s3 + $0x34] sm:$0xf] %vm437_vm4, %v508_v59 }
 0x117   :  { %458 = vsyncpa [#allocation4], 1 }

// kernel: discriminator_forward.6
= control target key start
LH: loop header
LB: loop body
LE: loop exit
PB: predicated region body
PF: predicated region fallthrough
CT: control target
= control target key end

     0   :  { %8 = vsyncpa [#allocation4], 0  ;;  %s1203_s12 = smov [#allocation3]   ;;  %s1482_s0 = inlined_call_operand.vmem [shape: bf16[32,1024], index: 0, kind: input, shape index: {}]   ;;  %s1483_s1 = inlined_call_operand.vmem [shape: bf16[1024,128], index: 1, kind: input, shape index: {}]   ;;  %s1484_s2 = inlined_call_operand.hbm [shape: f32[1,128], index: 2, kind: input, shape index: {}]   ;;  %s1485_s3 = inlined_call_operand.vmem [shape: bf16[32,128], index: 3, kind: output, shape index: {}]  }
   0x1   :  { %s19_s13 = sshll.u32 %s1203_s12, 4  ;;  %s1179_s16 = scalar_lea.hbm %s1484_s2, 16  ;;  %s20_s13 = int_to_ptr.vmem [resolvable:$true] %s19_s13 }
   0x2   :  { %p1180_p0 = scmp.ne.s32.totalorder %s1484_s2, %s1179_s16  ;;  %p1183_p1 = scmp.lt.u32.totalorder %s1179_s16, %s1484_s2 }
   0x4   :  { %p1185_p2 = pnand %p1183_p1, %p1180_p0 }
   0x6   :  { %1188 = shalt.err (!%p1185_p2)
}
   0x7   :  { %s1189_s21 = scalar_lea.vmem %s20_s13, 16  ;;  %s1193_s22 = scalar_lea.vmem %s20_s13, 32 }
   0x8   :  { %p1190_p3 = scmp.ne.s32.totalorder %s20_s13, %s1189_s21  ;;  %p1194_p4 = scmp.lt.s32.totalorder %s20_s13, %s20_s13 }
   0x9   :  { %p1195_p5 = scmp.lt.s32.totalorder %s1193_s22, %s1189_s21 }
   0xb   :  { %p1196_p6 = por %p1195_p5, %p1194_p4 }
   0xd   :  { %p1197_p7 = pnand %p1196_p6, %p1190_p3 }
   0xf   :  { %1200 = shalt.err (!%p1197_p7)
}
  0x10   :  { %22 = dma.hbm_to_vmem [thread:$0]  %s1484_s2, 16, %s20_s13, [#allocation4]  }
  0x11   :  { %1201 = dma.done.wait [#allocation4], 16  }
  0x12   :  { %1202 = vsyncadd [#allocation4], 4294967280  ;;  %v1115_v0 = vld [vmem:[%s1483_s1 + $0x40] sm:$0xff]   ;;  %v1119_v4 = vld [vmem:[%s1483_s1 + $0x48] sm:$0xff]  }
  0x13   :  { %v1116_v1 = vld [vmem:[%s1483_s1 + $0xc0] sm:$0xff]   ;;  %1002 = vmatprep.subr.bf16.mxu0 %v1115_v0  ;;  %v1120_v5 = vld [vmem:[%s1483_s1 + $0xc8] sm:$0xff]   ;;  %v1123_v8 = vld [vmem:[%s1483_s1 + $0x50] sm:$0xff]  }
  0x14   :  { %v1117_v2 = vld [vmem:[%s1483_s1] sm:$0xff]   ;;  %1030 = vmatprep.subr.bf16.mxu1 %v1116_v1  ;;  %v1121_v6 = vld [vmem:[%s1483_s1 + $0x8] sm:$0xff]   ;;  %v1124_v9 = vld [vmem:[%s1483_s1 + $0xd0] sm:$0xff]  }
  0x15   :  { %v1118_v3 = vld [vmem:[%s1483_s1 + $0x80] sm:$0xff]   ;;  %1003 = vmatpush3.bf16.msra.mxu0 %v1117_v2  ;;  %v1122_v7 = vld [vmem:[%s1483_s1 + $0x88] sm:$0xff]   ;;  %v1125_v10 = vld [vmem:[%s1483_s1 + $0x10] sm:$0xff]  }
  0x16   :  { %1031 = vmatpush3.bf16.msra.mxu1 %v1118_v3  ;;  %1004 = vmatprep.subr.bf16.mxu0 %v1119_v4  ;;  %v1126_v11 = vld [vmem:[%s1483_s1 + $0x90] sm:$0xff]   ;;  %v1127_v12 = vld [vmem:[%s1483_s1 + $0x58] sm:$0xff]   ;;  %v1131_v16 = vld [vmem:[%s1483_s1 + $0x60] sm:$0xff]  }
  0x17   :  { %1032 = vmatprep.subr.bf16.mxu1 %v1120_v5  ;;  %v1128_v13 = vld [vmem:[%s1483_s1 + $0xd8] sm:$0xff]   ;;  %v1132_v17 = vld [vmem:[%s1483_s1 + $0xe0] sm:$0xff]   ;;  %v1135_v20 = vld [vmem:[%s1483_s1 + $0x68] sm:$0xff]  }
  0x18   :  { %v1129_v14 = vld [vmem:[%s1483_s1 + $0x18] sm:$0xff]   ;;  %v1133_v18 = vld [vmem:[%s1483_s1 + $0x20] sm:$0xff]   ;;  %v1136_v21 = vld [vmem:[%s1483_s1 + $0xe8] sm:$0xff]  }
  0x19   :  { %1005 = vmatpush3.bf16.msra.mxu0 %v1121_v6  ;;  %v1130_v15 = vld [vmem:[%s1483_s1 + $0x98] sm:$0xff]   ;;  %v1134_v19 = vld [vmem:[%s1483_s1 + $0xa0] sm:$0xff]   ;;  %v1137_v22 = vld [vmem:[%s1483_s1 + $0x28] sm:$0xff]  }
  0x1a   :  { %1033 = vmatpush3.bf16.msra.mxu1 %v1122_v7  ;;  %1006 = vmatprep.subr.bf16.mxu0 %v1123_v8  ;;  %v1138_v23 = vld [vmem:[%s1483_s1 + $0xa8] sm:$0xff]   ;;  %v1139_v24 = vld [vmem:[%s1483_s1 + $0x70] sm:$0xff]   ;;  %v1143_v28 = vld [vmem:[%s1483_s1 + $0x78] sm:$0xff]  }
  0x1b   :  { %1034 = vmatprep.subr.bf16.mxu1 %v1124_v9  ;;  %v1140_v25 = vld [vmem:[%s1483_s1 + $0xf0] sm:$0xff]   ;;  %v1144_v29 = vld [vmem:[%s1483_s1 + $0xf8] sm:$0xff]   ;;  %v46_v32 = vld [vmem:[%s1482_s0] sm:$0xff] }
  0x1c   :  { %v1141_v26 = vld [vmem:[%s1483_s1 + $0x30] sm:$0xff]   ;;  %v1145_v30 = vld [vmem:[%s1483_s1 + $0x38] sm:$0xff]   ;;  %v50_v33 = vld [vmem:[%s1482_s0 + $0x20] sm:$0xff] }
  0x1d   :  { %1007 = vmatpush3.bf16.msra.mxu0 %v1125_v10  ;;  %v1142_v27 = vld [vmem:[%s1483_s1 + $0xb0] sm:$0xff]   ;;  %v1146_v31 = vld [vmem:[%s1483_s1 + $0xb8] sm:$0xff]   ;;  %v47_v34 = vld [vmem:[%s1482_s0 + $0x8] sm:$0xff]  ;;  %v903_v35 = vcombine.low %v46_v32, %v50_v33  ;;  %v904_v36 = vcombine.high %v46_v32, %v50_v33 }
  0x1e   :  { %1035 = vmatpush3.bf16.msra.mxu1 %v1126_v11  ;;  %1008 = vmatprep.subr.bf16.mxu0 %v1127_v12  ;;  %v51_v37 = vld [vmem:[%s1482_s0 + $0x28] sm:$0xff]  ;;  %v1147_v40 = vld [vmem:[%s1483_s1 + $0x140] sm:$0xff]   ;;  %v1155_v48 = vld [vmem:[%s1483_s1 + $0x150] sm:$0xff]  }
  0x1f   :  { %1036 = vmatprep.subr.bf16.mxu1 %v1128_v13  ;;  %v905_v38 = vcombine.low %v47_v34, %v51_v37  ;;  %v906_v39 = vcombine.high %v47_v34, %v51_v37  ;;  %686 = vmatprep.mubr.bf16.mxu0 %v904_v36  ;;  %v1148_v41 = vld [vmem:[%s1483_s1 + $0x1c0] sm:$0xff]   ;;  %v1151_v44 = vld [vmem:[%s1483_s1 + $0x148] sm:$0xff]   ;;  %v1156_v49 = vld [vmem:[%s1483_s1 + $0x1d0] sm:$0xff]  }
  0x20   :  { %v1149_v42 = vld [vmem:[%s1483_s1 + $0x100] sm:$0xff]   ;;  %v1152_v45 = vld [vmem:[%s1483_s1 + $0x1c8] sm:$0xff]   ;;  %v1157_v50 = vld [vmem:[%s1483_s1 + $0x110] sm:$0xff]  }
  0x21   :  { %1009 = vmatpush3.bf16.msra.mxu0 %v1129_v14  ;;  %735 = vmatprep.mubr.bf16.mxu1 %v906_v39  ;;  %v1150_v43 = vld [vmem:[%s1483_s1 + $0x180] sm:$0xff]   ;;  %v1153_v46 = vld [vmem:[%s1483_s1 + $0x108] sm:$0xff]   ;;  %v1158_v51 = vld [vmem:[%s1483_s1 + $0x190] sm:$0xff]  }
  0x22   :  { %1037 = vmatpush3.bf16.msra.mxu1 %v1130_v15  ;;  %1010 = vmatprep.subr.bf16.mxu0 %v1131_v16  ;;  %v1154_v47 = vld [vmem:[%s1483_s1 + $0x188] sm:$0xff]   ;;  %v1159_v52 = vld [vmem:[%s1483_s1 + $0x158] sm:$0xff]   ;;  %v1163_v56 = vld [vmem:[%s1483_s1 + $0x160] sm:$0xff]  }
  0x23   :  { %1038 = vmatprep.subr.bf16.mxu1 %v1132_v17  ;;  %v1160_v53 = vld [vmem:[%s1483_s1 + $0x1d8] sm:$0xff]   ;;  %v1164_v57 = vld [vmem:[%s1483_s1 + $0x1e0] sm:$0xff]   ;;  %v55_v63 = vld [vmem:[%s1482_s0 + $0x48] sm:$0xff] }
  0x24   :  { %v1161_v54 = vld [vmem:[%s1483_s1 + $0x118] sm:$0xff]   ;;  %v1165_v58 = vld [vmem:[%s1483_s1 + $0x120] sm:$0xff]   ;;  %v59_v0 = vld [vmem:[%s1482_s0 + $0x68] sm:$0xff] }
  0x25   :  { %1011 = vmatpush3.bf16.msra.mxu0 %v1133_v18  ;;  %v1162_v55 = vld [vmem:[%s1483_s1 + $0x198] sm:$0xff]   ;;  %v1166_v59 = vld [vmem:[%s1483_s1 + $0x1a0] sm:$0xff]   ;;  %v914_v2 = vcombine.high %v55_v63, %v59_v0  ;;  %v1167_v3 = vld [vmem:[%s1483_s1 + $0x168] sm:$0xff]   ;;  %v913_v4 = vcombine.low %v55_v63, %v59_v0 }
  0x26   :  { %1039 = vmatpush3.bf16.msra.mxu1 %v1134_v19  ;;  %1012 = vmatprep.subr.bf16.mxu0 %v1135_v20  ;;  %v54_v60 = vld [vmem:[%s1482_s0 + $0x40] sm:$0xff]  ;;  %v1168_v5 = vld [vmem:[%s1483_s1 + $0x1e8] sm:$0xff]   ;;  %v1171_v8 = vld [vmem:[%s1483_s1 + $0x170] sm:$0xff]  }
  0x27   :  { %1040 = vmatprep.subr.bf16.mxu1 %v1136_v21  ;;  %v58_v61 = vld [vmem:[%s1482_s0 + $0x60] sm:$0xff]  ;;  %v1169_v6 = vld [vmem:[%s1483_s1 + $0x128] sm:$0xff]   ;;  %v1172_v9 = vld [vmem:[%s1483_s1 + $0x1f0] sm:$0xff]  }
  0x28   :  { %v912_v62 = vcombine.high %v54_v60, %v58_v61  ;;  %v911_v1 = vcombine.low %v54_v60, %v58_v61  ;;  %v1170_v7 = vld [vmem:[%s1483_s1 + $0x1a8] sm:$0xff]   ;;  %v1173_v10 = vld [vmem:[%s1483_s1 + $0x130] sm:$0xff]   ;;  %v1175_v12 = vld [vmem:[%s1483_s1 + $0x178] sm:$0xff]  }
  0x29   :  { %1013 = vmatpush3.bf16.msra.mxu0 %v1137_v22  ;;  %v1174_v11 = vld [vmem:[%s1483_s1 + $0x1b0] sm:$0xff]   ;;  %v1176_v13 = vld [vmem:[%s1483_s1 + $0x1f8] sm:$0xff]  }
  0x2a   :  { %1041 = vmatpush3.bf16.msra.mxu1 %v1138_v23  ;;  %1014 = vmatprep.subr.bf16.mxu0 %v1139_v24  ;;  %v1177_v14 = vld [vmem:[%s1483_s1 + $0x138] sm:$0xff]   ;;  %v48_v16 = vld [vmem:[%s1482_s0 + $0x10] sm:$0xff] }
  0x2b   :  { %1042 = vmatprep.subr.bf16.mxu1 %v1140_v25  ;;  %v1178_v15 = vld [vmem:[%s1483_s1 + $0x1b8] sm:$0xff]   ;;  %v52_v17 = vld [vmem:[%s1482_s0 + $0x30] sm:$0xff] }
  0x2c   :  { %v49_v18 = vld [vmem:[%s1482_s0 + $0x18] sm:$0xff]  ;;  %v907_v20 = vcombine.low %v48_v16, %v52_v17  ;;  %v908_v21 = vcombine.high %v48_v16, %v52_v17  ;;  %v56_v24 = vld [vmem:[%s1482_s0 + $0x50] sm:$0xff] }
  0x2d   :  { %1015 = vmatpush3.bf16.msra.mxu0 %v1141_v26  ;;  %v53_v19 = vld [vmem:[%s1482_s0 + $0x38] sm:$0xff]  ;;  %v60_v25 = vld [vmem:[%s1482_s0 + $0x70] sm:$0xff] }
  0x2e   :  { %1043 = vmatpush3.bf16.msra.mxu1 %v1142_v27  ;;  %1016 = vmatprep.subr.bf16.mxu0 %v1143_v28  ;;  %v909_v22 = vcombine.low %v49_v18, %v53_v19  ;;  %v910_v23 = vcombine.high %v49_v18, %v53_v19  ;;  %v57_v26 = vld [vmem:[%s1482_s0 + $0x58] sm:$0xff]  ;;  %v916_v27 = vcombine.high %v56_v24, %v60_v25 }
  0x2f   :  { %1044 = vmatprep.subr.bf16.mxu1 %v1144_v29  ;;  %v61_v28 = vld [vmem:[%s1482_s0 + $0x78] sm:$0xff] }
  0x30   :  { %v918_v29 = vcombine.high %v57_v26, %v61_v28 }
  0x31   :  { %1017 = vmatpush3.bf16.msra.mxu0 %v1145_v30  ;;  %v915_v30 = vcombine.low %v56_v24, %v60_v25 }
  0x32   :  { %1045 = vmatpush3.bf16.msra.mxu1 %v1146_v31  ;;  %1058 = vmatprep.subr.bf16.mxu0 %v1147_v40  ;;  %v917_v31 = vcombine.low %v57_v26, %v61_v28 }
  0x33   :  { %1086 = vmatprep.subr.bf16.mxu1 %v1148_v41 }
  0x34   :  { %687 = vmatmul.mubr.bf16.vlgmr.msra.gmra.mrb[0].mxu0 %v903_v35 }
  0x35   :  { %736 = vmatmul.mubr.bf16.vlgmr.msra.gmra.mrb[0].mxu1 %v905_v38  ;;  %1059 = vmatpush3.bf16.msra.mxu0 %v1149_v42 }
  0x36   :  { %1087 = vmatpush3.bf16.msra.mxu1 %v1150_v43  ;;  %1060 = vmatprep.subr.bf16.mxu0 %v1151_v44 }
  0x37   :  { %1088 = vmatprep.subr.bf16.mxu1 %v1152_v45  ;;  %694 = vmatprep.mubr.bf16.mxu0 %v912_v62 }
  0x38   :  { %743 = vmatprep.mubr.bf16.mxu1 %v914_v2 }
  0x39   :  { %1061 = vmatpush3.bf16.msra.mxu0 %v1153_v46 }
  0x3a   :  { %1089 = vmatpush3.bf16.msra.mxu1 %v1154_v47  ;;  %1062 = vmatprep.subr.bf16.mxu0 %v1155_v48 }
  0x3b   :  { %1090 = vmatprep.subr.bf16.mxu1 %v1156_v49 }
  0x3c   :  { %695 = vmatmul.mubr.bf16.gmra.mrb[4].mxu0 %v911_v1 }
  0x3d   :  { %1063 = vmatpush3.bf16.msra.mxu0 %v1157_v50  ;;  %744 = vmatmul.mubr.bf16.gmra.mrb[4].mxu1 %v913_v4 }
  0x3e   :  { %1091 = vmatpush3.bf16.msra.mxu1 %v1158_v51  ;;  %1064 = vmatprep.subr.bf16.mxu0 %v1159_v52 }
  0x3f   :  { %1092 = vmatprep.subr.bf16.mxu1 %v1160_v53  ;;  %784 = vmatprep.mubr.bf16.mxu0 %v908_v21 }
  0x40   :  { %833 = vmatprep.mubr.bf16.mxu1 %v910_v23 }
  0x41   :  { %1065 = vmatpush3.bf16.msra.mxu0 %v1161_v54 }
  0x42   :  { %1093 = vmatpush3.bf16.msra.mxu1 %v1162_v55  ;;  %1066 = vmatprep.subr.bf16.mxu0 %v1163_v56 }
  0x43   :  { %1094 = vmatprep.subr.bf16.mxu1 %v1164_v57 }
  0x45   :  { %1067 = vmatpush3.bf16.msra.mxu0 %v1165_v58 }
  0x46   :  { %1095 = vmatpush3.bf16.msra.mxu1 %v1166_v59  ;;  %1068 = vmatprep.subr.bf16.mxu0 %v1167_v3 }
  0x47   :  { %1096 = vmatprep.subr.bf16.mxu1 %v1168_v5 }
  0x49   :  { %1069 = vmatpush3.bf16.msra.mxu0 %v1169_v6 }
  0x4a   :  { %1097 = vmatpush3.bf16.msra.mxu1 %v1170_v7  ;;  %1070 = vmatprep.subr.bf16.mxu0 %v1171_v8 }
  0x4b   :  { %1098 = vmatprep.subr.bf16.mxu1 %v1172_v9  ;;  %v902_v9 = vld [vmem:[#allocation3] ss:$0 sm:$0xff] }
  0x4d   :  { %1071 = vmatpush3.bf16.msra.mxu0 %v1173_v10 }
  0x4e   :  { %1099 = vmatpush3.bf16.msra.mxu1 %v1174_v11  ;;  %1072 = vmatprep.subr.bf16.mxu0 %v1175_v12 }
  0x4f   :  { %1100 = vmatprep.subr.bf16.mxu1 %v1176_v13 }
  0x51   :  { %1073 = vmatpush3.bf16.msra.mxu0 %v1177_v14 }
  0x52   :  { %1101 = vmatpush3.bf16.msra.mxu1 %v1178_v15 }
  0x54   :  { %785 = vmatmul.mubr.bf16.vlgmr.msra.gmra.mrb[8].mxu0 %v907_v20 }
  0x55   :  { %834 = vmatmul.mubr.bf16.vlgmr.msra.gmra.mrb[8].mxu1 %v909_v22  ;;  %792 = vmatprep.mubr.bf16.mxu0 %v916_v27 }
  0x56   :  { %841 = vmatprep.mubr.bf16.mxu1 %v918_v29 }
  0x5c   :  { %793 = vmatmul.mubr.bf16.gmra.mrb[12].mxu0 %v915_v30 }
  0x5d   :  { %842 = vmatmul.mubr.bf16.gmra.mrb[12].mxu1 %v917_v31 }
 0x107   :  { %v1018_v32 = vpop.f32.mrb[0].mxu0 }
 0x108   :  { %v1046_v33 = vpop.f32.mrb[0].mxu1  ;;  %v1019_v34 = vpop.f32.mrb[1].mxu0 }
 0x109   :  { %v1020_v35 = vadd.f32 %v1019_v34, %v1018_v32  ;;  %v1047_v36 = vpop.f32.mrb[1].mxu1  ;;  %v1021_v37 = vpop.f32.mrb[2].mxu0 }
 0x10a   :  { %v1048_v38 = vadd.f32 %v1047_v36, %v1046_v33  ;;  %v1049_v39 = vpop.f32.mrb[2].mxu1  ;;  %v1022_v40 = vpop.f32.mrb[3].mxu0 }
 0x10b   :  { %v1023_v41 = vadd.f32 %v1022_v40, %v1021_v37  ;;  %v1050_v42 = vpop.f32.mrb[3].mxu1 }
 0x10c   :  { %v738_v43 = vadd.f32 %v1048_v38, %v1020_v35  ;;  %v1051_v44 = vadd.f32 %v1050_v42, %v1049_v39 }
 0x10e   :  { %v741_v45 = vadd.f32 %v1051_v44, %v1023_v41 }
 0x10f   :  { %v1024_v46 = vpop.f32.mrb[4].mxu0 }
 0x110   :  { %v1052_v47 = vpop.f32.mrb[4].mxu1  ;;  %v1025_v48 = vpop.f32.mrb[5].mxu0 }
 0x111   :  { %v1026_v49 = vadd.f32 %v1025_v48, %v1024_v46  ;;  %v1053_v50 = vpop.f32.mrb[5].mxu1  ;;  %v1027_v51 = vpop.f32.mrb[6].mxu0 }
 0x112   :  { %v1054_v52 = vadd.f32 %v1053_v50, %v1052_v47  ;;  %v1055_v53 = vpop.f32.mrb[6].mxu1  ;;  %v1028_v54 = vpop.f32.mrb[7].mxu0 }
 0x113   :  { %v1029_v55 = vadd.f32 %v1028_v54, %v1027_v51  ;;  %v1056_v56 = vpop.f32.mrb[7].mxu1 }
 0x114   :  { %v746_v57 = vadd.f32 %v1054_v52, %v1026_v49  ;;  %v1057_v58 = vadd.f32 %v1056_v56, %v1055_v53 }
 0x116   :  { %v749_v59 = vadd.f32 %v1057_v58, %v1029_v55 }
 0x127   :  { %v1074_v60 = vpop.f32.mrb[8].mxu0 }
 0x128   :  { %v1102_v61 = vpop.f32.mrb[8].mxu1  ;;  %v1075_v62 = vpop.f32.mrb[9].mxu0 }
 0x129   :  { %v1103_v63 = vpop.f32.mrb[9].mxu1  ;;  %v1076_v0 = vadd.f32 %v1075_v62, %v1074_v60  ;;  %v1077_v2 = vpop.f32.mrb[10].mxu0 }
 0x12a   :  { %v1104_v1 = vadd.f32 %v1103_v63, %v1102_v61  ;;  %v1105_v3 = vpop.f32.mrb[10].mxu1  ;;  %v1078_v4 = vpop.f32.mrb[11].mxu0 }
 0x12b   :  { %v1106_v5 = vpop.f32.mrb[11].mxu1  ;;  %v787_v6 = vadd.f32 %v1076_v0, %v738_v43  ;;  %v1079_v7 = vadd.f32 %v1078_v4, %v1077_v2 }
 0x12c   :  { %v1107_v8 = vadd.f32 %v1106_v5, %v1105_v3 }
 0x12d   :  { %v836_v10 = vadd.f32 %v1104_v1, %v787_v6  ;;  %v790_v11 = vadd.f32 %v1079_v7, %v741_v45 }
 0x12f   :  { %v850_v12 = vadd.f32 %v902_v9, %v836_v10  ;;  %v839_v13 = vadd.f32 %v1107_v8, %v790_v11  ;;  %v1080_v14 = vpop.f32.mrb[12].mxu0 }
 0x130   :  { %v1108_v15 = vpop.f32.mrb[12].mxu1  ;;  %v1081_v16 = vpop.f32.mrb[13].mxu0 }
 0x131   :  { %v1109_v17 = vpop.f32.mrb[13].mxu1  ;;  %v869_v18 = vmul.f32 0.2, %v850_v12  ;;  %v851_v19 = vadd.f32 %v902_v9, %v839_v13  ;;  %v1082_v20 = vadd.f32 %v1081_v16, %v1080_v14  ;;  %v1083_v21 = vpop.f32.mrb[14].mxu0  ;;  %vm865_vm0 = vcmp.gt.f32.partialorder %v850_v12, 0.0 }
 0x132   :  { %v1111_v22 = vpop.f32.mrb[14].mxu1  ;;  %v1110_v23 = vadd.f32 %v1109_v17, %v1108_v15  ;;  %v1084_v24 = vpop.f32.mrb[15].mxu0 }
 0x133   :  { %v1112_v25 = vpop.f32.mrb[15].mxu1  ;;  %vm866_vm1 = vcmp.gt.f32.partialorder %v851_v19, 0.0  ;;  %v870_v26 = vmul.f32 0.2, %v851_v19  ;;  %v795_v27 = vadd.f32 %v1082_v20, %v746_v57  ;;  %v1085_v28 = vadd.f32 %v1084_v24, %v1083_v21 }
 0x134   :  { %v1113_v29 = vadd.f32 %v1112_v25, %v1111_v22  ;;  %v873_v30 = vsel %vm865_vm0, %v850_v12, %v869_v18 }
 0x135   :  { %v874_v31 = vsel %vm866_vm1, %v851_v19, %v870_v26  ;;  %v844_v32 = vadd.f32 %v1110_v23, %v795_v27  ;;  %v798_v34 = vadd.f32 %v1085_v28, %v749_v59 }
 0x136   :  { %v994_v33 = vpack.c.bf16 %v874_v31, %v873_v30 }
 0x137   :  { %v852_v35 = vadd.f32 %v902_v9, %v844_v32  ;;  %v847_v36 = vadd.f32 %v1113_v29, %v798_v34 }
 0x138   :  { %995 = vst [vmem:[%s1485_s3] sm:$0xff] %v994_v33  }
 0x139   :  { %v871_v37 = vmul.f32 0.2, %v852_v35  ;;  %v853_v38 = vadd.f32 %v902_v9, %v847_v36  ;;  %vm867_vm2 = vcmp.gt.f32.partialorder %v852_v35, 0.0 }
 0x13b   :  { %vm868_vm3 = vcmp.gt.f32.partialorder %v853_v38, 0.0  ;;  %v872_v39 = vmul.f32 0.2, %v853_v38  ;;  %v875_v40 = vsel %vm867_vm2, %v852_v35, %v871_v37 }
 0x13d   :  { %v876_v41 = vsel %vm868_vm3, %v853_v38, %v872_v39 }
 0x13e   :  { %v999_v42 = vpack.c.bf16 %v876_v41, %v875_v40 }
 0x140   :  { %1001 = vst [vmem:[%s1485_s3 + $0x8] sm:$0xff] %v999_v42  }
 0x141   :  { %901 = vsyncpa [#allocation4], 1 }

// kernel: discriminator_forward.7
= control target key start
LH: loop header
LB: loop body
LE: loop exit
PB: predicated region body
PF: predicated region fallthrough
CT: control target
= control target key end

     0   :  { %s3640_s1 = inlined_call_operand.vmem [shape: bf16[2048,256], index: 1, kind: input, shape index: {}]   ;;  %s3641_s0 = inlined_call_operand.vmem [shape: bf16[16,2048], index: 0, kind: input, shape index: {}]   ;;  %s3642_s2 = inlined_call_operand.vmem [shape: f32[1,256], index: 2, kind: input, shape index: {}]   ;;  %s3643_s3 = inlined_call_operand.vmem [shape: bf16[16,256], index: 3, kind: output, shape index: {}]  }
   0x1   :  { %v2363_v0 = vld [vmem:[%s3640_s1 + $0x4] ss:$8 sps:$4 sm:$0xff]   ;;  %v2367_v2 = vld [vmem:[%s3640_s1] ss:$8 sps:$4 sm:$0xff]   ;;  %v2369_v4 = vld [vmem:[%s3640_s1 + $0x14] ss:$8 sps:$4 sm:$0xff]  }
   0x2   :  { %v2365_v1 = vld [vmem:[%s3640_s1 + $0x404] ss:$8 sps:$4 sm:$0xff]   ;;  %1670 = vmatprep.subr.bf16.mxu1 %v2363_v0  ;;  %v2368_v3 = vld [vmem:[%s3640_s1 + $0x400] ss:$8 sps:$4 sm:$0xff]   ;;  %v2371_v5 = vld [vmem:[%s3640_s1 + $0x414] ss:$8 sps:$4 sm:$0xff]  }
   0x3   :  { %1842 = vmatprep.subr.bf16.mxu0 %v2365_v1  ;;  %1671 = vmatpush1.bf16.msra.mxu1 %v2367_v2  ;;  %v2373_v6 = vld [vmem:[%s3640_s1 + $0x10] ss:$8 sps:$4 sm:$0xff]   ;;  %v2375_v8 = vld [vmem:[%s3640_s1 + $0x24] ss:$8 sps:$4 sm:$0xff]   ;;  %v2379_v10 = vld [vmem:[%s3640_s1 + $0x20] ss:$8 sps:$4 sm:$0xff]  }
   0x4   :  { %1843 = vmatpush1.bf16.msra.mxu0 %v2368_v3  ;;  %1672 = vmatprep.subr.bf16.mxu1 %v2369_v4  ;;  %v2374_v7 = vld [vmem:[%s3640_s1 + $0x410] ss:$8 sps:$4 sm:$0xff]   ;;  %v2377_v9 = vld [vmem:[%s3640_s1 + $0x424] ss:$8 sps:$4 sm:$0xff]   ;;  %v2380_v11 = vld [vmem:[%s3640_s1 + $0x420] ss:$8 sps:$4 sm:$0xff]  }
   0x5   :  { %1844 = vmatprep.subr.bf16.mxu0 %v2371_v5  ;;  %v2381_v12 = vld [vmem:[%s3640_s1 + $0x34] ss:$8 sps:$4 sm:$0xff]   ;;  %v2385_v14 = vld [vmem:[%s3640_s1 + $0x30] ss:$8 sps:$4 sm:$0xff]   ;;  %v2387_v16 = vld [vmem:[%s3640_s1 + $0x44] ss:$8 sps:$4 sm:$0xff]  }
   0x6   :  { %v2383_v13 = vld [vmem:[%s3640_s1 + $0x434] ss:$8 sps:$4 sm:$0xff]   ;;  %v2386_v15 = vld [vmem:[%s3640_s1 + $0x430] ss:$8 sps:$4 sm:$0xff]   ;;  %v2389_v17 = vld [vmem:[%s3640_s1 + $0x444] ss:$8 sps:$4 sm:$0xff]  }
   0x7   :  { %1673 = vmatpush1.bf16.msra.mxu1 %v2373_v6  ;;  %v2391_v18 = vld [vmem:[%s3640_s1 + $0x40] ss:$8 sps:$4 sm:$0xff]   ;;  %v2393_v20 = vld [vmem:[%s3640_s1 + $0x54] ss:$8 sps:$4 sm:$0xff]   ;;  %v2397_v22 = vld [vmem:[%s3640_s1 + $0x50] ss:$8 sps:$4 sm:$0xff]  }
   0x8   :  { %1845 = vmatpush1.bf16.msra.mxu0 %v2374_v7  ;;  %1674 = vmatprep.subr.bf16.mxu1 %v2375_v8  ;;  %v2392_v19 = vld [vmem:[%s3640_s1 + $0x440] ss:$8 sps:$4 sm:$0xff]   ;;  %v2395_v21 = vld [vmem:[%s3640_s1 + $0x454] ss:$8 sps:$4 sm:$0xff]   ;;  %v2398_v23 = vld [vmem:[%s3640_s1 + $0x450] ss:$8 sps:$4 sm:$0xff]  }
   0x9   :  { %1846 = vmatprep.subr.bf16.mxu0 %v2377_v9  ;;  %v2399_v24 = vld [vmem:[%s3640_s1 + $0x64] ss:$8 sps:$4 sm:$0xff]   ;;  %v2403_v26 = vld [vmem:[%s3640_s1 + $0x60] ss:$8 sps:$4 sm:$0xff]   ;;  %v2405_v28 = vld [vmem:[%s3640_s1 + $0x74] ss:$8 sps:$4 sm:$0xff]  }
   0xa   :  { %v2401_v25 = vld [vmem:[%s3640_s1 + $0x464] ss:$8 sps:$4 sm:$0xff]   ;;  %v2404_v27 = vld [vmem:[%s3640_s1 + $0x460] ss:$8 sps:$4 sm:$0xff]   ;;  %v2407_v29 = vld [vmem:[%s3640_s1 + $0x474] ss:$8 sps:$4 sm:$0xff]  }
   0xb   :  { %1675 = vmatpush1.bf16.msra.mxu1 %v2379_v10  ;;  %v2409_v30 = vld [vmem:[%s3640_s1 + $0x70] ss:$8 sps:$4 sm:$0xff]   ;;  %v2411_v32 = vld [vmem:[%s3640_s1 + $0x84] ss:$8 sps:$4 sm:$0xff]   ;;  %v2415_v34 = vld [vmem:[%s3640_s1 + $0x80] ss:$8 sps:$4 sm:$0xff]  }
   0xc   :  { %1847 = vmatpush1.bf16.msra.mxu0 %v2380_v11  ;;  %1676 = vmatprep.subr.bf16.mxu1 %v2381_v12  ;;  %v2410_v31 = vld [vmem:[%s3640_s1 + $0x470] ss:$8 sps:$4 sm:$0xff]   ;;  %v2413_v33 = vld [vmem:[%s3640_s1 + $0x484] ss:$8 sps:$4 sm:$0xff]   ;;  %v2416_v35 = vld [vmem:[%s3640_s1 + $0x480] ss:$8 sps:$4 sm:$0xff]  }
   0xd   :  { %1848 = vmatprep.subr.bf16.mxu0 %v2383_v13  ;;  %v2417_v36 = vld [vmem:[%s3640_s1 + $0x94] ss:$8 sps:$4 sm:$0xff]   ;;  %v2421_v38 = vld [vmem:[%s3640_s1 + $0x90] ss:$8 sps:$4 sm:$0xff]   ;;  %v2423_v40 = vld [vmem:[%s3640_s1 + $0xa4] ss:$8 sps:$4 sm:$0xff]  }
   0xe   :  { %v2419_v37 = vld [vmem:[%s3640_s1 + $0x494] ss:$8 sps:$4 sm:$0xff]   ;;  %v2422_v39 = vld [vmem:[%s3640_s1 + $0x490] ss:$8 sps:$4 sm:$0xff]   ;;  %v2425_v41 = vld [vmem:[%s3640_s1 + $0x4a4] ss:$8 sps:$4 sm:$0xff]  }
   0xf   :  { %1677 = vmatpush1.bf16.msra.mxu1 %v2385_v14  ;;  %v2427_v42 = vld [vmem:[%s3640_s1 + $0xa0] ss:$8 sps:$4 sm:$0xff]   ;;  %v2429_v44 = vld [vmem:[%s3640_s1 + $0xb4] ss:$8 sps:$4 sm:$0xff]   ;;  %v2433_v46 = vld [vmem:[%s3640_s1 + $0xb0] ss:$8 sps:$4 sm:$0xff]  }
  0x10   :  { %1849 = vmatpush1.bf16.msra.mxu0 %v2386_v15  ;;  %1678 = vmatprep.subr.bf16.mxu1 %v2387_v16  ;;  %v2428_v43 = vld [vmem:[%s3640_s1 + $0x4a0] ss:$8 sps:$4 sm:$0xff]   ;;  %v2431_v45 = vld [vmem:[%s3640_s1 + $0x4b4] ss:$8 sps:$4 sm:$0xff]   ;;  %v2434_v47 = vld [vmem:[%s3640_s1 + $0x4b0] ss:$8 sps:$4 sm:$0xff]  }
  0x11   :  { %1850 = vmatprep.subr.bf16.mxu0 %v2389_v17  ;;  %v38_v48 = vld [vmem:[%s3641_s0] sm:$0xff]  ;;  %v2441_v58 = vld [vmem:[%s3640_s1 + $0xd4] ss:$8 sps:$4 sm:$0xff]   ;;  %v2445_v60 = vld [vmem:[%s3640_s1 + $0xd0] ss:$8 sps:$4 sm:$0xff]  }
  0x12   :  { %v46_v49 = vld [vmem:[%s3641_s0 + $0x40] sm:$0xff]  ;;  %v2443_v59 = vld [vmem:[%s3640_s1 + $0x4d4] ss:$8 sps:$4 sm:$0xff]   ;;  %v2446_v61 = vld [vmem:[%s3640_s1 + $0x4d0] ss:$8 sps:$4 sm:$0xff]  }
  0x13   :  { %1679 = vmatpush1.bf16.msra.mxu1 %v2391_v18  ;;  %v2435_v50 = vld [vmem:[%s3640_s1 + $0xc4] ss:$8 sps:$4 sm:$0xff]   ;;  %v2060_v52 = vcombine.high %v38_v48, %v46_v49  ;;  %v2439_v56 = vld [vmem:[%s3640_s1 + $0xc0] ss:$8 sps:$4 sm:$0xff]   ;;  %v2453_v2 = vld [vmem:[%s3640_s1 + $0xf4] ss:$8 sps:$4 sm:$0xff]   ;;  %v2059_v8 = vcombine.low %v38_v48, %v46_v49 }
  0x14   :  { %1851 = vmatpush1.bf16.msra.mxu0 %v2392_v19  ;;  %1680 = vmatprep.subr.bf16.mxu1 %v2393_v20  ;;  %v2437_v51 = vld [vmem:[%s3640_s1 + $0x4c4] ss:$8 sps:$4 sm:$0xff]   ;;  %v2440_v57 = vld [vmem:[%s3640_s1 + $0x4c0] ss:$8 sps:$4 sm:$0xff]   ;;  %v2455_v3 = vld [vmem:[%s3640_s1 + $0x4f4] ss:$8 sps:$4 sm:$0xff]  }
  0x15   :  { %1852 = vmatprep.subr.bf16.mxu0 %v2395_v21  ;;  %v42_v53 = vld [vmem:[%s3641_s0 + $0x20] sm:$0xff]  ;;  %1702 = vmatprep.mubr.bf16.mxu1 %v2060_v52  ;;  %v2457_v4 = vld [vmem:[%s3640_s1 + $0xf0] ss:$8 sps:$4 sm:$0xff]   ;;  %v2467_v12 = vld [vmem:[%s3640_s1 + $0x114] ss:$8 sps:$4 sm:$0xff]  }
  0x16   :  { %v50_v54 = vld [vmem:[%s3641_s0 + $0x60] sm:$0xff]  ;;  %v2458_v5 = vld [vmem:[%s3640_s1 + $0x4f0] ss:$8 sps:$4 sm:$0xff]   ;;  %v2470_v13 = vld [vmem:[%s3640_s1 + $0x514] ss:$8 sps:$4 sm:$0xff]  }
  0x17   :  { %1681 = vmatpush1.bf16.msra.mxu1 %v2397_v22  ;;  %v2068_v55 = vcombine.high %v42_v53, %v50_v54  ;;  %v2447_v62 = vld [vmem:[%s3640_s1 + $0xe4] ss:$8 sps:$4 sm:$0xff]   ;;  %v2451_v0 = vld [vmem:[%s3640_s1 + $0xe0] ss:$8 sps:$4 sm:$0xff]   ;;  %v2067_v10 = vcombine.low %v42_v53, %v50_v54  ;;  %v2465_v14 = vld [vmem:[%s3640_s1 + $0x110] ss:$8 sps:$4 sm:$0xff]  }
  0x18   :  { %1853 = vmatpush1.bf16.msra.mxu0 %v2398_v23  ;;  %1682 = vmatprep.subr.bf16.mxu1 %v2399_v24  ;;  %v2449_v63 = vld [vmem:[%s3640_s1 + $0x4e4] ss:$8 sps:$4 sm:$0xff]   ;;  %v2452_v1 = vld [vmem:[%s3640_s1 + $0x4e0] ss:$8 sps:$4 sm:$0xff]   ;;  %v2468_v15 = vld [vmem:[%s3640_s1 + $0x510] ss:$8 sps:$4 sm:$0xff]  }
  0x19   :  { %1854 = vmatprep.subr.bf16.mxu0 %v2401_v25  ;;  %1874 = vmatprep.mubr.bf16.mxu0 %v2068_v55  ;;  %v2461_v6 = vld [vmem:[%s3640_s1 + $0x104] ss:$8 sps:$4 sm:$0xff]   ;;  %v2459_v9 = vld [vmem:[%s3640_s1 + $0x100] ss:$8 sps:$4 sm:$0xff]   ;;  %v2479_v20 = vld [vmem:[%s3640_s1 + $0x134] ss:$8 sps:$4 sm:$0xff]  }
  0x1a   :  { %v2464_v7 = vld [vmem:[%s3640_s1 + $0x504] ss:$8 sps:$4 sm:$0xff]   ;;  %v2462_v11 = vld [vmem:[%s3640_s1 + $0x500] ss:$8 sps:$4 sm:$0xff]   ;;  %v2482_v21 = vld [vmem:[%s3640_s1 + $0x534] ss:$8 sps:$4 sm:$0xff]  }
  0x1b   :  { %1683 = vmatpush1.bf16.msra.mxu1 %v2403_v26  ;;  %v2473_v16 = vld [vmem:[%s3640_s1 + $0x124] ss:$8 sps:$4 sm:$0xff]   ;;  %v2471_v18 = vld [vmem:[%s3640_s1 + $0x120] ss:$8 sps:$4 sm:$0xff]   ;;  %v2477_v22 = vld [vmem:[%s3640_s1 + $0x130] ss:$8 sps:$4 sm:$0xff]  }
  0x1c   :  { %1855 = vmatpush1.bf16.msra.mxu0 %v2404_v27  ;;  %1684 = vmatprep.subr.bf16.mxu1 %v2405_v28  ;;  %v2476_v17 = vld [vmem:[%s3640_s1 + $0x524] ss:$8 sps:$4 sm:$0xff]   ;;  %v2474_v19 = vld [vmem:[%s3640_s1 + $0x520] ss:$8 sps:$4 sm:$0xff]   ;;  %v2480_v23 = vld [vmem:[%s3640_s1 + $0x530] ss:$8 sps:$4 sm:$0xff]  }
  0x1d   :  { %1856 = vmatprep.subr.bf16.mxu0 %v2407_v29  ;;  %v2485_v24 = vld [vmem:[%s3640_s1 + $0x144] ss:$8 sps:$4 sm:$0xff]   ;;  %v2483_v26 = vld [vmem:[%s3640_s1 + $0x140] ss:$8 sps:$4 sm:$0xff]   ;;  %v2491_v28 = vld [vmem:[%s3640_s1 + $0x154] ss:$8 sps:$4 sm:$0xff]  }
  0x1e   :  { %v2488_v25 = vld [vmem:[%s3640_s1 + $0x544] ss:$8 sps:$4 sm:$0xff]   ;;  %v2486_v27 = vld [vmem:[%s3640_s1 + $0x540] ss:$8 sps:$4 sm:$0xff]   ;;  %v2494_v29 = vld [vmem:[%s3640_s1 + $0x554] ss:$8 sps:$4 sm:$0xff]  }
  0x1f   :  { %1685 = vmatpush1.bf16.msra.mxu1 %v2409_v30  ;;  %v2489_v30 = vld [vmem:[%s3640_s1 + $0x150] ss:$8 sps:$4 sm:$0xff]   ;;  %v2507_v48 = vld [vmem:[%s3640_s1 + $0x180] ss:$8 sps:$4 sm:$0xff]   ;;  %v2521_v54 = vld [vmem:[%s3640_s1 + $0x1a4] ss:$8 sps:$4 sm:$0xff]  }
  0x20   :  { %1857 = vmatpush1.bf16.msra.mxu0 %v2410_v31  ;;  %1686 = vmatprep.subr.bf16.mxu1 %v2411_v32  ;;  %v2492_v31 = vld [vmem:[%s3640_s1 + $0x550] ss:$8 sps:$4 sm:$0xff]   ;;  %v2497_v32 = vld [vmem:[%s3640_s1 + $0x164] ss:$8 sps:$4 sm:$0xff]   ;;  %v2510_v49 = vld [vmem:[%s3640_s1 + $0x580] ss:$8 sps:$4 sm:$0xff]  }
  0x21   :  { %1858 = vmatprep.subr.bf16.mxu0 %v2413_v33  ;;  %v2500_v33 = vld [vmem:[%s3640_s1 + $0x564] ss:$8 sps:$4 sm:$0xff]   ;;  %v2513_v52 = vld [vmem:[%s3640_s1 + $0x190] ss:$8 sps:$4 sm:$0xff]  }
  0x22   :  { %v2516_v53 = vld [vmem:[%s3640_s1 + $0x590] ss:$8 sps:$4 sm:$0xff]   ;;  %v2524_v55 = vld [vmem:[%s3640_s1 + $0x5a4] ss:$8 sps:$4 sm:$0xff]  }
  0x23   :  { %1687 = vmatpush1.bf16.msra.mxu1 %v2415_v34  ;;  %v2495_v34 = vld [vmem:[%s3640_s1 + $0x160] ss:$8 sps:$4 sm:$0xff]  }
  0x24   :  { %1859 = vmatpush1.bf16.msra.mxu0 %v2416_v35  ;;  %1688 = vmatprep.subr.bf16.mxu1 %v2417_v36  ;;  %v2498_v35 = vld [vmem:[%s3640_s1 + $0x560] ss:$8 sps:$4 sm:$0xff]  }
  0x25   :  { %1860 = vmatprep.subr.bf16.mxu0 %v2419_v37  ;;  %v3058_v36 = vld [vmem:[%s3641_s0 + $0x8] sm:$0xff] }
  0x26   :  { %v3063_v37 = vld [vmem:[%s3641_s0 + $0x48] sm:$0xff] }
  0x27   :  { %1689 = vmatpush1.bf16.msra.mxu1 %v2421_v38  ;;  %v2503_v38 = vld [vmem:[%s3640_s1 + $0x174] ss:$8 sps:$4 sm:$0xff]  }
  0x28   :  { %1861 = vmatpush1.bf16.msra.mxu0 %v2422_v39  ;;  %1690 = vmatprep.subr.bf16.mxu1 %v2423_v40  ;;  %v2506_v39 = vld [vmem:[%s3640_s1 + $0x574] ss:$8 sps:$4 sm:$0xff]   ;;  %v2062_v40 = vcombine.high %v3058_v36, %v3063_v37 }
  0x29   :  { %1862 = vmatprep.subr.bf16.mxu0 %v2425_v41  ;;  %v3076_v41 = vld [vmem:[%s3641_s0 + $0x28] sm:$0xff] }
  0x2b   :  { %1691 = vmatpush1.bf16.msra.mxu1 %v2427_v42  ;;  %v3081_v42 = vld [vmem:[%s3641_s0 + $0x68] sm:$0xff] }
  0x2c   :  { %1863 = vmatpush1.bf16.msra.mxu0 %v2428_v43  ;;  %1692 = vmatprep.subr.bf16.mxu1 %v2429_v44  ;;  %v2070_v43 = vcombine.high %v3076_v41, %v3081_v42  ;;  %v2501_v44 = vld [vmem:[%s3640_s1 + $0x170] ss:$8 sps:$4 sm:$0xff]  }
  0x2d   :  { %1864 = vmatprep.subr.bf16.mxu0 %v2431_v45  ;;  %v2504_v45 = vld [vmem:[%s3640_s1 + $0x570] ss:$8 sps:$4 sm:$0xff]  }
  0x2f   :  { %1693 = vmatpush1.bf16.msra.mxu1 %v2433_v46  ;;  %v2509_v46 = vld [vmem:[%s3640_s1 + $0x184] ss:$8 sps:$4 sm:$0xff]  }
  0x30   :  { %1865 = vmatpush1.bf16.msra.mxu0 %v2434_v47  ;;  %1694 = vmatprep.subr.bf16.mxu1 %v2435_v50  ;;  %v2512_v47 = vld [vmem:[%s3640_s1 + $0x584] ss:$8 sps:$4 sm:$0xff]   ;;  %v2515_v50 = vld [vmem:[%s3640_s1 + $0x194] ss:$8 sps:$4 sm:$0xff]  }
  0x31   :  { %1866 = vmatprep.subr.bf16.mxu0 %v2437_v51  ;;  %v2518_v51 = vld [vmem:[%s3640_s1 + $0x594] ss:$8 sps:$4 sm:$0xff]  }
  0x33   :  { %1695 = vmatpush1.bf16.msra.mxu1 %v2439_v56  ;;  %v2519_v56 = vld [vmem:[%s3640_s1 + $0x1a0] ss:$8 sps:$4 sm:$0xff]  }
  0x34   :  { %1867 = vmatpush1.bf16.msra.mxu0 %v2440_v57  ;;  %1696 = vmatprep.subr.bf16.mxu1 %v2441_v58  ;;  %v2522_v57 = vld [vmem:[%s3640_s1 + $0x5a0] ss:$8 sps:$4 sm:$0xff]   ;;  %v2527_v58 = vld [vmem:[%s3640_s1 + $0x1b4] ss:$8 sps:$4 sm:$0xff]  }
  0x35   :  { %1868 = vmatprep.subr.bf16.mxu0 %v2443_v59  ;;  %v2530_v59 = vld [vmem:[%s3640_s1 + $0x5b4] ss:$8 sps:$4 sm:$0xff]  }
  0x37   :  { %1697 = vmatpush1.bf16.msra.mxu1 %v2445_v60  ;;  %v2525_v60 = vld [vmem:[%s3640_s1 + $0x1b0] ss:$8 sps:$4 sm:$0xff]  }
  0x38   :  { %1869 = vmatpush1.bf16.msra.mxu0 %v2446_v61  ;;  %1698 = vmatprep.subr.bf16.mxu1 %v2447_v62  ;;  %v2528_v61 = vld [vmem:[%s3640_s1 + $0x5b0] ss:$8 sps:$4 sm:$0xff]   ;;  %v2533_v62 = vld [vmem:[%s3640_s1 + $0x1c4] ss:$8 sps:$4 sm:$0xff]  }
  0x39   :  { %1870 = vmatprep.subr.bf16.mxu0 %v2449_v63  ;;  %v2536_v63 = vld [vmem:[%s3640_s1 + $0x5c4] ss:$8 sps:$4 sm:$0xff]  }
  0x3b   :  { %1699 = vmatpush1.bf16.msra.mxu1 %v2451_v0  ;;  %v2531_v0 = vld [vmem:[%s3640_s1 + $0x1c0] ss:$8 sps:$4 sm:$0xff]  }
  0x3c   :  { %1871 = vmatpush1.bf16.msra.mxu0 %v2452_v1  ;;  %1700 = vmatprep.subr.bf16.mxu1 %v2453_v2  ;;  %v2534_v1 = vld [vmem:[%s3640_s1 + $0x5c0] ss:$8 sps:$4 sm:$0xff]   ;;  %v2539_v2 = vld [vmem:[%s3640_s1 + $0x1d4] ss:$8 sps:$4 sm:$0xff]  }
  0x3d   :  { %1872 = vmatprep.subr.bf16.mxu0 %v2455_v3  ;;  %v2542_v3 = vld [vmem:[%s3640_s1 + $0x5d4] ss:$8 sps:$4 sm:$0xff]  }
  0x3f   :  { %1701 = vmatpush1.bf16.msra.mxu1 %v2457_v4  ;;  %v2537_v4 = vld [vmem:[%s3640_s1 + $0x1d0] ss:$8 sps:$4 sm:$0xff]  }
  0x40   :  { %1873 = vmatpush1.bf16.msra.mxu0 %v2458_v5  ;;  %1713 = vmatprep.subr.bf16.mxu1 %v2461_v6  ;;  %v2540_v5 = vld [vmem:[%s3640_s1 + $0x5d0] ss:$8 sps:$4 sm:$0xff]   ;;  %v2545_v6 = vld [vmem:[%s3640_s1 + $0x1e4] ss:$8 sps:$4 sm:$0xff]  }
  0x41   :  { %1885 = vmatprep.subr.bf16.mxu0 %v2464_v7  ;;  %v2548_v7 = vld [vmem:[%s3640_s1 + $0x5e4] ss:$8 sps:$4 sm:$0xff]  }
  0x42   :  { %1703 = vmatmul.mubr.bf16.vlgmr.msra.gmra.mrb[0].mxu1 %v2059_v8  ;;  %v2543_v8 = vld [vmem:[%s3640_s1 + $0x1e0] ss:$8 sps:$4 sm:$0xff]  }
  0x43   :  { %1875 = vmatmul.mubr.bf16.vlgmr.msra.gmra.mrb[0].mxu0 %v2067_v10  ;;  %1714 = vmatpush1.bf16.msra.mxu1 %v2459_v9  ;;  %v2546_v9 = vld [vmem:[%s3640_s1 + $0x5e0] ss:$8 sps:$4 sm:$0xff]   ;;  %v2551_v10 = vld [vmem:[%s3640_s1 + $0x1f4] ss:$8 sps:$4 sm:$0xff]  }
  0x44   :  { %1886 = vmatpush1.bf16.msra.mxu0 %v2462_v11  ;;  %1715 = vmatprep.subr.bf16.mxu1 %v2467_v12  ;;  %v2554_v11 = vld [vmem:[%s3640_s1 + $0x5f4] ss:$8 sps:$4 sm:$0xff]   ;;  %v2549_v12 = vld [vmem:[%s3640_s1 + $0x1f0] ss:$8 sps:$4 sm:$0xff]  }
  0x45   :  { %1887 = vmatprep.subr.bf16.mxu0 %v2470_v13  ;;  %1745 = vmatprep.mubr.bf16.mxu1 %v2062_v40  ;;  %v2552_v13 = vld [vmem:[%s3640_s1 + $0x5f0] ss:$8 sps:$4 sm:$0xff]   ;;  %v2579_v40 = vld [vmem:[%s3640_s1 + $0x240] ss:$8 sps:$4 sm:$0xff]  }
  0x46   :  { %1917 = vmatprep.mubr.bf16.mxu0 %v2070_v43  ;;  %v2590_v43 = vld [vmem:[%s3640_s1 + $0x654] ss:$8 sps:$4 sm:$0xff]  }
  0x47   :  { %1716 = vmatpush1.bf16.msra.mxu1 %v2465_v14  ;;  %v2557_v14 = vld [vmem:[%s3640_s1 + $0x204] ss:$8 sps:$4 sm:$0xff]  }
  0x48   :  { %1888 = vmatpush1.bf16.msra.mxu0 %v2468_v15  ;;  %1717 = vmatprep.subr.bf16.mxu1 %v2473_v16  ;;  %v2560_v15 = vld [vmem:[%s3640_s1 + $0x604] ss:$8 sps:$4 sm:$0xff]   ;;  %v2061_v16 = vcombine.low %v3058_v36, %v3063_v37  ;;  %v2573_v36 = vld [vmem:[%s3640_s1 + $0x230] ss:$8 sps:$4 sm:$0xff]  }
  0x49   :  { %1889 = vmatprep.subr.bf16.mxu0 %v2476_v17  ;;  %v2555_v17 = vld [vmem:[%s3640_s1 + $0x200] ss:$8 sps:$4 sm:$0xff]   ;;  %v2576_v37 = vld [vmem:[%s3640_s1 + $0x630] ss:$8 sps:$4 sm:$0xff]  }
  0x4b   :  { %1718 = vmatpush1.bf16.msra.mxu1 %v2471_v18  ;;  %v2069_v18 = vcombine.low %v3076_v41, %v3081_v42  ;;  %v2582_v41 = vld [vmem:[%s3640_s1 + $0x640] ss:$8 sps:$4 sm:$0xff]   ;;  %v2587_v42 = vld [vmem:[%s3640_s1 + $0x254] ss:$8 sps:$4 sm:$0xff]  }
  0x4c   :  { %1890 = vmatpush1.bf16.msra.mxu0 %v2474_v19  ;;  %1719 = vmatprep.subr.bf16.mxu1 %v2479_v20  ;;  %v2558_v19 = vld [vmem:[%s3640_s1 + $0x600] ss:$8 sps:$4 sm:$0xff]   ;;  %v2563_v20 = vld [vmem:[%s3640_s1 + $0x214] ss:$8 sps:$4 sm:$0xff]  }
  0x4d   :  { %1891 = vmatprep.subr.bf16.mxu0 %v2482_v21  ;;  %v2566_v21 = vld [vmem:[%s3640_s1 + $0x614] ss:$8 sps:$4 sm:$0xff]  }
  0x4f   :  { %1720 = vmatpush1.bf16.msra.mxu1 %v2477_v22  ;;  %v2561_v22 = vld [vmem:[%s3640_s1 + $0x210] ss:$8 sps:$4 sm:$0xff]  }
  0x50   :  { %1892 = vmatpush1.bf16.msra.mxu0 %v2480_v23  ;;  %1721 = vmatprep.subr.bf16.mxu1 %v2485_v24  ;;  %v2564_v23 = vld [vmem:[%s3640_s1 + $0x610] ss:$8 sps:$4 sm:$0xff]  }
  0x51   :  { %1893 = vmatprep.subr.bf16.mxu0 %v2488_v25  ;;  %v3218_v24 = vld [vmem:[%s3641_s0 + $0x10] sm:$0xff] }
  0x52   :  { %v3223_v25 = vld [vmem:[%s3641_s0 + $0x50] sm:$0xff] }
  0x53   :  { %1722 = vmatpush1.bf16.msra.mxu1 %v2483_v26  ;;  %v2569_v26 = vld [vmem:[%s3640_s1 + $0x224] ss:$8 sps:$4 sm:$0xff]  }
  0x54   :  { %1894 = vmatpush1.bf16.msra.mxu0 %v2486_v27  ;;  %1723 = vmatprep.subr.bf16.mxu1 %v2491_v28  ;;  %v2572_v27 = vld [vmem:[%s3640_s1 + $0x624] ss:$8 sps:$4 sm:$0xff]   ;;  %v2064_v28 = vcombine.high %v3218_v24, %v3223_v25 }
  0x55   :  { %1895 = vmatprep.subr.bf16.mxu0 %v2494_v29  ;;  %v3236_v29 = vld [vmem:[%s3641_s0 + $0x30] sm:$0xff] }
  0x57   :  { %1724 = vmatpush1.bf16.msra.mxu1 %v2489_v30  ;;  %v3241_v30 = vld [vmem:[%s3641_s0 + $0x70] sm:$0xff] }
  0x58   :  { %1896 = vmatpush1.bf16.msra.mxu0 %v2492_v31  ;;  %1725 = vmatprep.subr.bf16.mxu1 %v2497_v32  ;;  %v2072_v31 = vcombine.high %v3236_v29, %v3241_v30  ;;  %v2567_v32 = vld [vmem:[%s3640_s1 + $0x220] ss:$8 sps:$4 sm:$0xff]  }
  0x59   :  { %1897 = vmatprep.subr.bf16.mxu0 %v2500_v33  ;;  %v2570_v33 = vld [vmem:[%s3640_s1 + $0x620] ss:$8 sps:$4 sm:$0xff]  }
  0x5b   :  { %1726 = vmatpush1.bf16.msra.mxu1 %v2495_v34  ;;  %v2575_v34 = vld [vmem:[%s3640_s1 + $0x234] ss:$8 sps:$4 sm:$0xff]  }
  0x5c   :  { %1898 = vmatpush1.bf16.msra.mxu0 %v2498_v35  ;;  %1727 = vmatprep.subr.bf16.mxu1 %v2503_v38  ;;  %v2578_v35 = vld [vmem:[%s3640_s1 + $0x634] ss:$8 sps:$4 sm:$0xff]   ;;  %v2581_v38 = vld [vmem:[%s3640_s1 + $0x244] ss:$8 sps:$4 sm:$0xff]  }
  0x5d   :  { %1899 = vmatprep.subr.bf16.mxu0 %v2506_v39  ;;  %v2584_v39 = vld [vmem:[%s3640_s1 + $0x644] ss:$8 sps:$4 sm:$0xff]  }
  0x5f   :  { %1728 = vmatpush1.bf16.msra.mxu1 %v2501_v44  ;;  %v2585_v44 = vld [vmem:[%s3640_s1 + $0x250] ss:$8 sps:$4 sm:$0xff]  }
  0x60   :  { %1900 = vmatpush1.bf16.msra.mxu0 %v2504_v45  ;;  %1729 = vmatprep.subr.bf16.mxu1 %v2509_v46  ;;  %v2588_v45 = vld [vmem:[%s3640_s1 + $0x650] ss:$8 sps:$4 sm:$0xff]   ;;  %v2593_v46 = vld [vmem:[%s3640_s1 + $0x264] ss:$8 sps:$4 sm:$0xff]  }
  0x61   :  { %1901 = vmatprep.subr.bf16.mxu0 %v2512_v47  ;;  %v2596_v47 = vld [vmem:[%s3640_s1 + $0x664] ss:$8 sps:$4 sm:$0xff]  }
  0x63   :  { %1730 = vmatpush1.bf16.msra.mxu1 %v2507_v48  ;;  %v2591_v48 = vld [vmem:[%s3640_s1 + $0x260] ss:$8 sps:$4 sm:$0xff]  }
  0x64   :  { %1902 = vmatpush1.bf16.msra.mxu0 %v2510_v49  ;;  %1731 = vmatprep.subr.bf16.mxu1 %v2515_v50  ;;  %v2594_v49 = vld [vmem:[%s3640_s1 + $0x660] ss:$8 sps:$4 sm:$0xff]   ;;  %v2599_v50 = vld [vmem:[%s3640_s1 + $0x274] ss:$8 sps:$4 sm:$0xff]  }
  0x65   :  { %1903 = vmatprep.subr.bf16.mxu0 %v2518_v51  ;;  %v2602_v51 = vld [vmem:[%s3640_s1 + $0x674] ss:$8 sps:$4 sm:$0xff]  }
  0x67   :  { %1732 = vmatpush1.bf16.msra.mxu1 %v2513_v52  ;;  %v2597_v52 = vld [vmem:[%s3640_s1 + $0x270] ss:$8 sps:$4 sm:$0xff]  }
  0x68   :  { %1904 = vmatpush1.bf16.msra.mxu0 %v2516_v53  ;;  %1733 = vmatprep.subr.bf16.mxu1 %v2521_v54  ;;  %v2600_v53 = vld [vmem:[%s3640_s1 + $0x670] ss:$8 sps:$4 sm:$0xff]   ;;  %v2605_v54 = vld [vmem:[%s3640_s1 + $0x284] ss:$8 sps:$4 sm:$0xff]  }
  0x69   :  { %1905 = vmatprep.subr.bf16.mxu0 %v2524_v55  ;;  %v2608_v55 = vld [vmem:[%s3640_s1 + $0x684] ss:$8 sps:$4 sm:$0xff]  }
  0x6b   :  { %1734 = vmatpush1.bf16.msra.mxu1 %v2519_v56  ;;  %v2603_v56 = vld [vmem:[%s3640_s1 + $0x280] ss:$8 sps:$4 sm:$0xff]  }
  0x6c   :  { %1906 = vmatpush1.bf16.msra.mxu0 %v2522_v57  ;;  %1735 = vmatprep.subr.bf16.mxu1 %v2527_v58  ;;  %v2606_v57 = vld [vmem:[%s3640_s1 + $0x680] ss:$8 sps:$4 sm:$0xff]   ;;  %v2611_v58 = vld [vmem:[%s3640_s1 + $0x294] ss:$8 sps:$4 sm:$0xff]  }
  0x6d   :  { %1907 = vmatprep.subr.bf16.mxu0 %v2530_v59  ;;  %v2614_v59 = vld [vmem:[%s3640_s1 + $0x694] ss:$8 sps:$4 sm:$0xff]  }
  0x6f   :  { %1736 = vmatpush1.bf16.msra.mxu1 %v2525_v60  ;;  %v2609_v60 = vld [vmem:[%s3640_s1 + $0x290] ss:$8 sps:$4 sm:$0xff]  }
  0x70   :  { %1908 = vmatpush1.bf16.msra.mxu0 %v2528_v61  ;;  %1737 = vmatprep.subr.bf16.mxu1 %v2533_v62  ;;  %v2612_v61 = vld [vmem:[%s3640_s1 + $0x690] ss:$8 sps:$4 sm:$0xff]   ;;  %v2617_v62 = vld [vmem:[%s3640_s1 + $0x2a4] ss:$8 sps:$4 sm:$0xff]  }
  0x71   :  { %1909 = vmatprep.subr.bf16.mxu0 %v2536_v63  ;;  %v2620_v63 = vld [vmem:[%s3640_s1 + $0x6a4] ss:$8 sps:$4 sm:$0xff]  }
  0x73   :  { %1738 = vmatpush1.bf16.msra.mxu1 %v2531_v0  ;;  %v2615_v0 = vld [vmem:[%s3640_s1 + $0x2a0] ss:$8 sps:$4 sm:$0xff]  }
  0x74   :  { %1910 = vmatpush1.bf16.msra.mxu0 %v2534_v1  ;;  %1739 = vmatprep.subr.bf16.mxu1 %v2539_v2  ;;  %v2618_v1 = vld [vmem:[%s3640_s1 + $0x6a0] ss:$8 sps:$4 sm:$0xff]   ;;  %v2623_v2 = vld [vmem:[%s3640_s1 + $0x2b4] ss:$8 sps:$4 sm:$0xff]  }
  0x75   :  { %1911 = vmatprep.subr.bf16.mxu0 %v2542_v3  ;;  %v2626_v3 = vld [vmem:[%s3640_s1 + $0x6b4] ss:$8 sps:$4 sm:$0xff]  }
  0x77   :  { %1740 = vmatpush1.bf16.msra.mxu1 %v2537_v4  ;;  %v2621_v4 = vld [vmem:[%s3640_s1 + $0x2b0] ss:$8 sps:$4 sm:$0xff]  }
  0x78   :  { %1912 = vmatpush1.bf16.msra.mxu0 %v2540_v5  ;;  %1741 = vmatprep.subr.bf16.mxu1 %v2545_v6  ;;  %v2624_v5 = vld [vmem:[%s3640_s1 + $0x6b0] ss:$8 sps:$4 sm:$0xff]   ;;  %v2629_v6 = vld [vmem:[%s3640_s1 + $0x2c4] ss:$8 sps:$4 sm:$0xff]  }
  0x79   :  { %1913 = vmatprep.subr.bf16.mxu0 %v2548_v7  ;;  %v2632_v7 = vld [vmem:[%s3640_s1 + $0x6c4] ss:$8 sps:$4 sm:$0xff]  }
  0x7b   :  { %1742 = vmatpush1.bf16.msra.mxu1 %v2543_v8  ;;  %v2627_v8 = vld [vmem:[%s3640_s1 + $0x2c0] ss:$8 sps:$4 sm:$0xff]  }
  0x7c   :  { %1914 = vmatpush1.bf16.msra.mxu0 %v2546_v9  ;;  %1743 = vmatprep.subr.bf16.mxu1 %v2551_v10  ;;  %v2630_v9 = vld [vmem:[%s3640_s1 + $0x6c0] ss:$8 sps:$4 sm:$0xff]   ;;  %v2635_v10 = vld [vmem:[%s3640_s1 + $0x2d4] ss:$8 sps:$4 sm:$0xff]  }
  0x7d   :  { %1915 = vmatprep.subr.bf16.mxu0 %v2554_v11  ;;  %v2638_v11 = vld [vmem:[%s3640_s1 + $0x6d4] ss:$8 sps:$4 sm:$0xff]  }
  0x7f   :  { %1744 = vmatpush1.bf16.msra.mxu1 %v2549_v12  ;;  %v2633_v12 = vld [vmem:[%s3640_s1 + $0x2d0] ss:$8 sps:$4 sm:$0xff]  }
  0x80   :  { %1916 = vmatpush1.bf16.msra.mxu0 %v2552_v13  ;;  %1756 = vmatprep.subr.bf16.mxu1 %v2557_v14  ;;  %v2636_v13 = vld [vmem:[%s3640_s1 + $0x6d0] ss:$8 sps:$4 sm:$0xff]   ;;  %v2641_v14 = vld [vmem:[%s3640_s1 + $0x2e4] ss:$8 sps:$4 sm:$0xff]  }
  0x81   :  { %1928 = vmatprep.subr.bf16.mxu0 %v2560_v15  ;;  %v2644_v15 = vld [vmem:[%s3640_s1 + $0x6e4] ss:$8 sps:$4 sm:$0xff]  }
  0x82   :  { %1746 = vmatmul.mubr.bf16.vlgmr.msra.gmra.mrb[0].mxu1 %v2061_v16  ;;  %v2639_v16 = vld [vmem:[%s3640_s1 + $0x2e0] ss:$8 sps:$4 sm:$0xff]  }
  0x83   :  { %1918 = vmatmul.mubr.bf16.vlgmr.msra.gmra.mrb[0].mxu0 %v2069_v18  ;;  %1757 = vmatpush1.bf16.msra.mxu1 %v2555_v17  ;;  %v2642_v17 = vld [vmem:[%s3640_s1 + $0x6e0] ss:$8 sps:$4 sm:$0xff]   ;;  %v2647_v18 = vld [vmem:[%s3640_s1 + $0x2f4] ss:$8 sps:$4 sm:$0xff]  }
  0x84   :  { %1929 = vmatpush1.bf16.msra.mxu0 %v2558_v19  ;;  %1758 = vmatprep.subr.bf16.mxu1 %v2563_v20  ;;  %v2650_v19 = vld [vmem:[%s3640_s1 + $0x6f4] ss:$8 sps:$4 sm:$0xff]   ;;  %v2645_v20 = vld [vmem:[%s3640_s1 + $0x2f0] ss:$8 sps:$4 sm:$0xff]  }
  0x85   :  { %1930 = vmatprep.subr.bf16.mxu0 %v2566_v21  ;;  %1788 = vmatprep.mubr.bf16.mxu1 %v2064_v28  ;;  %v2648_v21 = vld [vmem:[%s3640_s1 + $0x6f0] ss:$8 sps:$4 sm:$0xff]   ;;  %v2071_v28 = vcombine.low %v3236_v29, %v3241_v30  ;;  %v2659_v29 = vld [vmem:[%s3640_s1 + $0x314] ss:$8 sps:$4 sm:$0xff]  }
  0x86   :  { %1960 = vmatprep.mubr.bf16.mxu0 %v2072_v31  ;;  %v3425_v31 = vld [vmem:[%s3641_s0 + $0x58] sm:$0xff] }
  0x87   :  { %1759 = vmatpush1.bf16.msra.mxu1 %v2561_v22  ;;  %v2653_v22 = vld [vmem:[%s3640_s1 + $0x304] ss:$8 sps:$4 sm:$0xff]   ;;  %v2662_v30 = vld [vmem:[%s3640_s1 + $0x714] ss:$8 sps:$4 sm:$0xff]  }
  0x88   :  { %1931 = vmatpush1.bf16.msra.mxu0 %v2564_v23  ;;  %1760 = vmatprep.subr.bf16.mxu1 %v2569_v26  ;;  %v2656_v23 = vld [vmem:[%s3640_s1 + $0x704] ss:$8 sps:$4 sm:$0xff]   ;;  %v3416_v26 = vld [vmem:[%s3641_s0 + $0x18] sm:$0xff] }
  0x89   :  { %1932 = vmatprep.subr.bf16.mxu0 %v2572_v27  ;;  %v2063_v27 = vcombine.low %v3218_v24, %v3223_v25  ;;  %v2651_v24 = vld [vmem:[%s3640_s1 + $0x300] ss:$8 sps:$4 sm:$0xff]  }
  0x8a   :  { %v2654_v25 = vld [vmem:[%s3640_s1 + $0x700] ss:$8 sps:$4 sm:$0xff]  }
  0x8b   :  { %1761 = vmatpush1.bf16.msra.mxu1 %v2567_v32  ;;  %v3430_v32 = vld [vmem:[%s3641_s0 + $0x38] sm:$0xff] }
  0x8c   :  { %1933 = vmatpush1.bf16.msra.mxu0 %v2570_v33  ;;  %1762 = vmatprep.subr.bf16.mxu1 %v2575_v34  ;;  %v3435_v33 = vld [vmem:[%s3641_s0 + $0x78] sm:$0xff]  ;;  %v2066_v34 = vcombine.high %v3416_v26, %v3425_v31 }
  0x8d   :  { %1934 = vmatprep.subr.bf16.mxu0 %v2578_v35  ;;  %v2074_v35 = vcombine.high %v3430_v32, %v3435_v33 }
  0x8f   :  { %1763 = vmatpush1.bf16.msra.mxu1 %v2573_v36  ;;  %v2657_v36 = vld [vmem:[%s3640_s1 + $0x310] ss:$8 sps:$4 sm:$0xff]  }
  0x90   :  { %1935 = vmatpush1.bf16.msra.mxu0 %v2576_v37  ;;  %1764 = vmatprep.subr.bf16.mxu1 %v2581_v38  ;;  %v2660_v37 = vld [vmem:[%s3640_s1 + $0x710] ss:$8 sps:$4 sm:$0xff]   ;;  %v2665_v38 = vld [vmem:[%s3640_s1 + $0x324] ss:$8 sps:$4 sm:$0xff]  }
  0x91   :  { %1936 = vmatprep.subr.bf16.mxu0 %v2584_v39  ;;  %v2668_v39 = vld [vmem:[%s3640_s1 + $0x724] ss:$8 sps:$4 sm:$0xff]  }
  0x93   :  { %1765 = vmatpush1.bf16.msra.mxu1 %v2579_v40  ;;  %v2663_v40 = vld [vmem:[%s3640_s1 + $0x320] ss:$8 sps:$4 sm:$0xff]  }
  0x94   :  { %1937 = vmatpush1.bf16.msra.mxu0 %v2582_v41  ;;  %1766 = vmatprep.subr.bf16.mxu1 %v2587_v42  ;;  %v2666_v41 = vld [vmem:[%s3640_s1 + $0x720] ss:$8 sps:$4 sm:$0xff]   ;;  %v2671_v42 = vld [vmem:[%s3640_s1 + $0x334] ss:$8 sps:$4 sm:$0xff]  }
  0x95   :  { %1938 = vmatprep.subr.bf16.mxu0 %v2590_v43  ;;  %v2674_v43 = vld [vmem:[%s3640_s1 + $0x734] ss:$8 sps:$4 sm:$0xff]  }
  0x97   :  { %1767 = vmatpush1.bf16.msra.mxu1 %v2585_v44  ;;  %v2669_v44 = vld [vmem:[%s3640_s1 + $0x330] ss:$8 sps:$4 sm:$0xff]  }
  0x98   :  { %1939 = vmatpush1.bf16.msra.mxu0 %v2588_v45  ;;  %1768 = vmatprep.subr.bf16.mxu1 %v2593_v46  ;;  %v2672_v45 = vld [vmem:[%s3640_s1 + $0x730] ss:$8 sps:$4 sm:$0xff]   ;;  %v2677_v46 = vld [vmem:[%s3640_s1 + $0x344] ss:$8 sps:$4 sm:$0xff]  }
  0x99   :  { %1940 = vmatprep.subr.bf16.mxu0 %v2596_v47  ;;  %v2680_v47 = vld [vmem:[%s3640_s1 + $0x744] ss:$8 sps:$4 sm:$0xff]  }
  0x9b   :  { %1769 = vmatpush1.bf16.msra.mxu1 %v2591_v48  ;;  %v2675_v48 = vld [vmem:[%s3640_s1 + $0x340] ss:$8 sps:$4 sm:$0xff]  }
  0x9c   :  { %1941 = vmatpush1.bf16.msra.mxu0 %v2594_v49  ;;  %1770 = vmatprep.subr.bf16.mxu1 %v2599_v50  ;;  %v2678_v49 = vld [vmem:[%s3640_s1 + $0x740] ss:$8 sps:$4 sm:$0xff]   ;;  %v2683_v50 = vld [vmem:[%s3640_s1 + $0x354] ss:$8 sps:$4 sm:$0xff]  }
  0x9d   :  { %1942 = vmatprep.subr.bf16.mxu0 %v2602_v51  ;;  %v2686_v51 = vld [vmem:[%s3640_s1 + $0x754] ss:$8 sps:$4 sm:$0xff]  }
  0x9f   :  { %1771 = vmatpush1.bf16.msra.mxu1 %v2597_v52  ;;  %v2681_v52 = vld [vmem:[%s3640_s1 + $0x350] ss:$8 sps:$4 sm:$0xff]  }
  0xa0   :  { %1943 = vmatpush1.bf16.msra.mxu0 %v2600_v53  ;;  %1772 = vmatprep.subr.bf16.mxu1 %v2605_v54  ;;  %v2684_v53 = vld [vmem:[%s3640_s1 + $0x750] ss:$8 sps:$4 sm:$0xff]   ;;  %v2689_v54 = vld [vmem:[%s3640_s1 + $0x364] ss:$8 sps:$4 sm:$0xff]  }
  0xa1   :  { %1944 = vmatprep.subr.bf16.mxu0 %v2608_v55  ;;  %v2692_v55 = vld [vmem:[%s3640_s1 + $0x764] ss:$8 sps:$4 sm:$0xff]  }
  0xa3   :  { %1773 = vmatpush1.bf16.msra.mxu1 %v2603_v56  ;;  %v2687_v56 = vld [vmem:[%s3640_s1 + $0x360] ss:$8 sps:$4 sm:$0xff]  }
  0xa4   :  { %1945 = vmatpush1.bf16.msra.mxu0 %v2606_v57  ;;  %1774 = vmatprep.subr.bf16.mxu1 %v2611_v58  ;;  %v2690_v57 = vld [vmem:[%s3640_s1 + $0x760] ss:$8 sps:$4 sm:$0xff]   ;;  %v2695_v58 = vld [vmem:[%s3640_s1 + $0x374] ss:$8 sps:$4 sm:$0xff]  }
  0xa5   :  { %1946 = vmatprep.subr.bf16.mxu0 %v2614_v59  ;;  %v2698_v59 = vld [vmem:[%s3640_s1 + $0x774] ss:$8 sps:$4 sm:$0xff]  }
  0xa7   :  { %1775 = vmatpush1.bf16.msra.mxu1 %v2609_v60  ;;  %v2693_v60 = vld [vmem:[%s3640_s1 + $0x370] ss:$8 sps:$4 sm:$0xff]  }
  0xa8   :  { %1947 = vmatpush1.bf16.msra.mxu0 %v2612_v61  ;;  %1776 = vmatprep.subr.bf16.mxu1 %v2617_v62  ;;  %v2696_v61 = vld [vmem:[%s3640_s1 + $0x770] ss:$8 sps:$4 sm:$0xff]   ;;  %v2701_v62 = vld [vmem:[%s3640_s1 + $0x384] ss:$8 sps:$4 sm:$0xff]  }
  0xa9   :  { %1948 = vmatprep.subr.bf16.mxu0 %v2620_v63  ;;  %v2704_v63 = vld [vmem:[%s3640_s1 + $0x784] ss:$8 sps:$4 sm:$0xff]  }
  0xab   :  { %1777 = vmatpush1.bf16.msra.mxu1 %v2615_v0  ;;  %v2699_v0 = vld [vmem:[%s3640_s1 + $0x380] ss:$8 sps:$4 sm:$0xff]  }
  0xac   :  { %1949 = vmatpush1.bf16.msra.mxu0 %v2618_v1  ;;  %1778 = vmatprep.subr.bf16.mxu1 %v2623_v2  ;;  %v2702_v1 = vld [vmem:[%s3640_s1 + $0x780] ss:$8 sps:$4 sm:$0xff]   ;;  %v2707_v2 = vld [vmem:[%s3640_s1 + $0x394] ss:$8 sps:$4 sm:$0xff]  }
  0xad   :  { %1950 = vmatprep.subr.bf16.mxu0 %v2626_v3  ;;  %v2710_v3 = vld [vmem:[%s3640_s1 + $0x794] ss:$8 sps:$4 sm:$0xff]  }
  0xaf   :  { %1779 = vmatpush1.bf16.msra.mxu1 %v2621_v4  ;;  %v2705_v4 = vld [vmem:[%s3640_s1 + $0x390] ss:$8 sps:$4 sm:$0xff]  }
  0xb0   :  { %1951 = vmatpush1.bf16.msra.mxu0 %v2624_v5  ;;  %1780 = vmatprep.subr.bf16.mxu1 %v2629_v6  ;;  %v2708_v5 = vld [vmem:[%s3640_s1 + $0x790] ss:$8 sps:$4 sm:$0xff]   ;;  %v2713_v6 = vld [vmem:[%s3640_s1 + $0x3a4] ss:$8 sps:$4 sm:$0xff]  }
  0xb1   :  { %1952 = vmatprep.subr.bf16.mxu0 %v2632_v7  ;;  %v2716_v7 = vld [vmem:[%s3640_s1 + $0x7a4] ss:$8 sps:$4 sm:$0xff]  }
  0xb3   :  { %1781 = vmatpush1.bf16.msra.mxu1 %v2627_v8  ;;  %v2711_v8 = vld [vmem:[%s3640_s1 + $0x3a0] ss:$8 sps:$4 sm:$0xff]  }
  0xb4   :  { %1953 = vmatpush1.bf16.msra.mxu0 %v2630_v9  ;;  %1782 = vmatprep.subr.bf16.mxu1 %v2635_v10  ;;  %v2714_v9 = vld [vmem:[%s3640_s1 + $0x7a0] ss:$8 sps:$4 sm:$0xff]   ;;  %v2719_v10 = vld [vmem:[%s3640_s1 + $0x3b4] ss:$8 sps:$4 sm:$0xff]  }
  0xb5   :  { %1954 = vmatprep.subr.bf16.mxu0 %v2638_v11  ;;  %v2722_v11 = vld [vmem:[%s3640_s1 + $0x7b4] ss:$8 sps:$4 sm:$0xff]  }
  0xb7   :  { %1783 = vmatpush1.bf16.msra.mxu1 %v2633_v12  ;;  %v2717_v12 = vld [vmem:[%s3640_s1 + $0x3b0] ss:$8 sps:$4 sm:$0xff]  }
  0xb8   :  { %1955 = vmatpush1.bf16.msra.mxu0 %v2636_v13  ;;  %1784 = vmatprep.subr.bf16.mxu1 %v2641_v14  ;;  %v2720_v13 = vld [vmem:[%s3640_s1 + $0x7b0] ss:$8 sps:$4 sm:$0xff]   ;;  %v2725_v14 = vld [vmem:[%s3640_s1 + $0x3c4] ss:$8 sps:$4 sm:$0xff]  }
  0xb9   :  { %1956 = vmatprep.subr.bf16.mxu0 %v2644_v15  ;;  %v2728_v15 = vld [vmem:[%s3640_s1 + $0x7c4] ss:$8 sps:$4 sm:$0xff]  }
  0xbb   :  { %1785 = vmatpush1.bf16.msra.mxu1 %v2639_v16  ;;  %v2723_v16 = vld [vmem:[%s3640_s1 + $0x3c0] ss:$8 sps:$4 sm:$0xff]  }
  0xbc   :  { %1957 = vmatpush1.bf16.msra.mxu0 %v2642_v17  ;;  %1786 = vmatprep.subr.bf16.mxu1 %v2647_v18  ;;  %v2726_v17 = vld [vmem:[%s3640_s1 + $0x7c0] ss:$8 sps:$4 sm:$0xff]   ;;  %v2731_v18 = vld [vmem:[%s3640_s1 + $0x3d4] ss:$8 sps:$4 sm:$0xff]  }
  0xbd   :  { %1958 = vmatprep.subr.bf16.mxu0 %v2650_v19  ;;  %v2734_v19 = vld [vmem:[%s3640_s1 + $0x7d4] ss:$8 sps:$4 sm:$0xff]  }
  0xbf   :  { %1787 = vmatpush1.bf16.msra.mxu1 %v2645_v20  ;;  %v2729_v20 = vld [vmem:[%s3640_s1 + $0x3d0] ss:$8 sps:$4 sm:$0xff]  }
  0xc0   :  { %1959 = vmatpush1.bf16.msra.mxu0 %v2648_v21  ;;  %1799 = vmatprep.subr.bf16.mxu1 %v2653_v22  ;;  %v2732_v21 = vld [vmem:[%s3640_s1 + $0x7d0] ss:$8 sps:$4 sm:$0xff]   ;;  %v2737_v22 = vld [vmem:[%s3640_s1 + $0x3e4] ss:$8 sps:$4 sm:$0xff]  }
  0xc1   :  { %1971 = vmatprep.subr.bf16.mxu0 %v2656_v23  ;;  %v2740_v23 = vld [vmem:[%s3640_s1 + $0x7e4] ss:$8 sps:$4 sm:$0xff]  }
  0xc2   :  { %1789 = vmatmul.mubr.bf16.vlgmr.msra.gmra.mrb[0].mxu1 %v2063_v27  ;;  %v2735_v27 = vld [vmem:[%s3640_s1 + $0x3e0] ss:$8 sps:$4 sm:$0xff]  }
  0xc3   :  { %1961 = vmatmul.mubr.bf16.vlgmr.msra.gmra.mrb[0].mxu0 %v2071_v28  ;;  %1800 = vmatpush1.bf16.msra.mxu1 %v2651_v24  ;;  %v2738_v28 = vld [vmem:[%s3640_s1 + $0x7e0] ss:$8 sps:$4 sm:$0xff]   ;;  %v2743_v24 = vld [vmem:[%s3640_s1 + $0x3f4] ss:$8 sps:$4 sm:$0xff]  }
  0xc4   :  { %1972 = vmatpush1.bf16.msra.mxu0 %v2654_v25  ;;  %1801 = vmatprep.subr.bf16.mxu1 %v2659_v29  ;;  %v2746_v25 = vld [vmem:[%s3640_s1 + $0x7f4] ss:$8 sps:$4 sm:$0xff]   ;;  %v2741_v29 = vld [vmem:[%s3640_s1 + $0x3f0] ss:$8 sps:$4 sm:$0xff]  }
  0xc5   :  { %1973 = vmatprep.subr.bf16.mxu0 %v2662_v30  ;;  %1831 = vmatprep.mubr.bf16.mxu1 %v2066_v34  ;;  %v2744_v30 = vld [vmem:[%s3640_s1 + $0x7f0] ss:$8 sps:$4 sm:$0xff]   ;;  %v2065_v34 = vcombine.low %v3416_v26, %v3425_v31 }
  0xc6   :  { %2003 = vmatprep.mubr.bf16.mxu0 %v2074_v35  ;;  %v2073_v35 = vcombine.low %v3430_v32, %v3435_v33 }
  0xc7   :  { %1802 = vmatpush1.bf16.msra.mxu1 %v2657_v36  ;;  %v20_v36 = vlaneseq }
  0xc8   :  { %1974 = vmatpush1.bf16.msra.mxu0 %v2660_v37  ;;  %1803 = vmatprep.subr.bf16.mxu1 %v2665_v38 }
  0xc9   :  { %1975 = vmatprep.subr.bf16.mxu0 %v2668_v39  ;;  %v21_v37 = vshrl.u32 %v20_v36, 7  ;;  %v18_v39 = vld [vmem:[%s3642_s2] sm:$0x3] }
  0xcb   :  { %1804 = vmatpush1.bf16.msra.mxu1 %v2663_v40  ;;  %v22_v38 = vsub.s32 0, %v21_v37  ;;  %v26_v40 = vsub.s32 1, %v21_v37 }
  0xcc   :  { %1976 = vmatpush1.bf16.msra.mxu0 %v2666_v41  ;;  %1805 = vmatprep.subr.bf16.mxu1 %v2671_v42 }
  0xcd   :  { %1977 = vmatprep.subr.bf16.mxu0 %v2674_v43  ;;  %v23_v41 = vrot.slane %v18_v39, %v22_v38 }
  0xcf   :  { %1806 = vmatpush1.bf16.msra.mxu1 %v2669_v44  ;;  %v27_v44 = vrot.slane %v18_v39, %v26_v40 }
  0xd0   :  { %1978 = vmatpush1.bf16.msra.mxu0 %v2672_v45  ;;  %1807 = vmatprep.subr.bf16.mxu1 %v2677_v46 }
  0xd1   :  { %1979 = vmatprep.subr.bf16.mxu0 %v2680_v47 }
  0xd3   :  { %1808 = vmatpush1.bf16.msra.mxu1 %v2675_v48 }
  0xd4   :  { %1980 = vmatpush1.bf16.msra.mxu0 %v2678_v49  ;;  %1809 = vmatprep.subr.bf16.mxu1 %v2683_v50 }
  0xd5   :  { %1981 = vmatprep.subr.bf16.mxu0 %v2686_v51 }
  0xd7   :  { %1810 = vmatpush1.bf16.msra.mxu1 %v2681_v52 }
  0xd8   :  { %1982 = vmatpush1.bf16.msra.mxu0 %v2684_v53  ;;  %1811 = vmatprep.subr.bf16.mxu1 %v2689_v54 }
  0xd9   :  { %1983 = vmatprep.subr.bf16.mxu0 %v2692_v55 }
  0xdb   :  { %1812 = vmatpush1.bf16.msra.mxu1 %v2687_v56 }
  0xdc   :  { %1984 = vmatpush1.bf16.msra.mxu0 %v2690_v57  ;;  %1813 = vmatprep.subr.bf16.mxu1 %v2695_v58 }
  0xdd   :  { %1985 = vmatprep.subr.bf16.mxu0 %v2698_v59 }
  0xdf   :  { %1814 = vmatpush1.bf16.msra.mxu1 %v2693_v60 }
  0xe0   :  { %1986 = vmatpush1.bf16.msra.mxu0 %v2696_v61  ;;  %1815 = vmatprep.subr.bf16.mxu1 %v2701_v62 }
  0xe1   :  { %1987 = vmatprep.subr.bf16.mxu0 %v2704_v63 }
  0xe3   :  { %1816 = vmatpush1.bf16.msra.mxu1 %v2699_v0 }
  0xe4   :  { %1988 = vmatpush1.bf16.msra.mxu0 %v2702_v1  ;;  %1817 = vmatprep.subr.bf16.mxu1 %v2707_v2 }
  0xe5   :  { %1989 = vmatprep.subr.bf16.mxu0 %v2710_v3 }
  0xe7   :  { %1818 = vmatpush1.bf16.msra.mxu1 %v2705_v4 }
  0xe8   :  { %1990 = vmatpush1.bf16.msra.mxu0 %v2708_v5  ;;  %1819 = vmatprep.subr.bf16.mxu1 %v2713_v6 }
  0xe9   :  { %1991 = vmatprep.subr.bf16.mxu0 %v2716_v7 }
  0xeb   :  { %1820 = vmatpush1.bf16.msra.mxu1 %v2711_v8 }
  0xec   :  { %1992 = vmatpush1.bf16.msra.mxu0 %v2714_v9  ;;  %1821 = vmatprep.subr.bf16.mxu1 %v2719_v10 }
  0xed   :  { %1993 = vmatprep.subr.bf16.mxu0 %v2722_v11 }
  0xef   :  { %1822 = vmatpush1.bf16.msra.mxu1 %v2717_v12 }
  0xf0   :  { %1994 = vmatpush1.bf16.msra.mxu0 %v2720_v13  ;;  %1823 = vmatprep.subr.bf16.mxu1 %v2725_v14 }
  0xf1   :  { %1995 = vmatprep.subr.bf16.mxu0 %v2728_v15 }
  0xf3   :  { %1824 = vmatpush1.bf16.msra.mxu1 %v2723_v16 }
  0xf4   :  { %1996 = vmatpush1.bf16.msra.mxu0 %v2726_v17  ;;  %1825 = vmatprep.subr.bf16.mxu1 %v2731_v18 }
  0xf5   :  { %1997 = vmatprep.subr.bf16.mxu0 %v2734_v19 }
  0xf7   :  { %1826 = vmatpush1.bf16.msra.mxu1 %v2729_v20 }
  0xf8   :  { %1998 = vmatpush1.bf16.msra.mxu0 %v2732_v21  ;;  %1827 = vmatprep.subr.bf16.mxu1 %v2737_v22 }
  0xf9   :  { %1999 = vmatprep.subr.bf16.mxu0 %v2740_v23 }
  0xfb   :  { %1828 = vmatpush1.bf16.msra.mxu1 %v2735_v27 }
  0xfc   :  { %2000 = vmatpush1.bf16.msra.mxu0 %v2738_v28  ;;  %1829 = vmatprep.subr.bf16.mxu1 %v2743_v24 }
  0xfd   :  { %2001 = vmatprep.subr.bf16.mxu0 %v2746_v25 }
  0xff   :  { %1830 = vmatpush1.bf16.msra.mxu1 %v2741_v29 }
 0x100   :  { %2002 = vmatpush1.bf16.msra.mxu0 %v2744_v30 }
 0x102   :  { %1832 = vmatmul.mubr.bf16.vlgmr.msra.gmra.mrb[0].mxu1 %v2065_v34 }
 0x103   :  { %2004 = vmatmul.mubr.bf16.vlgmr.msra.gmra.mrb[0].mxu0 %v2073_v35 }
 0x1d5   :  { %v1833_v42 = vpop.f32.mrb[0].mxu1 }
 0x1d6   :  { %v2005_v43 = vpop.f32.mrb[0].mxu0  ;;  %v1835_v31 = vpop.f32.mrb[1].mxu1 }
 0x1d7   :  { %v2335_v26 = vadd.f32 %v2005_v43, %v1833_v42  ;;  %v2007_v45 = vpop.f32.mrb[1].mxu0  ;;  %v1837_v33 = vpop.f32.mrb[2].mxu1 }
 0x1d8   :  { %v2336_v32 = vadd.f32 %v2007_v45, %v1835_v31  ;;  %v2009_v46 = vpop.f32.mrb[2].mxu0  ;;  %v1839_v49 = vpop.f32.mrb[3].mxu1 }
 0x1d9   :  { %v2014_v47 = vadd.f32 %v2335_v26, %v23_v41  ;;  %v2337_v48 = vadd.f32 %v2009_v46, %v1837_v33  ;;  %v2011_v50 = vpop.f32.mrb[3].mxu0 }
 0x1da   :  { %v2015_v51 = vadd.f32 %v2336_v32, %v27_v44  ;;  %v2338_v52 = vadd.f32 %v2011_v50, %v1839_v49 }
 0x1db   :  { %vm2029_vm0 = vcmp.gt.f32.partialorder %v2014_v47, 0.0  ;;  %v2033_v53 = vmul.f32 0.2, %v2014_v47  ;;  %v2016_v54 = vadd.f32 %v2337_v48, %v23_v41 }
 0x1dc   :  { %vm2030_vm1 = vcmp.gt.f32.partialorder %v2015_v51, 0.0  ;;  %v2034_v55 = vmul.f32 0.2, %v2015_v51  ;;  %v2017_v56 = vadd.f32 %v2338_v52, %v27_v44 }
 0x1dd   :  { %v2037_v57 = vsel %vm2029_vm0, %v2014_v47, %v2033_v53  ;;  %vm2031_vm2 = vcmp.gt.f32.partialorder %v2016_v54, 0.0  ;;  %v2035_v58 = vmul.f32 0.2, %v2016_v54 }
 0x1de   :  { %v2038_v59 = vsel %vm2030_vm1, %v2015_v51, %v2034_v55  ;;  %vm2032_vm3 = vcmp.gt.f32.partialorder %v2017_v56, 0.0  ;;  %v2036_v60 = vmul.f32 0.2, %v2017_v56 }
 0x1df   :  { %v2333_v61 = vpack.c.bf16 %v2038_v59, %v2037_v57  ;;  %v2039_v62 = vsel %vm2031_vm2, %v2016_v54, %v2035_v58 }
 0x1e0   :  { %v2040_v63 = vsel %vm2032_vm3, %v2017_v56, %v2036_v60 }
 0x1e1   :  { %2053 = vst [vmem:[%s3643_s3] sm:$0xff] %v2333_v61  ;;  %v2334_v0 = vpack.c.bf16 %v2040_v63, %v2039_v62 }
 0x1e3   :  { %2054 = vst [vmem:[%s3643_s3 + $0x8] sm:$0xff] %v2334_v0 }

// kernel: discriminator_forward.9
= control target key start
LH: loop header
LB: loop body
LE: loop exit
PB: predicated region body
PF: predicated region fallthrough
CT: control target
= control target key end

     0   :  { %v147_v0 = vlaneseq  ;;  %vm638_vm0 = vcmask 7168   ;;  %s1122_s1 = inlined_call_operand.vmem [shape: bf16[1,4608], index: 1, kind: input, shape index: {}]   ;;  %s1123_s0 = inlined_call_operand.vmem [shape: bf16[16,4608], index: 0, kind: input, shape index: {}]   ;;  %s1124_s2 = inlined_call_operand.<no memory space> [shape: f32[1,1], index: 2, kind: input, shape index: {}]   ;;  %s1125_s3 = inlined_call_operand.vmem [shape: f32[16,1], index: 3, kind: output, shape index: {}]  }
   0x1   :  { %v124_v1 = vld [vmem:[%s1122_s1] sm:$0xff]  ;;  %v17_v21 = vld [vmem:[%s1123_s0 + $0x8] sm:$0xff]  ;;  %v18_v28 = vld [vmem:[%s1123_s0 + $0x10] sm:$0xff] }
   0x2   :  { %v128_v2 = vld [vmem:[%s1122_s1 + $0x20] sm:$0xf]  ;;  %v148_v3 = vshrl.u32 %v147_v0, 7  ;;  %v129_v4 = vunpack.c.l.bf16 %v124_v1  ;;  %v130_v16 = vunpack.c.h.bf16 %v124_v1  ;;  %v33_v23 = vld [vmem:[%s1123_s0 + $0x88] sm:$0xff]  ;;  %v54_v29 = vunpack.c.l.bf16 %v17_v21  ;;  %v19_v41 = vld [vmem:[%s1123_s0 + $0x18] sm:$0xff] }
   0x3   :  { %v680_v5 = vunpack.c.l.bf16 %v128_v2  ;;  %v16_v13 = vld [vmem:[%s1123_s0] sm:$0xff]  ;;  %v55_v32 = vunpack.c.h.bf16 %v17_v21  ;;  %v86_v33 = vunpack.c.l.bf16 %v33_v23  ;;  %v87_v34 = vunpack.c.h.bf16 %v33_v23  ;;  %v125_v35 = vld [vmem:[%s1122_s1 + $0x8] sm:$0xff]  ;;  %v769_v51 = vld [vmem:[%s1123_s0 + $0x30] sm:$0xff] }
   0x4   :  { %v682_v6 = vsub.s32 0, %v148_v3  ;;  %v684_v7 = vsub.s32 2, %v148_v3  ;;  %v686_v8 = vsub.s32 4, %v148_v3  ;;  %v688_v9 = vsub.s32 6, %v148_v3  ;;  %v746_v42 = vld [vmem:[%s1123_s0 + $0x20] sm:$0xff]  ;;  %v764_v50 = vld [vmem:[%s1123_s0 + $0x28] sm:$0xff] }
   0x5   :  { %v52_v22 = vunpack.c.l.bf16 %v16_v13  ;;  %v53_v24 = vunpack.c.h.bf16 %v16_v13  ;;  %v56_v40 = vunpack.c.l.bf16 %v18_v28  ;;  %v748_v43 = vunpack.c.l.bf16 %v125_v35  ;;  %v780_v59 = vld [vmem:[%s1123_s0 + $0x38] sm:$0xff] }
   0x6   :  { %v282_v10 = vrot.slane %v680_v5, %v684_v7  ;;  %v286_v11 = vrot.slane %v680_v5, %v686_v8  ;;  %v290_v12 = vrot.slane %v680_v5, %v688_v9  ;;  %v150_v14 = vrot.slane %v129_v4, %v682_v6 }
   0x7   :  { %v154_v15 = vrot.slane %v129_v4, %v684_v7  ;;  %v158_v17 = vrot.slane %v129_v4, %v686_v8  ;;  %v162_v25 = vrot.slane %v129_v4, %v688_v9  ;;  %v166_v30 = vrot.slane %v130_v16, %v682_v6  ;;  %v795_v4 = vld [vmem:[%s1123_s0 + $0x40] sm:$0xff] }
   0x8   :  { %v703_v18 = vrot.slane %v282_v10, %v682_v6  ;;  %v706_v19 = vrot.slane %v286_v11, %v682_v6  ;;  %v709_v20 = vrot.slane %v290_v12, %v682_v6  ;;  %v719_v26 = vrot.slane %v150_v14, %v682_v6  ;;  %v800_v10 = vld [vmem:[%s1122_s1 + $0x10] sm:$0xff] }
   0x9   :  { %v722_v27 = vrot.slane %v154_v15, %v682_v6  ;;  %v729_v31 = vrot.slane %v158_v17, %v682_v6  ;;  %v170_v36 = vrot.slane %v130_v16, %v684_v7  ;;  %v736_v37 = vrot.slane %v162_v25, %v682_v6 }
   0xa   :  { %v471_v38 = vmul.f32 %v719_v26, %v52_v22  ;;  %v174_v44 = vrot.slane %v130_v16, %v686_v8  ;;  %v752_v45 = vrot.slane %v166_v30, %v682_v6  ;;  %v57_v47 = vunpack.c.h.bf16 %v18_v28  ;;  %v34_v22 = vld [vmem:[%s1123_s0 + $0x90] sm:$0xff] }
   0xb   :  { %v472_v39 = vmul.f32 %v722_v27, %v53_v24  ;;  %v473_v46 = vmul.f32 %v729_v31, %v54_v29  ;;  %v756_v48 = vmul.f32 %v706_v19, %v86_v33  ;;  %v759_v49 = vmul.f32 %v709_v20, %v87_v34  ;;  %v35_v29 = vld [vmem:[%s1123_s0 + $0x98] sm:$0xff] }
   0xc   :  { %v178_v52 = vrot.slane %v130_v16, %v688_v9  ;;  %v773_v53 = vrot.slane %v170_v36, %v682_v6  ;;  %v474_v54 = vmul.f32 %v736_v37, %v55_v32  ;;  %v58_v56 = vunpack.c.l.bf16 %v19_v41 }
   0xd   :  { %v543_v55 = vadd.f32 %v472_v39, %v471_v38  ;;  %v59_v57 = vunpack.c.h.bf16 %v19_v41  ;;  %v60_v58 = vunpack.c.l.bf16 %v746_v42  ;;  %v182_v60 = vrot.slane %v748_v43, %v682_v6  ;;  %v36_v39 = vld [vmem:[%s1123_s0 + $0xa0] sm:$0xff] }
   0xe   :  { %v785_v61 = vrot.slane %v174_v44, %v682_v6  ;;  %v475_v62 = vmul.f32 %v752_v45, %v56_v40  ;;  %v61_v0 = vunpack.c.h.bf16 %v746_v42  ;;  %v62_v1 = vunpack.c.l.bf16 %v764_v50  ;;  %v50_v42 = vld [vmem:[%s1123_s0 + $0x110] sm:$0xff] }
   0xf   :  { %v544_v63 = vadd.f32 %v543_v55, %v473_v46  ;;  %v63_v2 = vunpack.c.h.bf16 %v764_v50  ;;  %v64_v3 = vunpack.c.l.bf16 %v769_v51  ;;  %v186_v11 = vrot.slane %v748_v43, %v684_v7  ;;  %v51_v55 = vld [vmem:[%s1123_s0 + $0x118] sm:$0xff] }
  0x10   :  { %v805_v12 = vrot.slane %v178_v52, %v682_v6  ;;  %v476_v13 = vmul.f32 %v773_v53, %v57_v47  ;;  %v65_v15 = vunpack.c.h.bf16 %v769_v51  ;;  %v66_v16 = vunpack.c.l.bf16 %v780_v59 }
  0x11   :  { %v545_v14 = vadd.f32 %v544_v63, %v474_v54  ;;  %v67_v17 = vunpack.c.h.bf16 %v780_v59  ;;  %v811_v21 = vunpack.c.h.bf16 %v125_v35  ;;  %v190_v23 = vrot.slane %v748_v43, %v686_v8 }
  0x12   :  { %v819_v24 = vrot.slane %v182_v60, %v682_v6  ;;  %v477_v25 = vmul.f32 %v785_v61, %v58_v56  ;;  %v68_v30 = vunpack.c.l.bf16 %v795_v4  ;;  %v69_v32 = vunpack.c.h.bf16 %v795_v4 }
  0x13   :  { %v546_v28 = vadd.f32 %v545_v14, %v475_v62  ;;  %v828_v33 = vunpack.c.l.bf16 %v800_v10  ;;  %v194_v34 = vrot.slane %v748_v43, %v688_v9  ;;  %v833_v35 = vrot.slane %v186_v11, %v682_v6 }
  0x14   :  { %v478_v36 = vmul.f32 %v805_v12, %v59_v57  ;;  %v88_v40 = vunpack.c.l.bf16 %v34_v22  ;;  %v198_v41 = vrot.slane %v811_v21, %v682_v6  ;;  %v89_v44 = vunpack.c.h.bf16 %v34_v22 }
  0x15   :  { %v547_v38 = vadd.f32 %v546_v28, %v476_v13  ;;  %v90_v43 = vunpack.c.l.bf16 %v35_v29  ;;  %v91_v46 = vunpack.c.h.bf16 %v35_v29  ;;  %v278_v47 = vrot.slane %v680_v5, %v682_v6 }
  0x16   :  { %v847_v50 = vrot.slane %v190_v23, %v682_v6  ;;  %v479_v52 = vmul.f32 %v819_v24, %v60_v58  ;;  %v202_v56 = vrot.slane %v811_v21, %v684_v7  ;;  %v206_v57 = vrot.slane %v811_v21, %v686_v8 }
  0x17   :  { %v548_v54 = vadd.f32 %v547_v38, %v477_v25  ;;  %v858_v60 = vrot.slane %v194_v34, %v682_v6  ;;  %v92_v5 = vunpack.c.l.bf16 %v36_v39  ;;  %v480_v62 = vmul.f32 %v833_v35, %v61_v0 }
  0x18   :  { %v120_v11 = vunpack.c.l.bf16 %v50_v42  ;;  %v121_v58 = vunpack.c.h.bf16 %v50_v42  ;;  %v122_v13 = vunpack.c.l.bf16 %v51_v55  ;;  %v123_v14 = vunpack.c.h.bf16 %v51_v55 }
  0x19   :  { %v549_v63 = vadd.f32 %v548_v54, %v478_v36  ;;  %v507_v22 = vmul.f32 %v719_v26, %v88_v40  ;;  %v508_v23 = vmul.f32 %v722_v27, %v89_v44  ;;  %v864_v25 = vrot.slane %v198_v41, %v682_v6  ;;  %v879_v27 = vld [vmem:[%s1123_s0 + $0x48] sm:$0xff] }
  0x1a   :  { %v867_v28 = vrot.slane %v278_v47, %v682_v6  ;;  %v481_v29 = vmul.f32 %v847_v50, %v62_v1  ;;  %v210_v0 = vrot.slane %v811_v21, %v688_v9  ;;  %v873_v36 = vrot.slane %v202_v56, %v682_v6  ;;  %v37_v1 = vld [vmem:[%s1123_s0 + $0xa8] sm:$0xff] }
  0x1b   :  { %v550_v34 = vadd.f32 %v549_v63, %v479_v52  ;;  %v93_v38 = vunpack.c.h.bf16 %v36_v39  ;;  %v509_v26 = vmul.f32 %v729_v31, %v90_v43  ;;  %v482_v40 = vmul.f32 %v858_v60, %v63_v2 }
  0x1c   :  { %v510_v21 = vmul.f32 %v736_v37, %v91_v46  ;;  %v887_v42 = vmul.f32 %v867_v28, %v120_v11  ;;  %v890_v39 = vmul.f32 %v703_v18, %v121_v58  ;;  %v893_v31 = vmul.f32 %v706_v19, %v122_v13  ;;  %v926_v58 = vld [vmem:[%s1123_s0 + $0x50] sm:$0xff] }
  0x1d   :  { %v551_v41 = vadd.f32 %v550_v34, %v480_v62  ;;  %v896_v44 = vmul.f32 %v709_v20, %v123_v14  ;;  %v580_v2 = vadd.f32 %v508_v23, %v507_v22  ;;  %v214_v43 = vrot.slane %v828_v33, %v682_v6 }
  0x1e   :  { %v901_v47 = vrot.slane %v206_v57, %v682_v6  ;;  %v483_v37 = vmul.f32 %v864_v25, %v64_v3  ;;  %v70_v52 = vunpack.c.l.bf16 %v879_v27  ;;  %v94_v54 = vunpack.c.l.bf16 %v37_v1  ;;  %v38_v3 = vld [vmem:[%s1123_s0 + $0xb0] sm:$0xff] }
  0x1f   :  { %v552_v46 = vadd.f32 %v551_v41, %v481_v29  ;;  %v511_v19 = vmul.f32 %v752_v45, %v92_v5  ;;  %v581_v55 = vadd.f32 %v580_v2, %v509_v26  ;;  %v218_v20 = vrot.slane %v828_v33, %v684_v7 }
  0x20   :  { %v911_v56 = vrot.slane %v210_v0, %v682_v6  ;;  %v484_v57 = vmul.f32 %v873_v36, %v65_v15  ;;  %v920_v63 = vunpack.c.h.bf16 %v800_v10  ;;  %v95_v45 = vunpack.c.h.bf16 %v37_v1 }
  0x21   :  { %v553_v62 = vadd.f32 %v552_v46, %v482_v40  ;;  %v512_v5 = vmul.f32 %v773_v53, %v93_v38  ;;  %v582_v11 = vadd.f32 %v581_v55, %v510_v21  ;;  %v222_v51 = vrot.slane %v828_v33, %v686_v8 }
  0x22   :  { %v931_v15 = vrot.slane %v214_v43, %v682_v6  ;;  %v485_v10 = vmul.f32 %v901_v47, %v66_v16  ;;  %v71_v14 = vunpack.c.h.bf16 %v879_v27  ;;  %v96_v53 = vunpack.c.l.bf16 %v38_v3  ;;  %v39_v16 = vld [vmem:[%s1123_s0 + $0xb8] sm:$0xff] }
  0x23   :  { %v554_v13 = vadd.f32 %v553_v62, %v483_v37  ;;  %v513_v22 = vmul.f32 %v785_v61, %v94_v54  ;;  %v583_v23 = vadd.f32 %v582_v11, %v511_v19  ;;  %v226_v29 = vrot.slane %v828_v33, %v688_v9  ;;  %v127_v33 = vld [vmem:[%s1122_s1 + $0x18] sm:$0xff] }
  0x24   :  { %v941_v34 = vrot.slane %v218_v20, %v682_v6  ;;  %v486_v0 = vmul.f32 %v911_v56, %v67_v17  ;;  %v72_v26 = vunpack.c.l.bf16 %v926_v58  ;;  %v97_v27 = vunpack.c.h.bf16 %v38_v3  ;;  %v27_v37 = vld [vmem:[%s1123_s0 + $0x58] sm:$0xff] }
  0x25   :  { %v555_v38 = vadd.f32 %v554_v13, %v484_v57  ;;  %v514_v61 = vmul.f32 %v805_v12, %v95_v45  ;;  %v584_v40 = vadd.f32 %v583_v23, %v512_v5  ;;  %v230_v59 = vrot.slane %v920_v63, %v682_v6 }
  0x26   :  { %v957_v17 = vrot.slane %v222_v51, %v682_v6  ;;  %v487_v41 = vmul.f32 %v931_v15, %v68_v30  ;;  %v73_v21 = vunpack.c.h.bf16 %v926_v58  ;;  %v98_v2 = vunpack.c.l.bf16 %v39_v16 }
  0x27   :  { %v556_v1 = vadd.f32 %v555_v38, %v485_v10  ;;  %v515_v12 = vmul.f32 %v819_v24, %v96_v53  ;;  %v585_v43 = vadd.f32 %v584_v40, %v513_v22  ;;  %v234_v46 = vrot.slane %v920_v63, %v684_v7  ;;  %v40_v24 = vld [vmem:[%s1123_s0 + $0xc0] sm:$0xff] }
  0x28   :  { %v970_v54 = vrot.slane %v226_v29, %v682_v6  ;;  %v488_v30 = vmul.f32 %v941_v34, %v69_v32  ;;  %v978_v55 = vunpack.c.l.bf16 %v127_v33  ;;  %v99_v20 = vunpack.c.h.bf16 %v39_v16  ;;  %v28_v10 = vld [vmem:[%s1123_s0 + $0x60] sm:$0xff] }
  0x29   :  { %v557_v19 = vadd.f32 %v556_v1, %v486_v0  ;;  %v516_v57 = vmul.f32 %v833_v35, %v97_v27  ;;  %v586_v62 = vadd.f32 %v585_v43, %v514_v61  ;;  %v238_v3 = vrot.slane %v920_v63, %v686_v8 }
  0x2a   :  { %v984_v45 = vrot.slane %v230_v59, %v682_v6  ;;  %v489_v4 = vmul.f32 %v957_v17, %v70_v52  ;;  %v74_v5 = vunpack.c.l.bf16 %v27_v37  ;;  %v100_v11 = vunpack.c.l.bf16 %v40_v24  ;;  %v41_v52 = vld [vmem:[%s1123_s0 + $0xc8] sm:$0xff] }
  0x2b   :  { %v558_v32 = vadd.f32 %v557_v19, %v487_v41  ;;  %v517_v58 = vmul.f32 %v847_v50, %v98_v2  ;;  %v587_v51 = vadd.f32 %v586_v62, %v515_v12  ;;  %v242_v35 = vrot.slane %v920_v63, %v688_v9  ;;  %v42_v12 = vld [vmem:[%s1123_s0 + $0xd0] sm:$0xff] }
  0x2c   :  { %v994_v13 = vrot.slane %v234_v46, %v682_v6  ;;  %v490_v53 = vmul.f32 %v970_v54, %v71_v14  ;;  %v75_v23 = vunpack.c.h.bf16 %v27_v37  ;;  %v101_v50 = vunpack.c.h.bf16 %v40_v24  ;;  %v29_v46 = vld [vmem:[%s1123_s0 + $0x68] sm:$0xff] }
  0x2d   :  { %v559_v22 = vadd.f32 %v558_v32, %v488_v30  ;;  %v518_v29 = vmul.f32 %v858_v60, %v99_v20  ;;  %v588_v0 = vadd.f32 %v587_v51, %v516_v57  ;;  %v246_v38 = vrot.slane %v978_v55, %v682_v6 }
  0x2e   :  { %v1004_v63 = vrot.slane %v238_v3, %v682_v6  ;;  %v491_v16 = vmul.f32 %v984_v45, %v72_v26  ;;  %v76_v14 = vunpack.c.l.bf16 %v28_v10  ;;  %v102_v61 = vunpack.c.l.bf16 %v41_v52 }
  0x2f   :  { %v560_v27 = vadd.f32 %v559_v22, %v489_v4  ;;  %v519_v40 = vmul.f32 %v864_v25, %v100_v11  ;;  %v589_v59 = vadd.f32 %v588_v0, %v517_v58  ;;  %v250_v41 = vrot.slane %v978_v55, %v684_v7  ;;  %v43_v11 = vld [vmem:[%s1123_s0 + $0xd8] sm:$0xff] }
  0x30   :  { %v1011_v60 = vrot.slane %v242_v35, %v682_v6  ;;  %v492_v1 = vmul.f32 %v994_v13, %v73_v21  ;;  %v1017_v26 = vunpack.c.h.bf16 %v127_v33  ;;  %v103_v43 = vunpack.c.h.bf16 %v41_v52 }
  0x31   :  { %v561_v2 = vadd.f32 %v560_v27, %v490_v53  ;;  %v520_v37 = vmul.f32 %v873_v36, %v101_v50  ;;  %v590_v25 = vadd.f32 %v589_v59, %v518_v29  ;;  %v254_v30 = vrot.slane %v978_v55, %v686_v8  ;;  %v44_v27 = vld [vmem:[%s1123_s0 + $0xe0] sm:$0xff] }
  0x32   :  { %v1026_v21 = vrot.slane %v246_v38, %v682_v6  ;;  %v493_v19 = vmul.f32 %v1004_v63, %v74_v5  ;;  %v77_v20 = vunpack.c.h.bf16 %v28_v10  ;;  %v104_v33 = vunpack.c.l.bf16 %v42_v12 }
  0x33   :  { %v562_v24 = vadd.f32 %v561_v2, %v491_v16  ;;  %v521_v57 = vmul.f32 %v901_v47, %v102_v61  ;;  %v591_v62 = vadd.f32 %v590_v25, %v519_v40  ;;  %v258_v36 = vrot.slane %v978_v55, %v688_v9  ;;  %v30_v47 = vld [vmem:[%s1123_s0 + $0x70] sm:$0xff]  ;;  %v31_v2 = vld [vmem:[%s1123_s0 + $0x78] sm:$0xff] }
  0x34   :  { %v1033_v3 = vrot.slane %v250_v41, %v682_v6  ;;  %v494_v4 = vmul.f32 %v1011_v60, %v75_v23  ;;  %v78_v5 = vunpack.c.l.bf16 %v29_v46  ;;  %v105_v58 = vunpack.c.h.bf16 %v42_v12 }
  0x35   :  { %v563_v32 = vadd.f32 %v562_v24, %v492_v1  ;;  %v522_v51 = vmul.f32 %v911_v56, %v103_v43  ;;  %v592_v10 = vadd.f32 %v591_v62, %v520_v37  ;;  %v262_v55 = vrot.slane %v1017_v26, %v682_v6 }
  0x36   :  { %v1046_v35 = vrot.slane %v254_v30, %v682_v6  ;;  %v495_v53 = vmul.f32 %v1026_v21, %v76_v14  ;;  %v79_v52 = vunpack.c.h.bf16 %v29_v46  ;;  %v106_v23 = vunpack.c.l.bf16 %v43_v11 }
  0x37   :  { %v564_v22 = vadd.f32 %v563_v32, %v493_v19  ;;  %v523_v50 = vmul.f32 %v931_v15, %v104_v33  ;;  %v593_v29 = vadd.f32 %v592_v10, %v521_v57  ;;  %v266_v56 = vrot.slane %v1017_v26, %v684_v7  ;;  %v45_v19 = vld [vmem:[%s1123_s0 + $0xe8] sm:$0xff] }
  0x38   :  { %v1053_v0 = vrot.slane %v258_v36, %v682_v6  ;;  %v496_v38 = vmul.f32 %v1033_v3, %v77_v20  ;;  %v80_v14 = vunpack.c.l.bf16 %v30_v47  ;;  %v107_v61 = vunpack.c.h.bf16 %v43_v11 }
  0x39   :  { %v565_v16 = vadd.f32 %v564_v22, %v494_v4  ;;  %v524_v40 = vmul.f32 %v941_v34, %v105_v58  ;;  %v594_v59 = vadd.f32 %v593_v29, %v522_v51  ;;  %v270_v15 = vrot.slane %v1017_v26, %v686_v8  ;;  %v46_v51 = vld [vmem:[%s1123_s0 + $0xf0] sm:$0xff] }
  0x3a   :  { %v1063_v7 = vrot.slane %v262_v55, %v682_v6  ;;  %v497_v41 = vmul.f32 %v1046_v35, %v78_v5  ;;  %v81_v12 = vunpack.c.h.bf16 %v30_v47  ;;  %v108_v43 = vunpack.c.l.bf16 %v44_v27 }
  0x3b   :  { %v566_v1 = vadd.f32 %v565_v16, %v495_v53  ;;  %v525_v37 = vmul.f32 %v957_v17, %v106_v23  ;;  %v595_v25 = vadd.f32 %v594_v59, %v523_v50  ;;  %v274_v34 = vrot.slane %v1017_v26, %v688_v9  ;;  %v32_v9 = vld [vmem:[%s1123_s0 + $0x80] sm:$0xff] }
  0x3c   :  { %v446_v8 = vrot.slane %v266_v56, %v682_v6  ;;  %v498_v46 = vmul.f32 %v1053_v0, %v79_v52  ;;  %v109_v24 = vunpack.c.h.bf16 %v44_v27  ;;  %v526_v20 = vmul.f32 %v970_v54, %v107_v61 }
  0x3d   :  { %v567_v30 = vadd.f32 %v566_v1, %v496_v38  ;;  %v596_v33 = vadd.f32 %v595_v25, %v524_v40  ;;  %v82_v57 = vunpack.c.l.bf16 %v31_v2  ;;  %v450_v17 = vrot.slane %v270_v15, %v682_v6  ;;  %v47_v38 = vld [vmem:[%s1123_s0 + $0xf8] sm:$0xff]  ;;  %v48_v1 = vld [vmem:[%s1123_s0 + $0x100] sm:$0xff] }
  0x3e   :  { %v499_v62 = vmul.f32 %v1063_v7, %v80_v14  ;;  %v110_v26 = vunpack.c.l.bf16 %v45_v19  ;;  %v527_v4 = vmul.f32 %v984_v45, %v108_v43  ;;  %v83_v11 = vunpack.c.h.bf16 %v31_v2 }
  0x3f   :  { %v568_v36 = vadd.f32 %v567_v30, %v497_v41  ;;  %v597_v32 = vadd.f32 %v596_v33, %v525_v37  ;;  %v454_v5 = vrot.slane %v274_v34, %v682_v6  ;;  %v500_v58 = vmul.f32 %v446_v8, %v81_v12 }
  0x40   :  { %v111_v10 = vunpack.c.h.bf16 %v45_v19  ;;  %v528_v47 = vmul.f32 %v994_v13, %v109_v24  ;;  %v84_v53 = vunpack.c.l.bf16 %v32_v9  ;;  %v501_v22 = vmul.f32 %v450_v17, %v82_v57 }
  0x41   :  { %v569_v54 = vadd.f32 %v568_v36, %v498_v46  ;;  %v598_v55 = vadd.f32 %v597_v32, %v526_v20  ;;  %v112_v23 = vunpack.c.l.bf16 %v46_v51  ;;  %v529_v45 = vmul.f32 %v1004_v63, %v110_v26 }
  0x42   :  { %v85_v29 = vunpack.c.h.bf16 %v32_v9  ;;  %v502_v56 = vmul.f32 %v454_v5, %v83_v11  ;;  %v113_v16 = vunpack.c.h.bf16 %v46_v51  ;;  %v530_v27 = vmul.f32 %v1011_v60, %v111_v10 }
  0x43   :  { %v570_v52 = vadd.f32 %v569_v54, %v499_v62  ;;  %v599_v50 = vadd.f32 %v598_v55, %v527_v4  ;;  %v503_v13 = vmul.f32 %v867_v28, %v84_v53  ;;  %v114_v40 = vunpack.c.l.bf16 %v47_v38 }
  0x44   :  { %v531_v59 = vmul.f32 %v1026_v21, %v112_v23  ;;  %v504_v63 = vmul.f32 %v703_v18, %v85_v29  ;;  %v115_v2 = vunpack.c.h.bf16 %v47_v38  ;;  %v532_v12 = vmul.f32 %v1033_v3, %v113_v16  ;;  %v49_v21 = vld [vmem:[%s1123_s0 + $0x108] sm:$0xff] }
  0x45   :  { %v571_v6 = vadd.f32 %v570_v52, %v500_v58  ;;  %v600_v14 = vadd.f32 %v599_v50, %v528_v47  ;;  %v116_v37 = vunpack.c.l.bf16 %v48_v1  ;;  %v533_v28 = vmul.f32 %v1046_v35, %v114_v40 }
  0x46   :  { %v117_v18 = vunpack.c.h.bf16 %v48_v1  ;;  %v534_v46 = vmul.f32 %v1053_v0, %v115_v2  ;;  %v118_v24 = vunpack.c.l.bf16 %v49_v21  ;;  %v119_v57 = vunpack.c.h.bf16 %v49_v21 }
  0x47   :  { %v572_v61 = vadd.f32 %v571_v6, %v501_v22  ;;  %v601_v15 = vadd.f32 %v600_v14, %v529_v45  ;;  %v535_v3 = vmul.f32 %v1063_v7, %v116_v37 }
  0x48   :  { %v536_v35 = vmul.f32 %v446_v8, %v117_v18  ;;  %v537_v36 = vmul.f32 %v450_v17, %v118_v24  ;;  %v538_v26 = vmul.f32 %v454_v5, %v119_v57 }
  0x49   :  { %v573_v41 = vadd.f32 %v572_v61, %v502_v56  ;;  %v602_v43 = vadd.f32 %v601_v15, %v530_v27 }
  0x4b   :  { %v574_v60 = vadd.f32 %v573_v41, %v503_v13  ;;  %v603_v25 = vadd.f32 %v602_v43, %v531_v59 }
  0x4d   :  { %v575_v34 = vadd.f32 %v574_v60, %v504_v63  ;;  %v604_v30 = vadd.f32 %v603_v25, %v532_v12 }
  0x4f   :  { %v576_v19 = vadd.f32 %v575_v34, %v756_v48  ;;  %v605_v20 = vadd.f32 %v604_v30, %v533_v28 }
  0x51   :  { %v577_v33 = vadd.f32 %v576_v19, %v759_v49  ;;  %v606_v62 = vadd.f32 %v605_v20, %v534_v46  ;;  %v8_v49 = vstv %s1124_s2 }
  0x52   :  { %9 = vst [vmem:[#allocation2] sm:$0x1] %v8_v49 }
  0x53   :  { %578 = vadd.xlane.f32.xlu0 %v577_v33  ;;  %v607_v9 = vadd.f32 %v606_v62, %v535_v3 }
  0x55   :  { %v608_v4 = vadd.f32 %v607_v9, %v536_v35 }
  0x57   :  { %v609_v32 = vadd.f32 %v608_v4, %v537_v36 }
  0x59   :  { %v610_v11 = vadd.f32 %v609_v32, %v538_v26  ;;  %v645_v8 = vld [vmem:[#allocation2] ss:$0 sm:$0xff] }
  0x5b   :  { %v611_v0 = vadd.f32 %v610_v11, %v887_v42 }
  0x5d   :  { %v612_v48 = vadd.f32 %v611_v0, %v890_v39 }
  0x5f   :  { %v613_v58 = vadd.f32 %v612_v48, %v893_v31 }
  0x61   :  { %v614_v7 = vadd.f32 %v613_v58, %v896_v44 }
  0x63   :  { %615 = vadd.xlane.f32.xlu0 %v614_v7 }
  0xe0   :  { %v579_v17 = vpop.xlane.xlu0 %578 }
  0xe1   :  { %v624_v5 = vadd.f32 %v645_v8, %v579_v17 }
  0xe3   :  { %v626_v54 = vsub.f32 0.0, %v624_v5 }
  0xe5   :  { %v628_v51 = vmul.f32 1.442695, %v626_v54 }
  0xe7   :  { %646 = vpow2.f32 %v628_v51 }
  0xf0   :  { %v616_v42 = vpop.xlane.xlu0 %615 }
  0xf1   :  { %v647_v10 = vpop.eup %646  ;;  %v625_v47 = vadd.f32 %v645_v8, %v616_v42 }
  0xf2   :  { %v632_v39 = vadd.f32 1.0, %v647_v10 }
  0xf3   :  { %v627_v55 = vsub.f32 0.0, %v625_v47 }
  0xf4   :  { %648 = vrcp.f32 %v632_v39 }
  0xf5   :  { %v630_v31 = vmul.f32 1.442695, %v627_v55 }
  0xf7   :  { %650 = vpow2.f32 %v630_v31 }
  0xfe   :  { %v649_v44 = vpop.eup %648 }
  0xff   :  { %639 = vst.msk [vmem:[%s1125_s3] sm:$0xff] %vm638_vm0, %v649_v44 }
 0x101   :  { %v651_v53 = vpop.eup %650 }
 0x102   :  { %v633_v22 = vadd.f32 1.0, %v651_v53 }
 0x104   :  { %652 = vrcp.f32 %v633_v22 }
 0x10e   :  { %v653_v52 = vpop.eup %652 }
 0x10f   :  { %640 = vst.msk [vmem:[%s1125_s3 + $0x8] sm:$0xff] %vm638_vm0, %v653_v52 }

// kernel: discriminator_forward.8
= control target key start
LH: loop header
LB: loop body
LE: loop exit
PB: predicated region body
PF: predicated region fallthrough
CT: control target
= control target key end

     0   :  { %s5483_s0 = inlined_call_operand.vmem [shape: bf16[16,4096], index: 0, kind: input, shape index: {}]   ;;  %s5484_s1 = inlined_call_operand.vmem [shape: bf16[4096,512], index: 1, kind: input, shape index: {}]   ;;  %s5485_s2 = inlined_call_operand.vmem [shape: f32[1,512], index: 2, kind: input, shape index: {}]   ;;  %s5486_s3 = inlined_call_operand.vmem [shape: bf16[16,512], index: 3, kind: output, shape index: {}]  }
   0x1   :  { %5488 = sst [smem:[#allocation7_spill]] %s5483_s0 }
   0x2   :  { %5489 = sst [smem:[#allocation8_spill]] %s5484_s1 }
   0x3   :  { %s4455_s12 = smov 0   ;;  %s4457_s13 = smov 0  }
   0x4   :  { %s4459_s14 = smov 0   ;;  %s4461_s15 = smov 0  }
   0x5   :  { %s4463_s16 = smov 0   ;;  %s4465_s17 = smov 0  }
   0x6   :  { %s4467_s18 = smov 0   ;;  %s4469_s19 = smov 0  }
   0x7   :  { %s4471_s20 = smov 0   ;;  %s4473_s21 = smov 0  }
   0x8   :  { %s4475_s22 = smov 0  }
   0x9 LB: > { %s3544_s23 = sadd.s32 4294967295, %s4433_s22   ;;  %s25_s24 = sadd.s32 1, %s4425_s20  ;;  %s4433_s22 = sphi %s4475_s22, %s13_s22   ;;  %s4429_s21 = sphi %s4473_s21, %s5506_s21   ;;  %s4425_s20 = sphi %s4471_s20, %s5505_s20   ;;  %s4421_s19 = sphi %s4469_s19, %s5504_s19   ;;  %s4417_s18 = sphi %s4467_s18, %s5503_s18   ;;  %s4413_s17 = sphi %s4465_s17, %s5502_s17   ;;  %s4409_s16 = sphi %s4463_s16, %s5501_s16   ;;  %s4405_s15 = sphi %s4461_s15, %s5500_s15   ;;  %s4401_s14 = sphi %s4459_s14, %s5499_s14   ;;  %s4397_s13 = sphi %s4457_s13, %s5498_s13   ;;  %s4393_s12 = sphi %s4455_s12, %s5497_s12  }
   0xa   : > { %p26_p0 = scmp.ge.s32.totalorder %s25_s24, 2  ;;  %s28_s25 = sadd.s32 1, %s4429_s21 }
   0xb   : > { %s41_s26 = sadd.s32 1, %s4413_s17  ;;  %p48_p1 = scmp.ne.s32.totalorder %s4413_s17, %s4409_s16 }
   0xc   : > { %s5508_s24 = smov (%p26_p0, %s25_s24), 0  ;;  %s5510_s25 = smov (!%p26_p0, %s28_s25), %s4429_s21 }
   0xd   : > { %s37_s27 = ssub.s32 %s4425_s20, %s5508_s24  ;;  %p49_p2 = scmp.eq.s32.totalorder %s4433_s22, 0 }
   0xe   : > { %p30_p3 = scmp.ge.s32.totalorder %s5510_s25, 2  ;;  %p39_p4 = scmp.eq.s32.totalorder %s37_s27, 0 }
   0xf   : > { %p4522_p5 = por %p49_p2, %p48_p1  ;;  %s69_s29 = sadd.s32 1, %s4405_s15 }
  0x10   : > { %s5512_s25 = smov (%p30_p3, %s5510_s25), 0  ;;  %p76_p6 = scmp.ne.s32.totalorder %s4405_s15, %s4401_s14 }
  0x11   : > { %5491 = sst [smem:[#allocation6_spill]] %s5512_s25  ;;  %s65_s4 = ssub.s32 %s4429_s21, %s5512_s25 }
  0x12   : > { %s4530_s30 = scalar_select %p39_p4, %s4413_s17, %s41_s26  }
  0x13   : > { %s66_s5 = sor.u32 %s65_s4, %s37_s27  ;;  %p121_p7 = scmp.eq.s32.totalorder %s65_s4, 0 }
  0x14   : > { %p67_p8 = scmp.eq.s32.totalorder %s66_s5, 0  ;;  %p4536_p9 = por %p76_p6, %p49_p2 }
  0x15   : > { %s123_s7 = sadd.s32 1, %s4397_s13  ;;  %p133_p10 = scmp.ne.s32.totalorder %s4397_s13, %s4393_s12 }
  0x16   : > { %s4544_s8 = scalar_select %p67_p8, %s4405_s15, %s69_s29  }
  0x17   : > { %s4547_s9 = scalar_select %p121_p7, %s4397_s13, %s123_s7  }
  0x18   : > { %p134_p11 = scmp.eq.s32.totalorder %s3544_s23, 3  ;;  %p3547_p13 = scmp.ge.s32.totalorder %s4433_s22, 4 }
  0x1a   : > { %p4549_p12 = por %p134_p11, %p133_p10  ;;  %156 = sbr.rel (%p3547_p13) target bundleno = 189 (0xbd), region = 16 }
  0x21   : > { %159 = sbr.rel (!%p4522_p5) target bundleno = 51 (0x33), region = 20  ;;  %s161_s11 = sand.u32 (%p4522_p5), 1, %s4413_s17  }
  0x22   : > { %s3842_s26 = sshll.u32 (%p4522_p5), %s4425_s20, 6  ;;  %s3548_s27 = sshll.u32 (%p4522_p5), %s161_s11, 7 }
  0x23   : > { %s5494_s0 = sld [smem:[#allocation7_spill]] (%p4522_p5)  ;;  %s163_s23 = scalar_lea.vmem (%p4522_p5), [#allocation3], %s3548_s27 }
  0x29   : > { %s4561_s5 = scalar_lea.vmem %s5494_s0, %s3842_s26 }
  0x2a   : > { %v182_v0 = vld [vmem:[%s4561_s5] sm:$0xff]  ;;  %v184_v1 = vld [vmem:[%s4561_s5 + $0x8] sm:$0xff]  ;;  %v186_v2 = vld [vmem:[%s4561_s5 + $0x10] sm:$0xff] }
  0x2b   : > { %183 = vst [vmem:[%s163_s23] sm:$0xff] %v182_v0  ;;  %185 = vst [vmem:[%s163_s23 + $0x8] sm:$0xff] %v184_v1  ;;  %v188_v3 = vld [vmem:[%s4561_s5 + $0x18] sm:$0xff]  ;;  %v190_v4 = vld [vmem:[%s4561_s5 + $0x20] sm:$0xff] }
  0x2c   : > { %187 = vst [vmem:[%s163_s23 + $0x10] sm:$0xff] %v186_v2  ;;  %v192_v5 = vld [vmem:[%s4561_s5 + $0x28] sm:$0xff]  ;;  %189 = vst [vmem:[%s163_s23 + $0x18] sm:$0xff] %v188_v3  ;;  %v194_v6 = vld [vmem:[%s4561_s5 + $0x30] sm:$0xff] }
  0x2d   : > { %191 = vst [vmem:[%s163_s23 + $0x20] sm:$0xff] %v190_v4  ;;  %193 = vst [vmem:[%s163_s23 + $0x28] sm:$0xff] %v192_v5  ;;  %v196_v7 = vld [vmem:[%s4561_s5 + $0x38] sm:$0xff]  ;;  %v198_v8 = vld [vmem:[%s4561_s5 + $0x80] sm:$0xff] }
  0x2e   : > { %195 = vst [vmem:[%s163_s23 + $0x30] sm:$0xff] %v194_v6  ;;  %197 = vst [vmem:[%s163_s23 + $0x38] sm:$0xff] %v196_v7  ;;  %v200_v9 = vld [vmem:[%s4561_s5 + $0x88] sm:$0xff]  ;;  %v202_v10 = vld [vmem:[%s4561_s5 + $0x90] sm:$0xff] }
  0x2f   : > { %199 = vst [vmem:[%s163_s23 + $0x40] sm:$0xff] %v198_v8  ;;  %v204_v11 = vld [vmem:[%s4561_s5 + $0x98] sm:$0xff]  ;;  %201 = vst [vmem:[%s163_s23 + $0x48] sm:$0xff] %v200_v9  ;;  %v206_v12 = vld [vmem:[%s4561_s5 + $0xa0] sm:$0xff] }
  0x30   : > { %203 = vst [vmem:[%s163_s23 + $0x50] sm:$0xff] %v202_v10  ;;  %205 = vst [vmem:[%s163_s23 + $0x58] sm:$0xff] %v204_v11  ;;  %v208_v13 = vld [vmem:[%s4561_s5 + $0xa8] sm:$0xff]  ;;  %v210_v14 = vld [vmem:[%s4561_s5 + $0xb0] sm:$0xff] }
  0x31   : > { %207 = vst [vmem:[%s163_s23 + $0x60] sm:$0xff] %v206_v12  ;;  %209 = vst [vmem:[%s163_s23 + $0x68] sm:$0xff] %v208_v13  ;;  %v212_v15 = vld [vmem:[%s4561_s5 + $0xb8] sm:$0xff] }
  0x32   : > { %211 = vst [vmem:[%s163_s23 + $0x70] sm:$0xff] %v210_v14  ;;  %213 = vst [vmem:[%s163_s23 + $0x78] sm:$0xff] %v212_v15 }
  0x33 PF: > { %219 = sbr.rel (!%p4536_p9) target bundleno = 189 (0xbd), region = 43  ;;  %s221_s28 = sand.u32 (%p4536_p9), 1, %s4405_s15  }
  0x34   : > { %s3553_s7 = sshll.u32 (%p4536_p9), %s4429_s21, 1  ;;  %s3551_s11 = sshll.u32 (%p4536_p9), %s221_s28, 11 }
  0x35   : > { %s3843_s26 = sshll.u32 (%p4536_p9), %s4425_s20, 10  ;;  %s5495_s1 = sld [smem:[#allocation8_spill]] (%p4536_p9) }
  0x36   : > { %s227_s27 = sadd.s32 (%p4536_p9), %s3843_s26, %s3553_s7  ;;  %s4592_s6 = scalar_lea.vmem (%p4536_p9), [#allocation4], %s3551_s11 }
  0x37   : > { %s3555_s29 = sshll.u32 (%p4536_p9), %s227_s27, 2 }
  0x3b   : > { %s4587_s25 = scalar_lea.vmem %s5495_s1, %s3555_s29 }
  0x3c   : > { %v767_v16 = vld [vmem:[%s4587_s25] sm:$0xff]  ;;  %v769_v17 = vld [vmem:[%s4587_s25 + $0x10] sm:$0xff] }
  0x3d   : > { %v771_v18 = vld [vmem:[%s4587_s25 + $0x20] sm:$0xff]  ;;  %768 = vst [vmem:[%s4592_s6] sm:$0xff] %v767_v16  ;;  %770 = vst [vmem:[%s4592_s6 + $0x8] sm:$0xff] %v769_v17  ;;  %v773_v19 = vld [vmem:[%s4587_s25 + $0x30] sm:$0xff] }
  0x3e   : > { %772 = vst [vmem:[%s4592_s6 + $0x10] sm:$0xff] %v771_v18  ;;  %v775_v20 = vld [vmem:[%s4587_s25 + $0x40] sm:$0xff]  ;;  %v777_v21 = vld [vmem:[%s4587_s25 + $0x50] sm:$0xff]  ;;  %774 = vst [vmem:[%s4592_s6 + $0x18] sm:$0xff] %v773_v19 }
  0x3f   : > { %776 = vst [vmem:[%s4592_s6 + $0x20] sm:$0xff] %v775_v20  ;;  %778 = vst [vmem:[%s4592_s6 + $0x28] sm:$0xff] %v777_v21  ;;  %v779_v22 = vld [vmem:[%s4587_s25 + $0x60] sm:$0xff]  ;;  %v781_v23 = vld [vmem:[%s4587_s25 + $0x70] sm:$0xff] }
  0x40   : > { %v783_v24 = vld [vmem:[%s4587_s25 + $0x80] sm:$0xff]  ;;  %780 = vst [vmem:[%s4592_s6 + $0x30] sm:$0xff] %v779_v22  ;;  %782 = vst [vmem:[%s4592_s6 + $0x38] sm:$0xff] %v781_v23  ;;  %v785_v25 = vld [vmem:[%s4587_s25 + $0x90] sm:$0xff] }
  0x41   : > { %784 = vst [vmem:[%s4592_s6 + $0x40] sm:$0xff] %v783_v24  ;;  %v787_v26 = vld [vmem:[%s4587_s25 + $0xa0] sm:$0xff]  ;;  %v789_v27 = vld [vmem:[%s4587_s25 + $0xb0] sm:$0xff]  ;;  %786 = vst [vmem:[%s4592_s6 + $0x48] sm:$0xff] %v785_v25 }
  0x42   : > { %788 = vst [vmem:[%s4592_s6 + $0x50] sm:$0xff] %v787_v26  ;;  %790 = vst [vmem:[%s4592_s6 + $0x58] sm:$0xff] %v789_v27  ;;  %v791_v28 = vld [vmem:[%s4587_s25 + $0xc0] sm:$0xff]  ;;  %v793_v29 = vld [vmem:[%s4587_s25 + $0xd0] sm:$0xff] }
  0x43   : > { %v795_v30 = vld [vmem:[%s4587_s25 + $0xe0] sm:$0xff]  ;;  %792 = vst [vmem:[%s4592_s6 + $0x60] sm:$0xff] %v791_v28  ;;  %794 = vst [vmem:[%s4592_s6 + $0x68] sm:$0xff] %v793_v29  ;;  %v797_v31 = vld [vmem:[%s4587_s25 + $0xf0] sm:$0xff] }
  0x44   : > { %796 = vst [vmem:[%s4592_s6 + $0x70] sm:$0xff] %v795_v30  ;;  %v799_v32 = vld [vmem:[%s4587_s25 + $0x100] sm:$0xff]  ;;  %v801_v33 = vld [vmem:[%s4587_s25 + $0x110] sm:$0xff]  ;;  %798 = vst [vmem:[%s4592_s6 + $0x78] sm:$0xff] %v797_v31 }
  0x45   : > { %800 = vst [vmem:[%s4592_s6 + $0x80] sm:$0xff] %v799_v32  ;;  %802 = vst [vmem:[%s4592_s6 + $0x88] sm:$0xff] %v801_v33  ;;  %v803_v34 = vld [vmem:[%s4587_s25 + $0x120] sm:$0xff]  ;;  %v805_v35 = vld [vmem:[%s4587_s25 + $0x130] sm:$0xff] }
  0x46   : > { %v807_v36 = vld [vmem:[%s4587_s25 + $0x140] sm:$0xff]  ;;  %804 = vst [vmem:[%s4592_s6 + $0x90] sm:$0xff] %v803_v34  ;;  %806 = vst [vmem:[%s4592_s6 + $0x98] sm:$0xff] %v805_v35  ;;  %v809_v37 = vld [vmem:[%s4587_s25 + $0x150] sm:$0xff] }
  0x47   : > { %808 = vst [vmem:[%s4592_s6 + $0xa0] sm:$0xff] %v807_v36  ;;  %v811_v38 = vld [vmem:[%s4587_s25 + $0x160] sm:$0xff]  ;;  %v813_v39 = vld [vmem:[%s4587_s25 + $0x170] sm:$0xff]  ;;  %810 = vst [vmem:[%s4592_s6 + $0xa8] sm:$0xff] %v809_v37 }
  0x48   : > { %812 = vst [vmem:[%s4592_s6 + $0xb0] sm:$0xff] %v811_v38  ;;  %814 = vst [vmem:[%s4592_s6 + $0xb8] sm:$0xff] %v813_v39  ;;  %v815_v40 = vld [vmem:[%s4587_s25 + $0x180] sm:$0xff]  ;;  %v817_v41 = vld [vmem:[%s4587_s25 + $0x190] sm:$0xff] }
  0x49   : > { %v819_v42 = vld [vmem:[%s4587_s25 + $0x1a0] sm:$0xff]  ;;  %816 = vst [vmem:[%s4592_s6 + $0xc0] sm:$0xff] %v815_v40  ;;  %818 = vst [vmem:[%s4592_s6 + $0xc8] sm:$0xff] %v817_v41  ;;  %v821_v43 = vld [vmem:[%s4587_s25 + $0x1b0] sm:$0xff] }
  0x4a   : > { %820 = vst [vmem:[%s4592_s6 + $0xd0] sm:$0xff] %v819_v42  ;;  %v823_v44 = vld [vmem:[%s4587_s25 + $0x1c0] sm:$0xff]  ;;  %v825_v45 = vld [vmem:[%s4587_s25 + $0x1d0] sm:$0xff]  ;;  %822 = vst [vmem:[%s4592_s6 + $0xd8] sm:$0xff] %v821_v43 }
  0x4b   : > { %824 = vst [vmem:[%s4592_s6 + $0xe0] sm:$0xff] %v823_v44  ;;  %826 = vst [vmem:[%s4592_s6 + $0xe8] sm:$0xff] %v825_v45  ;;  %v827_v46 = vld [vmem:[%s4587_s25 + $0x1e0] sm:$0xff]  ;;  %v829_v47 = vld [vmem:[%s4587_s25 + $0x1f0] sm:$0xff] }
  0x4c   : > { %v831_v48 = vld [vmem:[%s4587_s25 + $0x200] sm:$0xff]  ;;  %828 = vst [vmem:[%s4592_s6 + $0xf0] sm:$0xff] %v827_v46  ;;  %830 = vst [vmem:[%s4592_s6 + $0xf8] sm:$0xff] %v829_v47  ;;  %v833_v49 = vld [vmem:[%s4587_s25 + $0x210] sm:$0xff] }
  0x4d   : > { %832 = vst [vmem:[%s4592_s6 + $0x100] sm:$0xff] %v831_v48  ;;  %v835_v50 = vld [vmem:[%s4587_s25 + $0x220] sm:$0xff]  ;;  %v837_v51 = vld [vmem:[%s4587_s25 + $0x230] sm:$0xff]  ;;  %834 = vst [vmem:[%s4592_s6 + $0x108] sm:$0xff] %v833_v49 }
  0x4e   : > { %836 = vst [vmem:[%s4592_s6 + $0x110] sm:$0xff] %v835_v50  ;;  %838 = vst [vmem:[%s4592_s6 + $0x118] sm:$0xff] %v837_v51  ;;  %v839_v52 = vld [vmem:[%s4587_s25 + $0x240] sm:$0xff]  ;;  %v841_v53 = vld [vmem:[%s4587_s25 + $0x250] sm:$0xff] }
  0x4f   : > { %v843_v54 = vld [vmem:[%s4587_s25 + $0x260] sm:$0xff]  ;;  %840 = vst [vmem:[%s4592_s6 + $0x120] sm:$0xff] %v839_v52  ;;  %842 = vst [vmem:[%s4592_s6 + $0x128] sm:$0xff] %v841_v53  ;;  %v845_v55 = vld [vmem:[%s4587_s25 + $0x270] sm:$0xff] }
  0x50   : > { %844 = vst [vmem:[%s4592_s6 + $0x130] sm:$0xff] %v843_v54  ;;  %v847_v56 = vld [vmem:[%s4587_s25 + $0x280] sm:$0xff]  ;;  %v849_v57 = vld [vmem:[%s4587_s25 + $0x290] sm:$0xff]  ;;  %846 = vst [vmem:[%s4592_s6 + $0x138] sm:$0xff] %v845_v55 }
  0x51   : > { %848 = vst [vmem:[%s4592_s6 + $0x140] sm:$0xff] %v847_v56  ;;  %850 = vst [vmem:[%s4592_s6 + $0x148] sm:$0xff] %v849_v57  ;;  %v851_v58 = vld [vmem:[%s4587_s25 + $0x2a0] sm:$0xff]  ;;  %v853_v59 = vld [vmem:[%s4587_s25 + $0x2b0] sm:$0xff] }
  0x52   : > { %v855_v60 = vld [vmem:[%s4587_s25 + $0x2c0] sm:$0xff]  ;;  %852 = vst [vmem:[%s4592_s6 + $0x150] sm:$0xff] %v851_v58  ;;  %854 = vst [vmem:[%s4592_s6 + $0x158] sm:$0xff] %v853_v59  ;;  %v857_v61 = vld [vmem:[%s4587_s25 + $0x2d0] sm:$0xff] }
  0x53   : > { %856 = vst [vmem:[%s4592_s6 + $0x160] sm:$0xff] %v855_v60  ;;  %v859_v62 = vld [vmem:[%s4587_s25 + $0x2e0] sm:$0xff]  ;;  %v861_v63 = vld [vmem:[%s4587_s25 + $0x2f0] sm:$0xff]  ;;  %858 = vst [vmem:[%s4592_s6 + $0x168] sm:$0xff] %v857_v61 }
  0x54   : > { %860 = vst [vmem:[%s4592_s6 + $0x170] sm:$0xff] %v859_v62  ;;  %862 = vst [vmem:[%s4592_s6 + $0x178] sm:$0xff] %v861_v63  ;;  %v863_v0 = vld [vmem:[%s4587_s25 + $0x300] sm:$0xff]  ;;  %v865_v1 = vld [vmem:[%s4587_s25 + $0x310] sm:$0xff] }
  0x55   : > { %v867_v2 = vld [vmem:[%s4587_s25 + $0x320] sm:$0xff]  ;;  %864 = vst [vmem:[%s4592_s6 + $0x180] sm:$0xff] %v863_v0  ;;  %866 = vst [vmem:[%s4592_s6 + $0x188] sm:$0xff] %v865_v1  ;;  %v869_v3 = vld [vmem:[%s4587_s25 + $0x330] sm:$0xff] }
  0x56   : > { %868 = vst [vmem:[%s4592_s6 + $0x190] sm:$0xff] %v867_v2  ;;  %v871_v4 = vld [vmem:[%s4587_s25 + $0x340] sm:$0xff]  ;;  %v873_v5 = vld [vmem:[%s4587_s25 + $0x350] sm:$0xff]  ;;  %870 = vst [vmem:[%s4592_s6 + $0x198] sm:$0xff] %v869_v3 }
  0x57   : > { %872 = vst [vmem:[%s4592_s6 + $0x1a0] sm:$0xff] %v871_v4  ;;  %874 = vst [vmem:[%s4592_s6 + $0x1a8] sm:$0xff] %v873_v5  ;;  %v875_v6 = vld [vmem:[%s4587_s25 + $0x360] sm:$0xff]  ;;  %v877_v7 = vld [vmem:[%s4587_s25 + $0x370] sm:$0xff] }
  0x58   : > { %v879_v8 = vld [vmem:[%s4587_s25 + $0x380] sm:$0xff]  ;;  %876 = vst [vmem:[%s4592_s6 + $0x1b0] sm:$0xff] %v875_v6  ;;  %878 = vst [vmem:[%s4592_s6 + $0x1b8] sm:$0xff] %v877_v7  ;;  %v881_v9 = vld [vmem:[%s4587_s25 + $0x390] sm:$0xff] }
  0x59   : > { %880 = vst [vmem:[%s4592_s6 + $0x1c0] sm:$0xff] %v879_v8  ;;  %v883_v10 = vld [vmem:[%s4587_s25 + $0x3a0] sm:$0xff]  ;;  %v885_v11 = vld [vmem:[%s4587_s25 + $0x3b0] sm:$0xff]  ;;  %882 = vst [vmem:[%s4592_s6 + $0x1c8] sm:$0xff] %v881_v9 }
  0x5a   : > { %884 = vst [vmem:[%s4592_s6 + $0x1d0] sm:$0xff] %v883_v10  ;;  %886 = vst [vmem:[%s4592_s6 + $0x1d8] sm:$0xff] %v885_v11  ;;  %v887_v12 = vld [vmem:[%s4587_s25 + $0x3c0] sm:$0xff]  ;;  %v889_v13 = vld [vmem:[%s4587_s25 + $0x3d0] sm:$0xff] }
  0x5b   : > { %v891_v14 = vld [vmem:[%s4587_s25 + $0x3e0] sm:$0xff]  ;;  %888 = vst [vmem:[%s4592_s6 + $0x1e0] sm:$0xff] %v887_v12  ;;  %890 = vst [vmem:[%s4592_s6 + $0x1e8] sm:$0xff] %v889_v13  ;;  %v893_v15 = vld [vmem:[%s4587_s25 + $0x3f0] sm:$0xff] }
  0x5c   : > { %892 = vst [vmem:[%s4592_s6 + $0x1f0] sm:$0xff] %v891_v14  ;;  %v895_v16 = vld [vmem:[%s4587_s25 + $0x400] sm:$0xff]  ;;  %v897_v17 = vld [vmem:[%s4587_s25 + $0x410] sm:$0xff]  ;;  %894 = vst [vmem:[%s4592_s6 + $0x1f8] sm:$0xff] %v893_v15 }
  0x5d   : > { %896 = vst [vmem:[%s4592_s6 + $0x200] sm:$0xff] %v895_v16  ;;  %898 = vst [vmem:[%s4592_s6 + $0x208] sm:$0xff] %v897_v17  ;;  %v899_v18 = vld [vmem:[%s4587_s25 + $0x420] sm:$0xff]  ;;  %v901_v19 = vld [vmem:[%s4587_s25 + $0x430] sm:$0xff] }
  0x5e   : > { %v903_v20 = vld [vmem:[%s4587_s25 + $0x440] sm:$0xff]  ;;  %900 = vst [vmem:[%s4592_s6 + $0x210] sm:$0xff] %v899_v18  ;;  %902 = vst [vmem:[%s4592_s6 + $0x218] sm:$0xff] %v901_v19  ;;  %v905_v21 = vld [vmem:[%s4587_s25 + $0x450] sm:$0xff] }
  0x5f   : > { %904 = vst [vmem:[%s4592_s6 + $0x220] sm:$0xff] %v903_v20  ;;  %v907_v22 = vld [vmem:[%s4587_s25 + $0x460] sm:$0xff]  ;;  %v909_v23 = vld [vmem:[%s4587_s25 + $0x470] sm:$0xff]  ;;  %906 = vst [vmem:[%s4592_s6 + $0x228] sm:$0xff] %v905_v21 }
  0x60   : > { %908 = vst [vmem:[%s4592_s6 + $0x230] sm:$0xff] %v907_v22  ;;  %910 = vst [vmem:[%s4592_s6 + $0x238] sm:$0xff] %v909_v23  ;;  %v911_v24 = vld [vmem:[%s4587_s25 + $0x480] sm:$0xff]  ;;  %v913_v25 = vld [vmem:[%s4587_s25 + $0x490] sm:$0xff] }
  0x61   : > { %v915_v26 = vld [vmem:[%s4587_s25 + $0x4a0] sm:$0xff]  ;;  %912 = vst [vmem:[%s4592_s6 + $0x240] sm:$0xff] %v911_v24  ;;  %914 = vst [vmem:[%s4592_s6 + $0x248] sm:$0xff] %v913_v25  ;;  %v917_v27 = vld [vmem:[%s4587_s25 + $0x4b0] sm:$0xff] }
  0x62   : > { %916 = vst [vmem:[%s4592_s6 + $0x250] sm:$0xff] %v915_v26  ;;  %v919_v28 = vld [vmem:[%s4587_s25 + $0x4c0] sm:$0xff]  ;;  %v921_v29 = vld [vmem:[%s4587_s25 + $0x4d0] sm:$0xff]  ;;  %918 = vst [vmem:[%s4592_s6 + $0x258] sm:$0xff] %v917_v27 }
  0x63   : > { %920 = vst [vmem:[%s4592_s6 + $0x260] sm:$0xff] %v919_v28  ;;  %922 = vst [vmem:[%s4592_s6 + $0x268] sm:$0xff] %v921_v29  ;;  %v923_v30 = vld [vmem:[%s4587_s25 + $0x4e0] sm:$0xff]  ;;  %v925_v31 = vld [vmem:[%s4587_s25 + $0x4f0] sm:$0xff] }
  0x64   : > { %v927_v32 = vld [vmem:[%s4587_s25 + $0x500] sm:$0xff]  ;;  %924 = vst [vmem:[%s4592_s6 + $0x270] sm:$0xff] %v923_v30  ;;  %926 = vst [vmem:[%s4592_s6 + $0x278] sm:$0xff] %v925_v31  ;;  %v929_v33 = vld [vmem:[%s4587_s25 + $0x510] sm:$0xff] }
  0x65   : > { %928 = vst [vmem:[%s4592_s6 + $0x280] sm:$0xff] %v927_v32  ;;  %v931_v34 = vld [vmem:[%s4587_s25 + $0x520] sm:$0xff]  ;;  %v933_v35 = vld [vmem:[%s4587_s25 + $0x530] sm:$0xff]  ;;  %930 = vst [vmem:[%s4592_s6 + $0x288] sm:$0xff] %v929_v33 }
  0x66   : > { %932 = vst [vmem:[%s4592_s6 + $0x290] sm:$0xff] %v931_v34  ;;  %934 = vst [vmem:[%s4592_s6 + $0x298] sm:$0xff] %v933_v35  ;;  %v935_v36 = vld [vmem:[%s4587_s25 + $0x540] sm:$0xff]  ;;  %v937_v37 = vld [vmem:[%s4587_s25 + $0x550] sm:$0xff] }
  0x67   : > { %v939_v38 = vld [vmem:[%s4587_s25 + $0x560] sm:$0xff]  ;;  %936 = vst [vmem:[%s4592_s6 + $0x2a0] sm:$0xff] %v935_v36  ;;  %938 = vst [vmem:[%s4592_s6 + $0x2a8] sm:$0xff] %v937_v37  ;;  %v941_v39 = vld [vmem:[%s4587_s25 + $0x570] sm:$0xff] }
  0x68   : > { %940 = vst [vmem:[%s4592_s6 + $0x2b0] sm:$0xff] %v939_v38  ;;  %v943_v40 = vld [vmem:[%s4587_s25 + $0x580] sm:$0xff]  ;;  %v945_v41 = vld [vmem:[%s4587_s25 + $0x590] sm:$0xff]  ;;  %942 = vst [vmem:[%s4592_s6 + $0x2b8] sm:$0xff] %v941_v39 }
  0x69   : > { %944 = vst [vmem:[%s4592_s6 + $0x2c0] sm:$0xff] %v943_v40  ;;  %946 = vst [vmem:[%s4592_s6 + $0x2c8] sm:$0xff] %v945_v41  ;;  %v947_v42 = vld [vmem:[%s4587_s25 + $0x5a0] sm:$0xff]  ;;  %v949_v43 = vld [vmem:[%s4587_s25 + $0x5b0] sm:$0xff] }
  0x6a   : > { %v951_v44 = vld [vmem:[%s4587_s25 + $0x5c0] sm:$0xff]  ;;  %948 = vst [vmem:[%s4592_s6 + $0x2d0] sm:$0xff] %v947_v42  ;;  %950 = vst [vmem:[%s4592_s6 + $0x2d8] sm:$0xff] %v949_v43  ;;  %v953_v45 = vld [vmem:[%s4587_s25 + $0x5d0] sm:$0xff] }
  0x6b   : > { %952 = vst [vmem:[%s4592_s6 + $0x2e0] sm:$0xff] %v951_v44  ;;  %v955_v46 = vld [vmem:[%s4587_s25 + $0x5e0] sm:$0xff]  ;;  %v957_v47 = vld [vmem:[%s4587_s25 + $0x5f0] sm:$0xff]  ;;  %954 = vst [vmem:[%s4592_s6 + $0x2e8] sm:$0xff] %v953_v45 }
  0x6c   : > { %956 = vst [vmem:[%s4592_s6 + $0x2f0] sm:$0xff] %v955_v46  ;;  %958 = vst [vmem:[%s4592_s6 + $0x2f8] sm:$0xff] %v957_v47  ;;  %v959_v48 = vld [vmem:[%s4587_s25 + $0x600] sm:$0xff]  ;;  %v961_v49 = vld [vmem:[%s4587_s25 + $0x610] sm:$0xff] }
  0x6d   : > { %v963_v50 = vld [vmem:[%s4587_s25 + $0x620] sm:$0xff]  ;;  %960 = vst [vmem:[%s4592_s6 + $0x300] sm:$0xff] %v959_v48  ;;  %962 = vst [vmem:[%s4592_s6 + $0x308] sm:$0xff] %v961_v49  ;;  %v965_v51 = vld [vmem:[%s4587_s25 + $0x630] sm:$0xff] }
  0x6e   : > { %964 = vst [vmem:[%s4592_s6 + $0x310] sm:$0xff] %v963_v50  ;;  %v967_v52 = vld [vmem:[%s4587_s25 + $0x640] sm:$0xff]  ;;  %v969_v53 = vld [vmem:[%s4587_s25 + $0x650] sm:$0xff]  ;;  %966 = vst [vmem:[%s4592_s6 + $0x318] sm:$0xff] %v965_v51 }
  0x6f   : > { %968 = vst [vmem:[%s4592_s6 + $0x320] sm:$0xff] %v967_v52  ;;  %970 = vst [vmem:[%s4592_s6 + $0x328] sm:$0xff] %v969_v53  ;;  %v971_v54 = vld [vmem:[%s4587_s25 + $0x660] sm:$0xff]  ;;  %v973_v55 = vld [vmem:[%s4587_s25 + $0x670] sm:$0xff] }
  0x70   : > { %v975_v56 = vld [vmem:[%s4587_s25 + $0x680] sm:$0xff]  ;;  %972 = vst [vmem:[%s4592_s6 + $0x330] sm:$0xff] %v971_v54  ;;  %974 = vst [vmem:[%s4592_s6 + $0x338] sm:$0xff] %v973_v55  ;;  %v977_v57 = vld [vmem:[%s4587_s25 + $0x690] sm:$0xff] }
  0x71   : > { %976 = vst [vmem:[%s4592_s6 + $0x340] sm:$0xff] %v975_v56  ;;  %v979_v58 = vld [vmem:[%s4587_s25 + $0x6a0] sm:$0xff]  ;;  %v981_v59 = vld [vmem:[%s4587_s25 + $0x6b0] sm:$0xff]  ;;  %978 = vst [vmem:[%s4592_s6 + $0x348] sm:$0xff] %v977_v57 }
  0x72   : > { %980 = vst [vmem:[%s4592_s6 + $0x350] sm:$0xff] %v979_v58  ;;  %982 = vst [vmem:[%s4592_s6 + $0x358] sm:$0xff] %v981_v59  ;;  %v983_v60 = vld [vmem:[%s4587_s25 + $0x6c0] sm:$0xff]  ;;  %v985_v61 = vld [vmem:[%s4587_s25 + $0x6d0] sm:$0xff] }
  0x73   : > { %v987_v62 = vld [vmem:[%s4587_s25 + $0x6e0] sm:$0xff]  ;;  %984 = vst [vmem:[%s4592_s6 + $0x360] sm:$0xff] %v983_v60  ;;  %986 = vst [vmem:[%s4592_s6 + $0x368] sm:$0xff] %v985_v61  ;;  %v989_v63 = vld [vmem:[%s4587_s25 + $0x6f0] sm:$0xff] }
  0x74   : > { %988 = vst [vmem:[%s4592_s6 + $0x370] sm:$0xff] %v987_v62  ;;  %v991_v0 = vld [vmem:[%s4587_s25 + $0x700] sm:$0xff]  ;;  %v993_v1 = vld [vmem:[%s4587_s25 + $0x710] sm:$0xff]  ;;  %990 = vst [vmem:[%s4592_s6 + $0x378] sm:$0xff] %v989_v63 }
  0x75   : > { %992 = vst [vmem:[%s4592_s6 + $0x380] sm:$0xff] %v991_v0  ;;  %994 = vst [vmem:[%s4592_s6 + $0x388] sm:$0xff] %v993_v1  ;;  %v995_v2 = vld [vmem:[%s4587_s25 + $0x720] sm:$0xff]  ;;  %v997_v3 = vld [vmem:[%s4587_s25 + $0x730] sm:$0xff] }
  0x76   : > { %v999_v4 = vld [vmem:[%s4587_s25 + $0x740] sm:$0xff]  ;;  %996 = vst [vmem:[%s4592_s6 + $0x390] sm:$0xff] %v995_v2  ;;  %998 = vst [vmem:[%s4592_s6 + $0x398] sm:$0xff] %v997_v3  ;;  %v1001_v5 = vld [vmem:[%s4587_s25 + $0x750] sm:$0xff] }
  0x77   : > { %1000 = vst [vmem:[%s4592_s6 + $0x3a0] sm:$0xff] %v999_v4  ;;  %v1003_v6 = vld [vmem:[%s4587_s25 + $0x760] sm:$0xff]  ;;  %v1005_v7 = vld [vmem:[%s4587_s25 + $0x770] sm:$0xff]  ;;  %1002 = vst [vmem:[%s4592_s6 + $0x3a8] sm:$0xff] %v1001_v5 }
  0x78   : > { %1004 = vst [vmem:[%s4592_s6 + $0x3b0] sm:$0xff] %v1003_v6  ;;  %1006 = vst [vmem:[%s4592_s6 + $0x3b8] sm:$0xff] %v1005_v7  ;;  %v1007_v8 = vld [vmem:[%s4587_s25 + $0x780] sm:$0xff]  ;;  %v1009_v9 = vld [vmem:[%s4587_s25 + $0x790] sm:$0xff] }
  0x79   : > { %v1011_v10 = vld [vmem:[%s4587_s25 + $0x7a0] sm:$0xff]  ;;  %1008 = vst [vmem:[%s4592_s6 + $0x3c0] sm:$0xff] %v1007_v8  ;;  %1010 = vst [vmem:[%s4592_s6 + $0x3c8] sm:$0xff] %v1009_v9  ;;  %v1013_v11 = vld [vmem:[%s4587_s25 + $0x7b0] sm:$0xff] }
  0x7a   : > { %1012 = vst [vmem:[%s4592_s6 + $0x3d0] sm:$0xff] %v1011_v10  ;;  %v1015_v12 = vld [vmem:[%s4587_s25 + $0x7c0] sm:$0xff]  ;;  %v1017_v13 = vld [vmem:[%s4587_s25 + $0x7d0] sm:$0xff]  ;;  %1014 = vst [vmem:[%s4592_s6 + $0x3d8] sm:$0xff] %v1013_v11 }
  0x7b   : > { %1016 = vst [vmem:[%s4592_s6 + $0x3e0] sm:$0xff] %v1015_v12  ;;  %1018 = vst [vmem:[%s4592_s6 + $0x3e8] sm:$0xff] %v1017_v13  ;;  %v1019_v14 = vld [vmem:[%s4587_s25 + $0x7e0] sm:$0xff]  ;;  %v1021_v15 = vld [vmem:[%s4587_s25 + $0x7f0] sm:$0xff] }
  0x7c   : > { %v1023_v16 = vld [vmem:[%s4587_s25 + $0x800] sm:$0xff]  ;;  %1020 = vst [vmem:[%s4592_s6 + $0x3f0] sm:$0xff] %v1019_v14  ;;  %1022 = vst [vmem:[%s4592_s6 + $0x3f8] sm:$0xff] %v1021_v15  ;;  %v1025_v17 = vld [vmem:[%s4587_s25 + $0x810] sm:$0xff] }
  0x7d   : > { %1024 = vst [vmem:[%s4592_s6 + $0x400] sm:$0xff] %v1023_v16  ;;  %v1027_v18 = vld [vmem:[%s4587_s25 + $0x820] sm:$0xff]  ;;  %v1029_v19 = vld [vmem:[%s4587_s25 + $0x830] sm:$0xff]  ;;  %1026 = vst [vmem:[%s4592_s6 + $0x408] sm:$0xff] %v1025_v17 }
  0x7e   : > { %1028 = vst [vmem:[%s4592_s6 + $0x410] sm:$0xff] %v1027_v18  ;;  %1030 = vst [vmem:[%s4592_s6 + $0x418] sm:$0xff] %v1029_v19  ;;  %v1031_v20 = vld [vmem:[%s4587_s25 + $0x840] sm:$0xff]  ;;  %v1033_v21 = vld [vmem:[%s4587_s25 + $0x850] sm:$0xff] }
  0x7f   : > { %v1035_v22 = vld [vmem:[%s4587_s25 + $0x860] sm:$0xff]  ;;  %1032 = vst [vmem:[%s4592_s6 + $0x420] sm:$0xff] %v1031_v20  ;;  %1034 = vst [vmem:[%s4592_s6 + $0x428] sm:$0xff] %v1033_v21  ;;  %v1037_v23 = vld [vmem:[%s4587_s25 + $0x870] sm:$0xff] }
  0x80   : > { %1036 = vst [vmem:[%s4592_s6 + $0x430] sm:$0xff] %v1035_v22  ;;  %v1039_v24 = vld [vmem:[%s4587_s25 + $0x880] sm:$0xff]  ;;  %v1041_v25 = vld [vmem:[%s4587_s25 + $0x890] sm:$0xff]  ;;  %1038 = vst [vmem:[%s4592_s6 + $0x438] sm:$0xff] %v1037_v23 }
  0x81   : > { %1040 = vst [vmem:[%s4592_s6 + $0x440] sm:$0xff] %v1039_v24  ;;  %1042 = vst [vmem:[%s4592_s6 + $0x448] sm:$0xff] %v1041_v25  ;;  %v1043_v26 = vld [vmem:[%s4587_s25 + $0x8a0] sm:$0xff]  ;;  %v1045_v27 = vld [vmem:[%s4587_s25 + $0x8b0] sm:$0xff] }
  0x82   : > { %v1047_v28 = vld [vmem:[%s4587_s25 + $0x8c0] sm:$0xff]  ;;  %1044 = vst [vmem:[%s4592_s6 + $0x450] sm:$0xff] %v1043_v26  ;;  %1046 = vst [vmem:[%s4592_s6 + $0x458] sm:$0xff] %v1045_v27  ;;  %v1049_v29 = vld [vmem:[%s4587_s25 + $0x8d0] sm:$0xff] }
  0x83   : > { %1048 = vst [vmem:[%s4592_s6 + $0x460] sm:$0xff] %v1047_v28  ;;  %v1051_v30 = vld [vmem:[%s4587_s25 + $0x8e0] sm:$0xff]  ;;  %v1053_v31 = vld [vmem:[%s4587_s25 + $0x8f0] sm:$0xff]  ;;  %1050 = vst [vmem:[%s4592_s6 + $0x468] sm:$0xff] %v1049_v29 }
  0x84   : > { %1052 = vst [vmem:[%s4592_s6 + $0x470] sm:$0xff] %v1051_v30  ;;  %1054 = vst [vmem:[%s4592_s6 + $0x478] sm:$0xff] %v1053_v31  ;;  %v1055_v32 = vld [vmem:[%s4587_s25 + $0x900] sm:$0xff]  ;;  %v1057_v33 = vld [vmem:[%s4587_s25 + $0x910] sm:$0xff] }
  0x85   : > { %v1059_v34 = vld [vmem:[%s4587_s25 + $0x920] sm:$0xff]  ;;  %1056 = vst [vmem:[%s4592_s6 + $0x480] sm:$0xff] %v1055_v32  ;;  %1058 = vst [vmem:[%s4592_s6 + $0x488] sm:$0xff] %v1057_v33  ;;  %v1061_v35 = vld [vmem:[%s4587_s25 + $0x930] sm:$0xff] }
  0x86   : > { %1060 = vst [vmem:[%s4592_s6 + $0x490] sm:$0xff] %v1059_v34  ;;  %v1063_v36 = vld [vmem:[%s4587_s25 + $0x940] sm:$0xff]  ;;  %v1065_v37 = vld [vmem:[%s4587_s25 + $0x950] sm:$0xff]  ;;  %1062 = vst [vmem:[%s4592_s6 + $0x498] sm:$0xff] %v1061_v35 }
  0x87   : > { %1064 = vst [vmem:[%s4592_s6 + $0x4a0] sm:$0xff] %v1063_v36  ;;  %1066 = vst [vmem:[%s4592_s6 + $0x4a8] sm:$0xff] %v1065_v37  ;;  %v1067_v38 = vld [vmem:[%s4587_s25 + $0x960] sm:$0xff]  ;;  %v1069_v39 = vld [vmem:[%s4587_s25 + $0x970] sm:$0xff] }
  0x88   : > { %v1071_v40 = vld [vmem:[%s4587_s25 + $0x980] sm:$0xff]  ;;  %1068 = vst [vmem:[%s4592_s6 + $0x4b0] sm:$0xff] %v1067_v38  ;;  %1070 = vst [vmem:[%s4592_s6 + $0x4b8] sm:$0xff] %v1069_v39  ;;  %v1073_v41 = vld [vmem:[%s4587_s25 + $0x990] sm:$0xff] }
  0x89   : > { %1072 = vst [vmem:[%s4592_s6 + $0x4c0] sm:$0xff] %v1071_v40  ;;  %v1075_v42 = vld [vmem:[%s4587_s25 + $0x9a0] sm:$0xff]  ;;  %v1077_v43 = vld [vmem:[%s4587_s25 + $0x9b0] sm:$0xff]  ;;  %1074 = vst [vmem:[%s4592_s6 + $0x4c8] sm:$0xff] %v1073_v41 }
  0x8a   : > { %1076 = vst [vmem:[%s4592_s6 + $0x4d0] sm:$0xff] %v1075_v42  ;;  %1078 = vst [vmem:[%s4592_s6 + $0x4d8] sm:$0xff] %v1077_v43  ;;  %v1079_v44 = vld [vmem:[%s4587_s25 + $0x9c0] sm:$0xff]  ;;  %v1081_v45 = vld [vmem:[%s4587_s25 + $0x9d0] sm:$0xff] }
  0x8b   : > { %v1083_v46 = vld [vmem:[%s4587_s25 + $0x9e0] sm:$0xff]  ;;  %1080 = vst [vmem:[%s4592_s6 + $0x4e0] sm:$0xff] %v1079_v44  ;;  %1082 = vst [vmem:[%s4592_s6 + $0x4e8] sm:$0xff] %v1081_v45  ;;  %v1085_v47 = vld [vmem:[%s4587_s25 + $0x9f0] sm:$0xff] }
  0x8c   : > { %1084 = vst [vmem:[%s4592_s6 + $0x4f0] sm:$0xff] %v1083_v46  ;;  %v1087_v48 = vld [vmem:[%s4587_s25 + $0xa00] sm:$0xff]  ;;  %v1089_v49 = vld [vmem:[%s4587_s25 + $0xa10] sm:$0xff]  ;;  %1086 = vst [vmem:[%s4592_s6 + $0x4f8] sm:$0xff] %v1085_v47 }
  0x8d   : > { %1088 = vst [vmem:[%s4592_s6 + $0x500] sm:$0xff] %v1087_v48  ;;  %1090 = vst [vmem:[%s4592_s6 + $0x508] sm:$0xff] %v1089_v49  ;;  %v1091_v50 = vld [vmem:[%s4587_s25 + $0xa20] sm:$0xff]  ;;  %v1093_v51 = vld [vmem:[%s4587_s25 + $0xa30] sm:$0xff] }
  0x8e   : > { %v1095_v52 = vld [vmem:[%s4587_s25 + $0xa40] sm:$0xff]  ;;  %1092 = vst [vmem:[%s4592_s6 + $0x510] sm:$0xff] %v1091_v50  ;;  %1094 = vst [vmem:[%s4592_s6 + $0x518] sm:$0xff] %v1093_v51  ;;  %v1097_v53 = vld [vmem:[%s4587_s25 + $0xa50] sm:$0xff] }
  0x8f   : > { %1096 = vst [vmem:[%s4592_s6 + $0x520] sm:$0xff] %v1095_v52  ;;  %v1099_v54 = vld [vmem:[%s4587_s25 + $0xa60] sm:$0xff]  ;;  %v1101_v55 = vld [vmem:[%s4587_s25 + $0xa70] sm:$0xff]  ;;  %1098 = vst [vmem:[%s4592_s6 + $0x528] sm:$0xff] %v1097_v53 }
  0x90   : > { %1100 = vst [vmem:[%s4592_s6 + $0x530] sm:$0xff] %v1099_v54  ;;  %1102 = vst [vmem:[%s4592_s6 + $0x538] sm:$0xff] %v1101_v55  ;;  %v1103_v56 = vld [vmem:[%s4587_s25 + $0xa80] sm:$0xff]  ;;  %v1105_v57 = vld [vmem:[%s4587_s25 + $0xa90] sm:$0xff] }
  0x91   : > { %v1107_v58 = vld [vmem:[%s4587_s25 + $0xaa0] sm:$0xff]  ;;  %1104 = vst [vmem:[%s4592_s6 + $0x540] sm:$0xff] %v1103_v56  ;;  %1106 = vst [vmem:[%s4592_s6 + $0x548] sm:$0xff] %v1105_v57  ;;  %v1109_v59 = vld [vmem:[%s4587_s25 + $0xab0] sm:$0xff] }
  0x92   : > { %1108 = vst [vmem:[%s4592_s6 + $0x550] sm:$0xff] %v1107_v58  ;;  %v1111_v60 = vld [vmem:[%s4587_s25 + $0xac0] sm:$0xff]  ;;  %v1113_v61 = vld [vmem:[%s4587_s25 + $0xad0] sm:$0xff]  ;;  %1110 = vst [vmem:[%s4592_s6 + $0x558] sm:$0xff] %v1109_v59 }
  0x93   : > { %1112 = vst [vmem:[%s4592_s6 + $0x560] sm:$0xff] %v1111_v60  ;;  %1114 = vst [vmem:[%s4592_s6 + $0x568] sm:$0xff] %v1113_v61  ;;  %v1115_v62 = vld [vmem:[%s4587_s25 + $0xae0] sm:$0xff]  ;;  %v1117_v63 = vld [vmem:[%s4587_s25 + $0xaf0] sm:$0xff] }
  0x94   : > { %v1119_v0 = vld [vmem:[%s4587_s25 + $0xb00] sm:$0xff]  ;;  %1116 = vst [vmem:[%s4592_s6 + $0x570] sm:$0xff] %v1115_v62  ;;  %1118 = vst [vmem:[%s4592_s6 + $0x578] sm:$0xff] %v1117_v63  ;;  %v1121_v1 = vld [vmem:[%s4587_s25 + $0xb10] sm:$0xff] }
  0x95   : > { %1120 = vst [vmem:[%s4592_s6 + $0x580] sm:$0xff] %v1119_v0  ;;  %v1123_v2 = vld [vmem:[%s4587_s25 + $0xb20] sm:$0xff]  ;;  %v1125_v3 = vld [vmem:[%s4587_s25 + $0xb30] sm:$0xff]  ;;  %1122 = vst [vmem:[%s4592_s6 + $0x588] sm:$0xff] %v1121_v1 }
  0x96   : > { %1124 = vst [vmem:[%s4592_s6 + $0x590] sm:$0xff] %v1123_v2  ;;  %1126 = vst [vmem:[%s4592_s6 + $0x598] sm:$0xff] %v1125_v3  ;;  %v1127_v4 = vld [vmem:[%s4587_s25 + $0xb40] sm:$0xff]  ;;  %v1129_v5 = vld [vmem:[%s4587_s25 + $0xb50] sm:$0xff] }
  0x97   : > { %v1131_v6 = vld [vmem:[%s4587_s25 + $0xb60] sm:$0xff]  ;;  %1128 = vst [vmem:[%s4592_s6 + $0x5a0] sm:$0xff] %v1127_v4  ;;  %1130 = vst [vmem:[%s4592_s6 + $0x5a8] sm:$0xff] %v1129_v5  ;;  %v1133_v7 = vld [vmem:[%s4587_s25 + $0xb70] sm:$0xff] }
  0x98   : > { %1132 = vst [vmem:[%s4592_s6 + $0x5b0] sm:$0xff] %v1131_v6  ;;  %v1135_v8 = vld [vmem:[%s4587_s25 + $0xb80] sm:$0xff]  ;;  %v1137_v9 = vld [vmem:[%s4587_s25 + $0xb90] sm:$0xff]  ;;  %1134 = vst [vmem:[%s4592_s6 + $0x5b8] sm:$0xff] %v1133_v7 }
  0x99   : > { %1136 = vst [vmem:[%s4592_s6 + $0x5c0] sm:$0xff] %v1135_v8  ;;  %1138 = vst [vmem:[%s4592_s6 + $0x5c8] sm:$0xff] %v1137_v9  ;;  %v1139_v10 = vld [vmem:[%s4587_s25 + $0xba0] sm:$0xff]  ;;  %v1141_v11 = vld [vmem:[%s4587_s25 + $0xbb0] sm:$0xff] }
  0x9a   : > { %v1143_v12 = vld [vmem:[%s4587_s25 + $0xbc0] sm:$0xff]  ;;  %1140 = vst [vmem:[%s4592_s6 + $0x5d0] sm:$0xff] %v1139_v10  ;;  %1142 = vst [vmem:[%s4592_s6 + $0x5d8] sm:$0xff] %v1141_v11  ;;  %v1145_v13 = vld [vmem:[%s4587_s25 + $0xbd0] sm:$0xff] }
  0x9b   : > { %1144 = vst [vmem:[%s4592_s6 + $0x5e0] sm:$0xff] %v1143_v12  ;;  %v1147_v14 = vld [vmem:[%s4587_s25 + $0xbe0] sm:$0xff]  ;;  %v1149_v15 = vld [vmem:[%s4587_s25 + $0xbf0] sm:$0xff]  ;;  %1146 = vst [vmem:[%s4592_s6 + $0x5e8] sm:$0xff] %v1145_v13 }
  0x9c   : > { %1148 = vst [vmem:[%s4592_s6 + $0x5f0] sm:$0xff] %v1147_v14  ;;  %1150 = vst [vmem:[%s4592_s6 + $0x5f8] sm:$0xff] %v1149_v15  ;;  %v1151_v16 = vld [vmem:[%s4587_s25 + $0xc00] sm:$0xff]  ;;  %v1153_v17 = vld [vmem:[%s4587_s25 + $0xc10] sm:$0xff] }
  0x9d   : > { %v1155_v18 = vld [vmem:[%s4587_s25 + $0xc20] sm:$0xff]  ;;  %1152 = vst [vmem:[%s4592_s6 + $0x600] sm:$0xff] %v1151_v16  ;;  %1154 = vst [vmem:[%s4592_s6 + $0x608] sm:$0xff] %v1153_v17  ;;  %v1157_v19 = vld [vmem:[%s4587_s25 + $0xc30] sm:$0xff] }
  0x9e   : > { %1156 = vst [vmem:[%s4592_s6 + $0x610] sm:$0xff] %v1155_v18  ;;  %v1159_v20 = vld [vmem:[%s4587_s25 + $0xc40] sm:$0xff]  ;;  %v1161_v21 = vld [vmem:[%s4587_s25 + $0xc50] sm:$0xff]  ;;  %1158 = vst [vmem:[%s4592_s6 + $0x618] sm:$0xff] %v1157_v19 }
  0x9f   : > { %1160 = vst [vmem:[%s4592_s6 + $0x620] sm:$0xff] %v1159_v20  ;;  %1162 = vst [vmem:[%s4592_s6 + $0x628] sm:$0xff] %v1161_v21  ;;  %v1163_v22 = vld [vmem:[%s4587_s25 + $0xc60] sm:$0xff]  ;;  %v1165_v23 = vld [vmem:[%s4587_s25 + $0xc70] sm:$0xff] }
  0xa0   : > { %v1167_v24 = vld [vmem:[%s4587_s25 + $0xc80] sm:$0xff]  ;;  %1164 = vst [vmem:[%s4592_s6 + $0x630] sm:$0xff] %v1163_v22  ;;  %1166 = vst [vmem:[%s4592_s6 + $0x638] sm:$0xff] %v1165_v23  ;;  %v1169_v25 = vld [vmem:[%s4587_s25 + $0xc90] sm:$0xff] }
  0xa1   : > { %1168 = vst [vmem:[%s4592_s6 + $0x640] sm:$0xff] %v1167_v24  ;;  %v1171_v26 = vld [vmem:[%s4587_s25 + $0xca0] sm:$0xff]  ;;  %v1173_v27 = vld [vmem:[%s4587_s25 + $0xcb0] sm:$0xff]  ;;  %1170 = vst [vmem:[%s4592_s6 + $0x648] sm:$0xff] %v1169_v25 }
  0xa2   : > { %1172 = vst [vmem:[%s4592_s6 + $0x650] sm:$0xff] %v1171_v26  ;;  %1174 = vst [vmem:[%s4592_s6 + $0x658] sm:$0xff] %v1173_v27  ;;  %v1175_v28 = vld [vmem:[%s4587_s25 + $0xcc0] sm:$0xff]  ;;  %v1177_v29 = vld [vmem:[%s4587_s25 + $0xcd0] sm:$0xff] }
  0xa3   : > { %v1179_v30 = vld [vmem:[%s4587_s25 + $0xce0] sm:$0xff]  ;;  %1176 = vst [vmem:[%s4592_s6 + $0x660] sm:$0xff] %v1175_v28  ;;  %1178 = vst [vmem:[%s4592_s6 + $0x668] sm:$0xff] %v1177_v29  ;;  %v1181_v31 = vld [vmem:[%s4587_s25 + $0xcf0] sm:$0xff] }
  0xa4   : > { %1180 = vst [vmem:[%s4592_s6 + $0x670] sm:$0xff] %v1179_v30  ;;  %v1183_v32 = vld [vmem:[%s4587_s25 + $0xd00] sm:$0xff]  ;;  %v1185_v33 = vld [vmem:[%s4587_s25 + $0xd10] sm:$0xff]  ;;  %1182 = vst [vmem:[%s4592_s6 + $0x678] sm:$0xff] %v1181_v31 }
  0xa5   : > { %1184 = vst [vmem:[%s4592_s6 + $0x680] sm:$0xff] %v1183_v32  ;;  %1186 = vst [vmem:[%s4592_s6 + $0x688] sm:$0xff] %v1185_v33  ;;  %v1187_v34 = vld [vmem:[%s4587_s25 + $0xd20] sm:$0xff]  ;;  %v1189_v35 = vld [vmem:[%s4587_s25 + $0xd30] sm:$0xff] }
  0xa6   : > { %v1191_v36 = vld [vmem:[%s4587_s25 + $0xd40] sm:$0xff]  ;;  %1188 = vst [vmem:[%s4592_s6 + $0x690] sm:$0xff] %v1187_v34  ;;  %1190 = vst [vmem:[%s4592_s6 + $0x698] sm:$0xff] %v1189_v35  ;;  %v1193_v37 = vld [vmem:[%s4587_s25 + $0xd50] sm:$0xff] }
  0xa7   : > { %1192 = vst [vmem:[%s4592_s6 + $0x6a0] sm:$0xff] %v1191_v36  ;;  %v1195_v38 = vld [vmem:[%s4587_s25 + $0xd60] sm:$0xff]  ;;  %v1197_v39 = vld [vmem:[%s4587_s25 + $0xd70] sm:$0xff]  ;;  %1194 = vst [vmem:[%s4592_s6 + $0x6a8] sm:$0xff] %v1193_v37 }
  0xa8   : > { %1196 = vst [vmem:[%s4592_s6 + $0x6b0] sm:$0xff] %v1195_v38  ;;  %1198 = vst [vmem:[%s4592_s6 + $0x6b8] sm:$0xff] %v1197_v39  ;;  %v1199_v40 = vld [vmem:[%s4587_s25 + $0xd80] sm:$0xff]  ;;  %v1201_v41 = vld [vmem:[%s4587_s25 + $0xd90] sm:$0xff] }
  0xa9   : > { %v1203_v42 = vld [vmem:[%s4587_s25 + $0xda0] sm:$0xff]  ;;  %1200 = vst [vmem:[%s4592_s6 + $0x6c0] sm:$0xff] %v1199_v40  ;;  %1202 = vst [vmem:[%s4592_s6 + $0x6c8] sm:$0xff] %v1201_v41  ;;  %v1205_v43 = vld [vmem:[%s4587_s25 + $0xdb0] sm:$0xff] }
  0xaa   : > { %1204 = vst [vmem:[%s4592_s6 + $0x6d0] sm:$0xff] %v1203_v42  ;;  %v1207_v44 = vld [vmem:[%s4587_s25 + $0xdc0] sm:$0xff]  ;;  %v1209_v45 = vld [vmem:[%s4587_s25 + $0xdd0] sm:$0xff]  ;;  %1206 = vst [vmem:[%s4592_s6 + $0x6d8] sm:$0xff] %v1205_v43 }
  0xab   : > { %1208 = vst [vmem:[%s4592_s6 + $0x6e0] sm:$0xff] %v1207_v44  ;;  %1210 = vst [vmem:[%s4592_s6 + $0x6e8] sm:$0xff] %v1209_v45  ;;  %v1211_v46 = vld [vmem:[%s4587_s25 + $0xde0] sm:$0xff]  ;;  %v1213_v47 = vld [vmem:[%s4587_s25 + $0xdf0] sm:$0xff] }
  0xac   : > { %v1215_v48 = vld [vmem:[%s4587_s25 + $0xe00] sm:$0xff]  ;;  %1212 = vst [vmem:[%s4592_s6 + $0x6f0] sm:$0xff] %v1211_v46  ;;  %1214 = vst [vmem:[%s4592_s6 + $0x6f8] sm:$0xff] %v1213_v47  ;;  %v1217_v49 = vld [vmem:[%s4587_s25 + $0xe10] sm:$0xff] }
  0xad   : > { %1216 = vst [vmem:[%s4592_s6 + $0x700] sm:$0xff] %v1215_v48  ;;  %v1219_v50 = vld [vmem:[%s4587_s25 + $0xe20] sm:$0xff]  ;;  %v1221_v51 = vld [vmem:[%s4587_s25 + $0xe30] sm:$0xff]  ;;  %1218 = vst [vmem:[%s4592_s6 + $0x708] sm:$0xff] %v1217_v49 }
  0xae   : > { %1220 = vst [vmem:[%s4592_s6 + $0x710] sm:$0xff] %v1219_v50  ;;  %1222 = vst [vmem:[%s4592_s6 + $0x718] sm:$0xff] %v1221_v51  ;;  %v1223_v52 = vld [vmem:[%s4587_s25 + $0xe40] sm:$0xff]  ;;  %v1225_v53 = vld [vmem:[%s4587_s25 + $0xe50] sm:$0xff] }
  0xaf   : > { %v1227_v54 = vld [vmem:[%s4587_s25 + $0xe60] sm:$0xff]  ;;  %1224 = vst [vmem:[%s4592_s6 + $0x720] sm:$0xff] %v1223_v52  ;;  %1226 = vst [vmem:[%s4592_s6 + $0x728] sm:$0xff] %v1225_v53  ;;  %v1229_v55 = vld [vmem:[%s4587_s25 + $0xe70] sm:$0xff] }
  0xb0   : > { %1228 = vst [vmem:[%s4592_s6 + $0x730] sm:$0xff] %v1227_v54  ;;  %v1231_v56 = vld [vmem:[%s4587_s25 + $0xe80] sm:$0xff]  ;;  %v1233_v57 = vld [vmem:[%s4587_s25 + $0xe90] sm:$0xff]  ;;  %1230 = vst [vmem:[%s4592_s6 + $0x738] sm:$0xff] %v1229_v55 }
  0xb1   : > { %1232 = vst [vmem:[%s4592_s6 + $0x740] sm:$0xff] %v1231_v56  ;;  %1234 = vst [vmem:[%s4592_s6 + $0x748] sm:$0xff] %v1233_v57  ;;  %v1235_v58 = vld [vmem:[%s4587_s25 + $0xea0] sm:$0xff]  ;;  %v1237_v59 = vld [vmem:[%s4587_s25 + $0xeb0] sm:$0xff] }
  0xb2   : > { %v1239_v60 = vld [vmem:[%s4587_s25 + $0xec0] sm:$0xff]  ;;  %1236 = vst [vmem:[%s4592_s6 + $0x750] sm:$0xff] %v1235_v58  ;;  %1238 = vst [vmem:[%s4592_s6 + $0x758] sm:$0xff] %v1237_v59  ;;  %v1241_v61 = vld [vmem:[%s4587_s25 + $0xed0] sm:$0xff] }
  0xb3   : > { %1240 = vst [vmem:[%s4592_s6 + $0x760] sm:$0xff] %v1239_v60  ;;  %v1243_v62 = vld [vmem:[%s4587_s25 + $0xee0] sm:$0xff]  ;;  %v1245_v63 = vld [vmem:[%s4587_s25 + $0xef0] sm:$0xff]  ;;  %1242 = vst [vmem:[%s4592_s6 + $0x768] sm:$0xff] %v1241_v61 }
  0xb4   : > { %1244 = vst [vmem:[%s4592_s6 + $0x770] sm:$0xff] %v1243_v62  ;;  %1246 = vst [vmem:[%s4592_s6 + $0x778] sm:$0xff] %v1245_v63  ;;  %v1247_v0 = vld [vmem:[%s4587_s25 + $0xf00] sm:$0xff]  ;;  %v1249_v1 = vld [vmem:[%s4587_s25 + $0xf10] sm:$0xff] }
  0xb5   : > { %v1251_v2 = vld [vmem:[%s4587_s25 + $0xf20] sm:$0xff]  ;;  %1248 = vst [vmem:[%s4592_s6 + $0x780] sm:$0xff] %v1247_v0  ;;  %1250 = vst [vmem:[%s4592_s6 + $0x788] sm:$0xff] %v1249_v1  ;;  %v1253_v3 = vld [vmem:[%s4587_s25 + $0xf30] sm:$0xff] }
  0xb6   : > { %1252 = vst [vmem:[%s4592_s6 + $0x790] sm:$0xff] %v1251_v2  ;;  %v1255_v4 = vld [vmem:[%s4587_s25 + $0xf40] sm:$0xff]  ;;  %v1257_v5 = vld [vmem:[%s4587_s25 + $0xf50] sm:$0xff]  ;;  %1254 = vst [vmem:[%s4592_s6 + $0x798] sm:$0xff] %v1253_v3 }
  0xb7   : > { %1256 = vst [vmem:[%s4592_s6 + $0x7a0] sm:$0xff] %v1255_v4  ;;  %1258 = vst [vmem:[%s4592_s6 + $0x7a8] sm:$0xff] %v1257_v5  ;;  %v1259_v6 = vld [vmem:[%s4587_s25 + $0xf60] sm:$0xff]  ;;  %v1261_v7 = vld [vmem:[%s4587_s25 + $0xf70] sm:$0xff] }
  0xb8   : > { %v1263_v8 = vld [vmem:[%s4587_s25 + $0xf80] sm:$0xff]  ;;  %1260 = vst [vmem:[%s4592_s6 + $0x7b0] sm:$0xff] %v1259_v6  ;;  %1262 = vst [vmem:[%s4592_s6 + $0x7b8] sm:$0xff] %v1261_v7  ;;  %v1265_v9 = vld [vmem:[%s4587_s25 + $0xf90] sm:$0xff] }
  0xb9   : > { %1264 = vst [vmem:[%s4592_s6 + $0x7c0] sm:$0xff] %v1263_v8  ;;  %v1267_v10 = vld [vmem:[%s4587_s25 + $0xfa0] sm:$0xff]  ;;  %v1269_v11 = vld [vmem:[%s4587_s25 + $0xfb0] sm:$0xff]  ;;  %1266 = vst [vmem:[%s4592_s6 + $0x7c8] sm:$0xff] %v1265_v9 }
  0xba   : > { %1268 = vst [vmem:[%s4592_s6 + $0x7d0] sm:$0xff] %v1267_v10  ;;  %1270 = vst [vmem:[%s4592_s6 + $0x7d8] sm:$0xff] %v1269_v11  ;;  %v1271_v12 = vld [vmem:[%s4587_s25 + $0xfc0] sm:$0xff]  ;;  %v1273_v13 = vld [vmem:[%s4587_s25 + $0xfd0] sm:$0xff] }
  0xbb   : > { %v1275_v14 = vld [vmem:[%s4587_s25 + $0xfe0] sm:$0xff]  ;;  %1272 = vst [vmem:[%s4592_s6 + $0x7e0] sm:$0xff] %v1271_v12  ;;  %1274 = vst [vmem:[%s4592_s6 + $0x7e8] sm:$0xff] %v1273_v13  ;;  %v1277_v15 = vld [vmem:[%s4587_s25 + $0xff0] sm:$0xff] }
  0xbc   : > { %1276 = vst [vmem:[%s4592_s6 + $0x7f0] sm:$0xff] %v1275_v14  ;;  %1278 = vst [vmem:[%s4592_s6 + $0x7f8] sm:$0xff] %v1277_v15 }
  0xbd PF: > { %p3556_p0 = scmp.ge.s32.totalorder %s4433_s22, 1  ;;  %p1291_p1 = scmp.lt.s32.totalorder %s4433_s22, 5 }
  0xbf   : > { %p1292_p2 = pnand %p3556_p0, %p1291_p1 }
  0xc0   : > { %s1298_s0 = sand.u32 (!%p1292_p2), 1, %s4409_s16   ;;  %s1305_s5 = sand.u32 (!%p1292_p2), 1, %s4401_s14  }
  0xc1   : > { %1295 = sbr.rel (%p1292_p2) target bundleno = 710 (0x2c6), region = 85  ;;  %s3557_s23 = sshll.u32 (!%p1292_p2), %s1298_s0, 7 }
  0xc2   : > { %s3558_s28 = sshll.u32 (!%p1292_p2), %s1305_s5, 11  ;;  %s1332_s7 = sand.u32 (!%p1292_p2), 1, %s4393_s12  }
  0xc3   : > { %s3560_s11 = sshll.u32 (!%p1292_p2), %s4421_s19, 1  ;;  %s3559_s25 = sshll.u32 (!%p1292_p2), %s1332_s7, 4 }
  0xc4   : > { %p1340_p3 = scmp.lt.s32.totalorder (!%p1292_p2), %s3560_s11, 3  ;;  %s5112_s4 = scalar_lea.vmem (!%p1292_p2), [#allocation3], %s3557_s23 }
  0xc5   : > { %s5114_s6 = scalar_lea.vmem (!%p1292_p2), [#allocation4], %s3558_s28  ;;  %s5116_s1 = scalar_lea.vmem (!%p1292_p2), [#allocation5], %s3559_s25 }
  0xc6   : > { %p3561_p4 = scmp.ne.s32.totalorder (!%p1292_p2), %s4417_s18, 0 }
  0xc8   : > { %s5514_s11 = smov (!%p1340_p3, %s3560_s11), 3  ;;  %1349 = sbr.rel (%p3561_p4) target bundleno = 211 (0xd3), region = 97 }
  0xc9   : > { %s1342_s29 = scalar_lea.vmem %s5485_s2, %s5514_s11  ;;  %v1352_v16 = vlaneseq (!%p3561_p4) }
  0xca   : > { %v1350_v18 = vld [vmem:[%s1342_s29] sm:$0x3] (!%p3561_p4) }
  0xcb   : > { %v1353_v17 = vshrl.u32 (!%p3561_p4), %v1352_v16, 7 }
  0xcd   : > { %v1354_v19 = vsub.s32 (!%p3561_p4), 0, %v1353_v17  ;;  %v1358_v20 = vsub.s32 (!%p3561_p4), 1, %v1353_v17 }
  0xcf   : > { %v1355_v21 = vrot.slane %v1350_v18, %v1354_v19  ;;  %v1359_v22 = vrot.slane %v1350_v18, %v1358_v20 }
  0xd1   : > { %1362 = vst [vmem:[#allocation2] sm:$0xff] %v1355_v21  ;;  %1364 = vst [vmem:[#allocation2 + $0x10] sm:$0xff] %v1355_v21 }
  0xd2   : > { %1363 = vst [vmem:[#allocation2 + $0x8] sm:$0xff] %v1359_v22  ;;  %1365 = vst [vmem:[#allocation2 + $0x18] sm:$0xff] %v1359_v22 }
  0xd3 PF: > { %v3963_v23 = vld [vmem:[%s5114_s6 + $0x4] ss:$8 sps:$4 sm:$0xff]   ;;  %v3967_v25 = vld [vmem:[%s5114_s6] ss:$8 sps:$4 sm:$0xff]   ;;  %v3969_v27 = vld [vmem:[%s5114_s6 + $0x14] ss:$8 sps:$4 sm:$0xff]  }
  0xd4   : > { %v3965_v24 = vld [vmem:[%s5114_s6 + $0x404] ss:$8 sps:$4 sm:$0xff]   ;;  %3002 = vmatprep.subr.bf16.mxu1 %v3963_v23  ;;  %v3968_v26 = vld [vmem:[%s5114_s6 + $0x400] ss:$8 sps:$4 sm:$0xff]   ;;  %v3971_v28 = vld [vmem:[%s5114_s6 + $0x414] ss:$8 sps:$4 sm:$0xff]  }
  0xd5   : > { %3174 = vmatprep.subr.bf16.mxu0 %v3965_v24  ;;  %3003 = vmatpush1.bf16.msra.mxu1 %v3967_v25  ;;  %v3973_v29 = vld [vmem:[%s5114_s6 + $0x10] ss:$8 sps:$4 sm:$0xff]   ;;  %v3975_v31 = vld [vmem:[%s5114_s6 + $0x24] ss:$8 sps:$4 sm:$0xff]   ;;  %v3979_v33 = vld [vmem:[%s5114_s6 + $0x20] ss:$8 sps:$4 sm:$0xff]  }
  0xd6   : > { %3175 = vmatpush1.bf16.msra.mxu0 %v3968_v26  ;;  %3004 = vmatprep.subr.bf16.mxu1 %v3969_v27  ;;  %v3974_v30 = vld [vmem:[%s5114_s6 + $0x410] ss:$8 sps:$4 sm:$0xff]   ;;  %v3977_v32 = vld [vmem:[%s5114_s6 + $0x424] ss:$8 sps:$4 sm:$0xff]   ;;  %v3980_v34 = vld [vmem:[%s5114_s6 + $0x420] ss:$8 sps:$4 sm:$0xff]  }
  0xd7   : > { %3176 = vmatprep.subr.bf16.mxu0 %v3971_v28  ;;  %v3981_v35 = vld [vmem:[%s5114_s6 + $0x34] ss:$8 sps:$4 sm:$0xff]   ;;  %v3985_v37 = vld [vmem:[%s5114_s6 + $0x30] ss:$8 sps:$4 sm:$0xff]   ;;  %v3987_v39 = vld [vmem:[%s5114_s6 + $0x44] ss:$8 sps:$4 sm:$0xff]  }
  0xd8   : > { %v3983_v36 = vld [vmem:[%s5114_s6 + $0x434] ss:$8 sps:$4 sm:$0xff]   ;;  %v3986_v38 = vld [vmem:[%s5114_s6 + $0x430] ss:$8 sps:$4 sm:$0xff]   ;;  %v3989_v40 = vld [vmem:[%s5114_s6 + $0x444] ss:$8 sps:$4 sm:$0xff]  }
  0xd9   : > { %3005 = vmatpush1.bf16.msra.mxu1 %v3973_v29  ;;  %v3991_v41 = vld [vmem:[%s5114_s6 + $0x40] ss:$8 sps:$4 sm:$0xff]   ;;  %v3993_v43 = vld [vmem:[%s5114_s6 + $0x54] ss:$8 sps:$4 sm:$0xff]   ;;  %v3997_v45 = vld [vmem:[%s5114_s6 + $0x50] ss:$8 sps:$4 sm:$0xff]  }
  0xda   : > { %3177 = vmatpush1.bf16.msra.mxu0 %v3974_v30  ;;  %3006 = vmatprep.subr.bf16.mxu1 %v3975_v31  ;;  %v3992_v42 = vld [vmem:[%s5114_s6 + $0x440] ss:$8 sps:$4 sm:$0xff]   ;;  %v3995_v44 = vld [vmem:[%s5114_s6 + $0x454] ss:$8 sps:$4 sm:$0xff]   ;;  %v3998_v46 = vld [vmem:[%s5114_s6 + $0x450] ss:$8 sps:$4 sm:$0xff]  }
  0xdb   : > { %3178 = vmatprep.subr.bf16.mxu0 %v3977_v32  ;;  %v3999_v47 = vld [vmem:[%s5114_s6 + $0x64] ss:$8 sps:$4 sm:$0xff]   ;;  %v4003_v49 = vld [vmem:[%s5114_s6 + $0x60] ss:$8 sps:$4 sm:$0xff]   ;;  %v4005_v51 = vld [vmem:[%s5114_s6 + $0x74] ss:$8 sps:$4 sm:$0xff]  }
  0xdc   : > { %v4001_v48 = vld [vmem:[%s5114_s6 + $0x464] ss:$8 sps:$4 sm:$0xff]   ;;  %v4004_v50 = vld [vmem:[%s5114_s6 + $0x460] ss:$8 sps:$4 sm:$0xff]   ;;  %v4007_v52 = vld [vmem:[%s5114_s6 + $0x474] ss:$8 sps:$4 sm:$0xff]  }
  0xdd   : > { %3007 = vmatpush1.bf16.msra.mxu1 %v3979_v33  ;;  %v4009_v53 = vld [vmem:[%s5114_s6 + $0x70] ss:$8 sps:$4 sm:$0xff]   ;;  %v4011_v55 = vld [vmem:[%s5114_s6 + $0x84] ss:$8 sps:$4 sm:$0xff]   ;;  %v4015_v57 = vld [vmem:[%s5114_s6 + $0x80] ss:$8 sps:$4 sm:$0xff]  }
  0xde   : > { %3179 = vmatpush1.bf16.msra.mxu0 %v3980_v34  ;;  %3008 = vmatprep.subr.bf16.mxu1 %v3981_v35  ;;  %v4010_v54 = vld [vmem:[%s5114_s6 + $0x470] ss:$8 sps:$4 sm:$0xff]   ;;  %v4013_v56 = vld [vmem:[%s5114_s6 + $0x484] ss:$8 sps:$4 sm:$0xff]   ;;  %v4016_v58 = vld [vmem:[%s5114_s6 + $0x480] ss:$8 sps:$4 sm:$0xff]  }
  0xdf   : > { %3180 = vmatprep.subr.bf16.mxu0 %v3983_v36  ;;  %v4017_v59 = vld [vmem:[%s5114_s6 + $0x94] ss:$8 sps:$4 sm:$0xff]   ;;  %v4021_v61 = vld [vmem:[%s5114_s6 + $0x90] ss:$8 sps:$4 sm:$0xff]   ;;  %v4023_v63 = vld [vmem:[%s5114_s6 + $0xa4] ss:$8 sps:$4 sm:$0xff]  }
  0xe0   : > { %v4019_v60 = vld [vmem:[%s5114_s6 + $0x494] ss:$8 sps:$4 sm:$0xff]   ;;  %v4022_v62 = vld [vmem:[%s5114_s6 + $0x490] ss:$8 sps:$4 sm:$0xff]   ;;  %v4025_v0 = vld [vmem:[%s5114_s6 + $0x4a4] ss:$8 sps:$4 sm:$0xff]  }
  0xe1   : > { %3009 = vmatpush1.bf16.msra.mxu1 %v3985_v37  ;;  %v4027_v1 = vld [vmem:[%s5114_s6 + $0xa0] ss:$8 sps:$4 sm:$0xff]   ;;  %v4029_v3 = vld [vmem:[%s5114_s6 + $0xb4] ss:$8 sps:$4 sm:$0xff]   ;;  %v4033_v5 = vld [vmem:[%s5114_s6 + $0xb0] ss:$8 sps:$4 sm:$0xff]  }
  0xe2   : > { %3181 = vmatpush1.bf16.msra.mxu0 %v3986_v38  ;;  %3010 = vmatprep.subr.bf16.mxu1 %v3987_v39  ;;  %v4028_v2 = vld [vmem:[%s5114_s6 + $0x4a0] ss:$8 sps:$4 sm:$0xff]   ;;  %v4031_v4 = vld [vmem:[%s5114_s6 + $0x4b4] ss:$8 sps:$4 sm:$0xff]   ;;  %v4034_v6 = vld [vmem:[%s5114_s6 + $0x4b0] ss:$8 sps:$4 sm:$0xff]  }
  0xe3   : > { %3182 = vmatprep.subr.bf16.mxu0 %v3989_v40  ;;  %v1370_v7 = vld [vmem:[%s5112_s4] sm:$0xff]  ;;  %v4041_v17 = vld [vmem:[%s5114_s6 + $0xd4] ss:$8 sps:$4 sm:$0xff]   ;;  %v4045_v19 = vld [vmem:[%s5114_s6 + $0xd0] ss:$8 sps:$4 sm:$0xff]   ;;  %p3834_p5 = scmp.ne.s32.totalorder %s4417_s18, 1 }
  0xe4   : > { %v1378_v8 = vld [vmem:[%s5112_s4 + $0x40] sm:$0xff]  ;;  %v4043_v18 = vld [vmem:[%s5114_s6 + $0x4d4] ss:$8 sps:$4 sm:$0xff]   ;;  %v4046_v20 = vld [vmem:[%s5114_s6 + $0x4d0] ss:$8 sps:$4 sm:$0xff]  }
  0xe5   : > { %3011 = vmatpush1.bf16.msra.mxu1 %v3991_v41  ;;  %v4035_v9 = vld [vmem:[%s5114_s6 + $0xc4] ss:$8 sps:$4 sm:$0xff]   ;;  %v3563_v11 = vcombine.high %v1370_v7, %v1378_v8  ;;  %v4039_v15 = vld [vmem:[%s5114_s6 + $0xc0] ss:$8 sps:$4 sm:$0xff]   ;;  %v4053_v25 = vld [vmem:[%s5114_s6 + $0xf4] ss:$8 sps:$4 sm:$0xff]   ;;  %v3562_v31 = vcombine.low %v1370_v7, %v1378_v8 }
  0xe6   : > { %3183 = vmatpush1.bf16.msra.mxu0 %v3992_v42  ;;  %3012 = vmatprep.subr.bf16.mxu1 %v3993_v43  ;;  %v4037_v10 = vld [vmem:[%s5114_s6 + $0x4c4] ss:$8 sps:$4 sm:$0xff]   ;;  %v4040_v16 = vld [vmem:[%s5114_s6 + $0x4c0] ss:$8 sps:$4 sm:$0xff]   ;;  %v4055_v26 = vld [vmem:[%s5114_s6 + $0x4f4] ss:$8 sps:$4 sm:$0xff]  }
  0xe7   : > { %3184 = vmatprep.subr.bf16.mxu0 %v3995_v44  ;;  %v1374_v12 = vld [vmem:[%s5112_s4 + $0x20] sm:$0xff]  ;;  %3034 = vmatprep.mubr.bf16.mxu1 %v3563_v11  ;;  %v4057_v27 = vld [vmem:[%s5114_s6 + $0xf0] ss:$8 sps:$4 sm:$0xff]   ;;  %v4067_v35 = vld [vmem:[%s5114_s6 + $0x114] ss:$8 sps:$4 sm:$0xff]  }
  0xe8   : > { %v1382_v13 = vld [vmem:[%s5112_s4 + $0x60] sm:$0xff]  ;;  %v4058_v28 = vld [vmem:[%s5114_s6 + $0x4f0] ss:$8 sps:$4 sm:$0xff]   ;;  %v4070_v36 = vld [vmem:[%s5114_s6 + $0x514] ss:$8 sps:$4 sm:$0xff]  }
  0xe9   : > { %3013 = vmatpush1.bf16.msra.mxu1 %v3997_v45  ;;  %v3571_v14 = vcombine.high %v1374_v12, %v1382_v13  ;;  %v4047_v21 = vld [vmem:[%s5114_s6 + $0xe4] ss:$8 sps:$4 sm:$0xff]   ;;  %v4051_v23 = vld [vmem:[%s5114_s6 + $0xe0] ss:$8 sps:$4 sm:$0xff]   ;;  %v3570_v33 = vcombine.low %v1374_v12, %v1382_v13  ;;  %v4065_v37 = vld [vmem:[%s5114_s6 + $0x110] ss:$8 sps:$4 sm:$0xff]  }
  0xea   : > { %3185 = vmatpush1.bf16.msra.mxu0 %v3998_v46  ;;  %3014 = vmatprep.subr.bf16.mxu1 %v3999_v47  ;;  %v4049_v22 = vld [vmem:[%s5114_s6 + $0x4e4] ss:$8 sps:$4 sm:$0xff]   ;;  %v4052_v24 = vld [vmem:[%s5114_s6 + $0x4e0] ss:$8 sps:$4 sm:$0xff]   ;;  %v4068_v38 = vld [vmem:[%s5114_s6 + $0x510] ss:$8 sps:$4 sm:$0xff]  }
  0xeb   : > { %3186 = vmatprep.subr.bf16.mxu0 %v4001_v48  ;;  %3206 = vmatprep.mubr.bf16.mxu0 %v3571_v14  ;;  %v4061_v29 = vld [vmem:[%s5114_s6 + $0x104] ss:$8 sps:$4 sm:$0xff]   ;;  %v4059_v32 = vld [vmem:[%s5114_s6 + $0x100] ss:$8 sps:$4 sm:$0xff]   ;;  %v4079_v43 = vld [vmem:[%s5114_s6 + $0x134] ss:$8 sps:$4 sm:$0xff]  }
  0xec   : > { %v4064_v30 = vld [vmem:[%s5114_s6 + $0x504] ss:$8 sps:$4 sm:$0xff]   ;;  %v4062_v34 = vld [vmem:[%s5114_s6 + $0x500] ss:$8 sps:$4 sm:$0xff]   ;;  %v4082_v44 = vld [vmem:[%s5114_s6 + $0x534] ss:$8 sps:$4 sm:$0xff]  }
  0xed   : > { %3015 = vmatpush1.bf16.msra.mxu1 %v4003_v49  ;;  %v4073_v39 = vld [vmem:[%s5114_s6 + $0x124] ss:$8 sps:$4 sm:$0xff]   ;;  %v4071_v41 = vld [vmem:[%s5114_s6 + $0x120] ss:$8 sps:$4 sm:$0xff]   ;;  %v4077_v45 = vld [vmem:[%s5114_s6 + $0x130] ss:$8 sps:$4 sm:$0xff]  }
  0xee   : > { %3187 = vmatpush1.bf16.msra.mxu0 %v4004_v50  ;;  %3016 = vmatprep.subr.bf16.mxu1 %v4005_v51  ;;  %v4076_v40 = vld [vmem:[%s5114_s6 + $0x524] ss:$8 sps:$4 sm:$0xff]   ;;  %v4074_v42 = vld [vmem:[%s5114_s6 + $0x520] ss:$8 sps:$4 sm:$0xff]   ;;  %v4080_v46 = vld [vmem:[%s5114_s6 + $0x530] ss:$8 sps:$4 sm:$0xff]  }
  0xef   : > { %3188 = vmatprep.subr.bf16.mxu0 %v4007_v52  ;;  %v4085_v47 = vld [vmem:[%s5114_s6 + $0x144] ss:$8 sps:$4 sm:$0xff]   ;;  %v4083_v49 = vld [vmem:[%s5114_s6 + $0x140] ss:$8 sps:$4 sm:$0xff]   ;;  %v4091_v51 = vld [vmem:[%s5114_s6 + $0x154] ss:$8 sps:$4 sm:$0xff]  }
  0xf0   : > { %v4088_v48 = vld [vmem:[%s5114_s6 + $0x544] ss:$8 sps:$4 sm:$0xff]   ;;  %v4086_v50 = vld [vmem:[%s5114_s6 + $0x540] ss:$8 sps:$4 sm:$0xff]   ;;  %v4094_v52 = vld [vmem:[%s5114_s6 + $0x554] ss:$8 sps:$4 sm:$0xff]  }
  0xf1   : > { %3017 = vmatpush1.bf16.msra.mxu1 %v4009_v53  ;;  %v4089_v53 = vld [vmem:[%s5114_s6 + $0x150] ss:$8 sps:$4 sm:$0xff]   ;;  %v4107_v7 = vld [vmem:[%s5114_s6 + $0x180] ss:$8 sps:$4 sm:$0xff]   ;;  %v4121_v13 = vld [vmem:[%s5114_s6 + $0x1a4] ss:$8 sps:$4 sm:$0xff]  }
  0xf2   : > { %3189 = vmatpush1.bf16.msra.mxu0 %v4010_v54  ;;  %3018 = vmatprep.subr.bf16.mxu1 %v4011_v55  ;;  %v4092_v54 = vld [vmem:[%s5114_s6 + $0x550] ss:$8 sps:$4 sm:$0xff]   ;;  %v4097_v55 = vld [vmem:[%s5114_s6 + $0x164] ss:$8 sps:$4 sm:$0xff]   ;;  %v4110_v8 = vld [vmem:[%s5114_s6 + $0x580] ss:$8 sps:$4 sm:$0xff]  }
  0xf3   : > { %3190 = vmatprep.subr.bf16.mxu0 %v4013_v56  ;;  %v4100_v56 = vld [vmem:[%s5114_s6 + $0x564] ss:$8 sps:$4 sm:$0xff]   ;;  %v4113_v11 = vld [vmem:[%s5114_s6 + $0x190] ss:$8 sps:$4 sm:$0xff]  }
  0xf4   : > { %v4116_v12 = vld [vmem:[%s5114_s6 + $0x590] ss:$8 sps:$4 sm:$0xff]   ;;  %v4124_v14 = vld [vmem:[%s5114_s6 + $0x5a4] ss:$8 sps:$4 sm:$0xff]  }
  0xf5   : > { %3019 = vmatpush1.bf16.msra.mxu1 %v4015_v57  ;;  %v4095_v57 = vld [vmem:[%s5114_s6 + $0x160] ss:$8 sps:$4 sm:$0xff]  }
  0xf6   : > { %3191 = vmatpush1.bf16.msra.mxu0 %v4016_v58  ;;  %3020 = vmatprep.subr.bf16.mxu1 %v4017_v59  ;;  %v4098_v58 = vld [vmem:[%s5114_s6 + $0x560] ss:$8 sps:$4 sm:$0xff]  }
  0xf7   : > { %3192 = vmatprep.subr.bf16.mxu0 %v4019_v60  ;;  %v5216_v59 = vld [vmem:[%s5112_s4 + $0x8] sm:$0xff] }
  0xf8   : > { %v5219_v60 = vld [vmem:[%s5112_s4 + $0x48] sm:$0xff] }
  0xf9   : > { %3021 = vmatpush1.bf16.msra.mxu1 %v4021_v61  ;;  %v4103_v61 = vld [vmem:[%s5114_s6 + $0x174] ss:$8 sps:$4 sm:$0xff]  }
  0xfa   : > { %3193 = vmatpush1.bf16.msra.mxu0 %v4022_v62  ;;  %3022 = vmatprep.subr.bf16.mxu1 %v4023_v63  ;;  %v4106_v62 = vld [vmem:[%s5114_s6 + $0x574] ss:$8 sps:$4 sm:$0xff]   ;;  %v3565_v63 = vcombine.high %v5216_v59, %v5219_v60 }
  0xfb   : > { %3194 = vmatprep.subr.bf16.mxu0 %v4025_v0  ;;  %v5226_v0 = vld [vmem:[%s5112_s4 + $0x28] sm:$0xff] }
  0xfd   : > { %3023 = vmatpush1.bf16.msra.mxu1 %v4027_v1  ;;  %v5229_v1 = vld [vmem:[%s5112_s4 + $0x68] sm:$0xff] }
  0xfe   : > { %3195 = vmatpush1.bf16.msra.mxu0 %v4028_v2  ;;  %3024 = vmatprep.subr.bf16.mxu1 %v4029_v3  ;;  %v3573_v2 = vcombine.high %v5226_v0, %v5229_v1  ;;  %v4101_v3 = vld [vmem:[%s5114_s6 + $0x170] ss:$8 sps:$4 sm:$0xff]  }
  0xff   : > { %3196 = vmatprep.subr.bf16.mxu0 %v4031_v4  ;;  %v4104_v4 = vld [vmem:[%s5114_s6 + $0x570] ss:$8 sps:$4 sm:$0xff]  }
 0x101   : > { %3025 = vmatpush1.bf16.msra.mxu1 %v4033_v5  ;;  %v4109_v5 = vld [vmem:[%s5114_s6 + $0x184] ss:$8 sps:$4 sm:$0xff]  }
 0x102   : > { %3197 = vmatpush1.bf16.msra.mxu0 %v4034_v6  ;;  %3026 = vmatprep.subr.bf16.mxu1 %v4035_v9  ;;  %v4112_v6 = vld [vmem:[%s5114_s6 + $0x584] ss:$8 sps:$4 sm:$0xff]   ;;  %v4115_v9 = vld [vmem:[%s5114_s6 + $0x194] ss:$8 sps:$4 sm:$0xff]  }
 0x103   : > { %3198 = vmatprep.subr.bf16.mxu0 %v4037_v10  ;;  %v4118_v10 = vld [vmem:[%s5114_s6 + $0x594] ss:$8 sps:$4 sm:$0xff]  }
 0x105   : > { %3027 = vmatpush1.bf16.msra.mxu1 %v4039_v15  ;;  %v4119_v15 = vld [vmem:[%s5114_s6 + $0x1a0] ss:$8 sps:$4 sm:$0xff]  }
 0x106   : > { %3199 = vmatpush1.bf16.msra.mxu0 %v4040_v16  ;;  %3028 = vmatprep.subr.bf16.mxu1 %v4041_v17  ;;  %v4122_v16 = vld [vmem:[%s5114_s6 + $0x5a0] ss:$8 sps:$4 sm:$0xff]   ;;  %v4127_v17 = vld [vmem:[%s5114_s6 + $0x1b4] ss:$8 sps:$4 sm:$0xff]  }
 0x107   : > { %3200 = vmatprep.subr.bf16.mxu0 %v4043_v18  ;;  %v4130_v18 = vld [vmem:[%s5114_s6 + $0x5b4] ss:$8 sps:$4 sm:$0xff]  }
 0x109   : > { %3029 = vmatpush1.bf16.msra.mxu1 %v4045_v19  ;;  %v4125_v19 = vld [vmem:[%s5114_s6 + $0x1b0] ss:$8 sps:$4 sm:$0xff]  }
 0x10a   : > { %3201 = vmatpush1.bf16.msra.mxu0 %v4046_v20  ;;  %3030 = vmatprep.subr.bf16.mxu1 %v4047_v21  ;;  %v4128_v20 = vld [vmem:[%s5114_s6 + $0x5b0] ss:$8 sps:$4 sm:$0xff]   ;;  %v4133_v21 = vld [vmem:[%s5114_s6 + $0x1c4] ss:$8 sps:$4 sm:$0xff]  }
 0x10b   : > { %3202 = vmatprep.subr.bf16.mxu0 %v4049_v22  ;;  %v4136_v22 = vld [vmem:[%s5114_s6 + $0x5c4] ss:$8 sps:$4 sm:$0xff]  }
 0x10d   : > { %3031 = vmatpush1.bf16.msra.mxu1 %v4051_v23  ;;  %v4131_v23 = vld [vmem:[%s5114_s6 + $0x1c0] ss:$8 sps:$4 sm:$0xff]  }
 0x10e   : > { %3203 = vmatpush1.bf16.msra.mxu0 %v4052_v24  ;;  %3032 = vmatprep.subr.bf16.mxu1 %v4053_v25  ;;  %v4134_v24 = vld [vmem:[%s5114_s6 + $0x5c0] ss:$8 sps:$4 sm:$0xff]   ;;  %v4139_v25 = vld [vmem:[%s5114_s6 + $0x1d4] ss:$8 sps:$4 sm:$0xff]  }
 0x10f   : > { %3204 = vmatprep.subr.bf16.mxu0 %v4055_v26  ;;  %v4142_v26 = vld [vmem:[%s5114_s6 + $0x5d4] ss:$8 sps:$4 sm:$0xff]  }
 0x111   : > { %3033 = vmatpush1.bf16.msra.mxu1 %v4057_v27  ;;  %v4137_v27 = vld [vmem:[%s5114_s6 + $0x1d0] ss:$8 sps:$4 sm:$0xff]  }
 0x112   : > { %3205 = vmatpush1.bf16.msra.mxu0 %v4058_v28  ;;  %3045 = vmatprep.subr.bf16.mxu1 %v4061_v29  ;;  %v4140_v28 = vld [vmem:[%s5114_s6 + $0x5d0] ss:$8 sps:$4 sm:$0xff]   ;;  %v4145_v29 = vld [vmem:[%s5114_s6 + $0x1e4] ss:$8 sps:$4 sm:$0xff]  }
 0x113   : > { %3217 = vmatprep.subr.bf16.mxu0 %v4064_v30  ;;  %v4148_v30 = vld [vmem:[%s5114_s6 + $0x5e4] ss:$8 sps:$4 sm:$0xff]  }
 0x114   : > { %3035 = vmatmul.mubr.bf16.vlgmr.msra.gmra.mrb[0].mxu1 %v3562_v31  ;;  %v4143_v31 = vld [vmem:[%s5114_s6 + $0x1e0] ss:$8 sps:$4 sm:$0xff]  }
 0x115   : > { %3207 = vmatmul.mubr.bf16.vlgmr.msra.gmra.mrb[0].mxu0 %v3570_v33  ;;  %3046 = vmatpush1.bf16.msra.mxu1 %v4059_v32  ;;  %v4146_v32 = vld [vmem:[%s5114_s6 + $0x5e0] ss:$8 sps:$4 sm:$0xff]   ;;  %v4151_v33 = vld [vmem:[%s5114_s6 + $0x1f4] ss:$8 sps:$4 sm:$0xff]  }
 0x116   : > { %3218 = vmatpush1.bf16.msra.mxu0 %v4062_v34  ;;  %3047 = vmatprep.subr.bf16.mxu1 %v4067_v35  ;;  %v4154_v34 = vld [vmem:[%s5114_s6 + $0x5f4] ss:$8 sps:$4 sm:$0xff]   ;;  %v4149_v35 = vld [vmem:[%s5114_s6 + $0x1f0] ss:$8 sps:$4 sm:$0xff]  }
 0x117   : > { %3219 = vmatprep.subr.bf16.mxu0 %v4070_v36  ;;  %3077 = vmatprep.mubr.bf16.mxu1 %v3565_v63  ;;  %v4152_v36 = vld [vmem:[%s5114_s6 + $0x5f0] ss:$8 sps:$4 sm:$0xff]   ;;  %v4179_v63 = vld [vmem:[%s5114_s6 + $0x240] ss:$8 sps:$4 sm:$0xff]  }
 0x118   : > { %3249 = vmatprep.mubr.bf16.mxu0 %v3573_v2  ;;  %v4190_v2 = vld [vmem:[%s5114_s6 + $0x654] ss:$8 sps:$4 sm:$0xff]  }
 0x119   : > { %3048 = vmatpush1.bf16.msra.mxu1 %v4065_v37  ;;  %v4157_v37 = vld [vmem:[%s5114_s6 + $0x204] ss:$8 sps:$4 sm:$0xff]  }
 0x11a   : > { %3220 = vmatpush1.bf16.msra.mxu0 %v4068_v38  ;;  %3049 = vmatprep.subr.bf16.mxu1 %v4073_v39  ;;  %v4160_v38 = vld [vmem:[%s5114_s6 + $0x604] ss:$8 sps:$4 sm:$0xff]   ;;  %v3564_v39 = vcombine.low %v5216_v59, %v5219_v60  ;;  %v4173_v59 = vld [vmem:[%s5114_s6 + $0x230] ss:$8 sps:$4 sm:$0xff]  }
 0x11b   : > { %3221 = vmatprep.subr.bf16.mxu0 %v4076_v40  ;;  %v4155_v40 = vld [vmem:[%s5114_s6 + $0x200] ss:$8 sps:$4 sm:$0xff]   ;;  %v4176_v60 = vld [vmem:[%s5114_s6 + $0x630] ss:$8 sps:$4 sm:$0xff]  }
 0x11d   : > { %3050 = vmatpush1.bf16.msra.mxu1 %v4071_v41  ;;  %v3572_v41 = vcombine.low %v5226_v0, %v5229_v1  ;;  %v4182_v0 = vld [vmem:[%s5114_s6 + $0x640] ss:$8 sps:$4 sm:$0xff]   ;;  %v4187_v1 = vld [vmem:[%s5114_s6 + $0x254] ss:$8 sps:$4 sm:$0xff]  }
 0x11e   : > { %3222 = vmatpush1.bf16.msra.mxu0 %v4074_v42  ;;  %3051 = vmatprep.subr.bf16.mxu1 %v4079_v43  ;;  %v4158_v42 = vld [vmem:[%s5114_s6 + $0x600] ss:$8 sps:$4 sm:$0xff]   ;;  %v4163_v43 = vld [vmem:[%s5114_s6 + $0x214] ss:$8 sps:$4 sm:$0xff]  }
 0x11f   : > { %3223 = vmatprep.subr.bf16.mxu0 %v4082_v44  ;;  %v4166_v44 = vld [vmem:[%s5114_s6 + $0x614] ss:$8 sps:$4 sm:$0xff]  }
 0x121   : > { %3052 = vmatpush1.bf16.msra.mxu1 %v4077_v45  ;;  %v4161_v45 = vld [vmem:[%s5114_s6 + $0x210] ss:$8 sps:$4 sm:$0xff]  }
 0x122   : > { %3224 = vmatpush1.bf16.msra.mxu0 %v4080_v46  ;;  %3053 = vmatprep.subr.bf16.mxu1 %v4085_v47  ;;  %v4164_v46 = vld [vmem:[%s5114_s6 + $0x610] ss:$8 sps:$4 sm:$0xff]  }
 0x123   : > { %3225 = vmatprep.subr.bf16.mxu0 %v4088_v48  ;;  %v5280_v47 = vld [vmem:[%s5112_s4 + $0x10] sm:$0xff] }
 0x124   : > { %v5283_v48 = vld [vmem:[%s5112_s4 + $0x50] sm:$0xff] }
 0x125   : > { %3054 = vmatpush1.bf16.msra.mxu1 %v4083_v49  ;;  %v4169_v49 = vld [vmem:[%s5114_s6 + $0x224] ss:$8 sps:$4 sm:$0xff]  }
 0x126   : > { %3226 = vmatpush1.bf16.msra.mxu0 %v4086_v50  ;;  %3055 = vmatprep.subr.bf16.mxu1 %v4091_v51  ;;  %v4172_v50 = vld [vmem:[%s5114_s6 + $0x624] ss:$8 sps:$4 sm:$0xff]   ;;  %v3567_v51 = vcombine.high %v5280_v47, %v5283_v48 }
 0x127   : > { %3227 = vmatprep.subr.bf16.mxu0 %v4094_v52  ;;  %v5290_v52 = vld [vmem:[%s5112_s4 + $0x30] sm:$0xff] }
 0x129   : > { %3056 = vmatpush1.bf16.msra.mxu1 %v4089_v53  ;;  %v5293_v53 = vld [vmem:[%s5112_s4 + $0x70] sm:$0xff] }
 0x12a   : > { %3228 = vmatpush1.bf16.msra.mxu0 %v4092_v54  ;;  %3057 = vmatprep.subr.bf16.mxu1 %v4097_v55  ;;  %v3575_v54 = vcombine.high %v5290_v52, %v5293_v53  ;;  %v4167_v55 = vld [vmem:[%s5114_s6 + $0x220] ss:$8 sps:$4 sm:$0xff]  }
 0x12b   : > { %3229 = vmatprep.subr.bf16.mxu0 %v4100_v56  ;;  %v4170_v56 = vld [vmem:[%s5114_s6 + $0x620] ss:$8 sps:$4 sm:$0xff]  }
 0x12d   : > { %3058 = vmatpush1.bf16.msra.mxu1 %v4095_v57  ;;  %v4175_v57 = vld [vmem:[%s5114_s6 + $0x234] ss:$8 sps:$4 sm:$0xff]  }
 0x12e   : > { %3230 = vmatpush1.bf16.msra.mxu0 %v4098_v58  ;;  %3059 = vmatprep.subr.bf16.mxu1 %v4103_v61  ;;  %v4178_v58 = vld [vmem:[%s5114_s6 + $0x634] ss:$8 sps:$4 sm:$0xff]   ;;  %v4181_v61 = vld [vmem:[%s5114_s6 + $0x244] ss:$8 sps:$4 sm:$0xff]  }
 0x12f   : > { %3231 = vmatprep.subr.bf16.mxu0 %v4106_v62  ;;  %v4184_v62 = vld [vmem:[%s5114_s6 + $0x644] ss:$8 sps:$4 sm:$0xff]  }
 0x131   : > { %3060 = vmatpush1.bf16.msra.mxu1 %v4101_v3  ;;  %v4185_v3 = vld [vmem:[%s5114_s6 + $0x250] ss:$8 sps:$4 sm:$0xff]  }
 0x132   : > { %3232 = vmatpush1.bf16.msra.mxu0 %v4104_v4  ;;  %3061 = vmatprep.subr.bf16.mxu1 %v4109_v5  ;;  %v4188_v4 = vld [vmem:[%s5114_s6 + $0x650] ss:$8 sps:$4 sm:$0xff]   ;;  %v4193_v5 = vld [vmem:[%s5114_s6 + $0x264] ss:$8 sps:$4 sm:$0xff]  }
 0x133   : > { %3233 = vmatprep.subr.bf16.mxu0 %v4112_v6  ;;  %v4196_v6 = vld [vmem:[%s5114_s6 + $0x664] ss:$8 sps:$4 sm:$0xff]  }
 0x135   : > { %3062 = vmatpush1.bf16.msra.mxu1 %v4107_v7  ;;  %v4191_v7 = vld [vmem:[%s5114_s6 + $0x260] ss:$8 sps:$4 sm:$0xff]  }
 0x136   : > { %3234 = vmatpush1.bf16.msra.mxu0 %v4110_v8  ;;  %3063 = vmatprep.subr.bf16.mxu1 %v4115_v9  ;;  %v4194_v8 = vld [vmem:[%s5114_s6 + $0x660] ss:$8 sps:$4 sm:$0xff]   ;;  %v4199_v9 = vld [vmem:[%s5114_s6 + $0x274] ss:$8 sps:$4 sm:$0xff]  }
 0x137   : > { %3235 = vmatprep.subr.bf16.mxu0 %v4118_v10  ;;  %v4202_v10 = vld [vmem:[%s5114_s6 + $0x674] ss:$8 sps:$4 sm:$0xff]  }
 0x139   : > { %3064 = vmatpush1.bf16.msra.mxu1 %v4113_v11  ;;  %v4197_v11 = vld [vmem:[%s5114_s6 + $0x270] ss:$8 sps:$4 sm:$0xff]  }
 0x13a   : > { %3236 = vmatpush1.bf16.msra.mxu0 %v4116_v12  ;;  %3065 = vmatprep.subr.bf16.mxu1 %v4121_v13  ;;  %v4200_v12 = vld [vmem:[%s5114_s6 + $0x670] ss:$8 sps:$4 sm:$0xff]   ;;  %v4205_v13 = vld [vmem:[%s5114_s6 + $0x284] ss:$8 sps:$4 sm:$0xff]  }
 0x13b   : > { %3237 = vmatprep.subr.bf16.mxu0 %v4124_v14  ;;  %v4208_v14 = vld [vmem:[%s5114_s6 + $0x684] ss:$8 sps:$4 sm:$0xff]  }
 0x13d   : > { %3066 = vmatpush1.bf16.msra.mxu1 %v4119_v15  ;;  %v4203_v15 = vld [vmem:[%s5114_s6 + $0x280] ss:$8 sps:$4 sm:$0xff]  }
 0x13e   : > { %3238 = vmatpush1.bf16.msra.mxu0 %v4122_v16  ;;  %3067 = vmatprep.subr.bf16.mxu1 %v4127_v17  ;;  %v4206_v16 = vld [vmem:[%s5114_s6 + $0x680] ss:$8 sps:$4 sm:$0xff]   ;;  %v4211_v17 = vld [vmem:[%s5114_s6 + $0x294] ss:$8 sps:$4 sm:$0xff]  }
 0x13f   : > { %3239 = vmatprep.subr.bf16.mxu0 %v4130_v18  ;;  %v4214_v18 = vld [vmem:[%s5114_s6 + $0x694] ss:$8 sps:$4 sm:$0xff]  }
 0x141   : > { %3068 = vmatpush1.bf16.msra.mxu1 %v4125_v19  ;;  %v4209_v19 = vld [vmem:[%s5114_s6 + $0x290] ss:$8 sps:$4 sm:$0xff]  }
 0x142   : > { %3240 = vmatpush1.bf16.msra.mxu0 %v4128_v20  ;;  %3069 = vmatprep.subr.bf16.mxu1 %v4133_v21  ;;  %v4212_v20 = vld [vmem:[%s5114_s6 + $0x690] ss:$8 sps:$4 sm:$0xff]   ;;  %v4217_v21 = vld [vmem:[%s5114_s6 + $0x2a4] ss:$8 sps:$4 sm:$0xff]  }
 0x143   : > { %3241 = vmatprep.subr.bf16.mxu0 %v4136_v22  ;;  %v4220_v22 = vld [vmem:[%s5114_s6 + $0x6a4] ss:$8 sps:$4 sm:$0xff]  }
 0x145   : > { %3070 = vmatpush1.bf16.msra.mxu1 %v4131_v23  ;;  %v4215_v23 = vld [vmem:[%s5114_s6 + $0x2a0] ss:$8 sps:$4 sm:$0xff]  }
 0x146   : > { %3242 = vmatpush1.bf16.msra.mxu0 %v4134_v24  ;;  %3071 = vmatprep.subr.bf16.mxu1 %v4139_v25  ;;  %v4218_v24 = vld [vmem:[%s5114_s6 + $0x6a0] ss:$8 sps:$4 sm:$0xff]   ;;  %v4223_v25 = vld [vmem:[%s5114_s6 + $0x2b4] ss:$8 sps:$4 sm:$0xff]  }
 0x147   : > { %3243 = vmatprep.subr.bf16.mxu0 %v4142_v26  ;;  %v4226_v26 = vld [vmem:[%s5114_s6 + $0x6b4] ss:$8 sps:$4 sm:$0xff]  }
 0x149   : > { %3072 = vmatpush1.bf16.msra.mxu1 %v4137_v27  ;;  %v4221_v27 = vld [vmem:[%s5114_s6 + $0x2b0] ss:$8 sps:$4 sm:$0xff]  }
 0x14a   : > { %3244 = vmatpush1.bf16.msra.mxu0 %v4140_v28  ;;  %3073 = vmatprep.subr.bf16.mxu1 %v4145_v29  ;;  %v4224_v28 = vld [vmem:[%s5114_s6 + $0x6b0] ss:$8 sps:$4 sm:$0xff]   ;;  %v4229_v29 = vld [vmem:[%s5114_s6 + $0x2c4] ss:$8 sps:$4 sm:$0xff]  }
 0x14b   : > { %3245 = vmatprep.subr.bf16.mxu0 %v4148_v30  ;;  %v4232_v30 = vld [vmem:[%s5114_s6 + $0x6c4] ss:$8 sps:$4 sm:$0xff]  }
 0x14d   : > { %3074 = vmatpush1.bf16.msra.mxu1 %v4143_v31  ;;  %v4227_v31 = vld [vmem:[%s5114_s6 + $0x2c0] ss:$8 sps:$4 sm:$0xff]  }
 0x14e   : > { %3246 = vmatpush1.bf16.msra.mxu0 %v4146_v32  ;;  %3075 = vmatprep.subr.bf16.mxu1 %v4151_v33  ;;  %v4230_v32 = vld [vmem:[%s5114_s6 + $0x6c0] ss:$8 sps:$4 sm:$0xff]   ;;  %v4235_v33 = vld [vmem:[%s5114_s6 + $0x2d4] ss:$8 sps:$4 sm:$0xff]  }
 0x14f   : > { %3247 = vmatprep.subr.bf16.mxu0 %v4154_v34  ;;  %v4238_v34 = vld [vmem:[%s5114_s6 + $0x6d4] ss:$8 sps:$4 sm:$0xff]  }
 0x151   : > { %3076 = vmatpush1.bf16.msra.mxu1 %v4149_v35  ;;  %v4233_v35 = vld [vmem:[%s5114_s6 + $0x2d0] ss:$8 sps:$4 sm:$0xff]  }
 0x152   : > { %3248 = vmatpush1.bf16.msra.mxu0 %v4152_v36  ;;  %3088 = vmatprep.subr.bf16.mxu1 %v4157_v37  ;;  %v4236_v36 = vld [vmem:[%s5114_s6 + $0x6d0] ss:$8 sps:$4 sm:$0xff]   ;;  %v4241_v37 = vld [vmem:[%s5114_s6 + $0x2e4] ss:$8 sps:$4 sm:$0xff]  }
 0x153   : > { %3260 = vmatprep.subr.bf16.mxu0 %v4160_v38  ;;  %v4244_v38 = vld [vmem:[%s5114_s6 + $0x6e4] ss:$8 sps:$4 sm:$0xff]  }
 0x154   : > { %3078 = vmatmul.mubr.bf16.vlgmr.msra.gmra.mrb[0].mxu1 %v3564_v39  ;;  %v4239_v39 = vld [vmem:[%s5114_s6 + $0x2e0] ss:$8 sps:$4 sm:$0xff]  }
 0x155   : > { %3250 = vmatmul.mubr.bf16.vlgmr.msra.gmra.mrb[0].mxu0 %v3572_v41  ;;  %3089 = vmatpush1.bf16.msra.mxu1 %v4155_v40  ;;  %v4242_v40 = vld [vmem:[%s5114_s6 + $0x6e0] ss:$8 sps:$4 sm:$0xff]   ;;  %v4247_v41 = vld [vmem:[%s5114_s6 + $0x2f4] ss:$8 sps:$4 sm:$0xff]  }
 0x156   : > { %3261 = vmatpush1.bf16.msra.mxu0 %v4158_v42  ;;  %3090 = vmatprep.subr.bf16.mxu1 %v4163_v43  ;;  %v4250_v42 = vld [vmem:[%s5114_s6 + $0x6f4] ss:$8 sps:$4 sm:$0xff]   ;;  %v4245_v43 = vld [vmem:[%s5114_s6 + $0x2f0] ss:$8 sps:$4 sm:$0xff]  }
 0x157   : > { %3262 = vmatprep.subr.bf16.mxu0 %v4166_v44  ;;  %3120 = vmatprep.mubr.bf16.mxu1 %v3567_v51  ;;  %v4248_v44 = vld [vmem:[%s5114_s6 + $0x6f0] ss:$8 sps:$4 sm:$0xff]   ;;  %v3574_v51 = vcombine.low %v5290_v52, %v5293_v53 }
 0x158   : > { %3292 = vmatprep.mubr.bf16.mxu0 %v3575_v54  ;;  %v5361_v54 = vld [vmem:[%s5112_s4 + $0x58] sm:$0xff] }
 0x159   : > { %3091 = vmatpush1.bf16.msra.mxu1 %v4161_v45  ;;  %v4253_v45 = vld [vmem:[%s5114_s6 + $0x304] ss:$8 sps:$4 sm:$0xff]  }
 0x15a   : > { %3263 = vmatpush1.bf16.msra.mxu0 %v4164_v46  ;;  %3092 = vmatprep.subr.bf16.mxu1 %v4169_v49  ;;  %v4256_v46 = vld [vmem:[%s5114_s6 + $0x704] ss:$8 sps:$4 sm:$0xff]   ;;  %v5354_v49 = vld [vmem:[%s5112_s4 + $0x18] sm:$0xff] }
 0x15b   : > { %3264 = vmatprep.subr.bf16.mxu0 %v4172_v50  ;;  %v3566_v50 = vcombine.low %v5280_v47, %v5283_v48  ;;  %v4259_v47 = vld [vmem:[%s5114_s6 + $0x314] ss:$8 sps:$4 sm:$0xff]   ;;  %v3569_v52 = vcombine.high %v5354_v49, %v5361_v54 }
 0x15c   : > { %v4262_v48 = vld [vmem:[%s5114_s6 + $0x714] ss:$8 sps:$4 sm:$0xff]  }
 0x15d   : > { %3093 = vmatpush1.bf16.msra.mxu1 %v4167_v55  ;;  %v5364_v55 = vld [vmem:[%s5112_s4 + $0x38] sm:$0xff] }
 0x15e   : > { %3265 = vmatpush1.bf16.msra.mxu0 %v4170_v56  ;;  %3094 = vmatprep.subr.bf16.mxu1 %v4175_v57  ;;  %v5367_v56 = vld [vmem:[%s5112_s4 + $0x78] sm:$0xff]  ;;  %v4251_v57 = vld [vmem:[%s5114_s6 + $0x300] ss:$8 sps:$4 sm:$0xff]  }
 0x15f   : > { %3266 = vmatprep.subr.bf16.mxu0 %v4178_v58  ;;  %v4254_v58 = vld [vmem:[%s5114_s6 + $0x700] ss:$8 sps:$4 sm:$0xff]   ;;  %v3577_v53 = vcombine.high %v5364_v55, %v5367_v56 }
 0x161   : > { %3095 = vmatpush1.bf16.msra.mxu1 %v4173_v59  ;;  %v4257_v59 = vld [vmem:[%s5114_s6 + $0x310] ss:$8 sps:$4 sm:$0xff]  }
 0x162   : > { %3267 = vmatpush1.bf16.msra.mxu0 %v4176_v60  ;;  %3096 = vmatprep.subr.bf16.mxu1 %v4181_v61  ;;  %v4260_v60 = vld [vmem:[%s5114_s6 + $0x710] ss:$8 sps:$4 sm:$0xff]   ;;  %v4265_v61 = vld [vmem:[%s5114_s6 + $0x324] ss:$8 sps:$4 sm:$0xff]  }
 0x163   : > { %3268 = vmatprep.subr.bf16.mxu0 %v4184_v62  ;;  %v4268_v62 = vld [vmem:[%s5114_s6 + $0x724] ss:$8 sps:$4 sm:$0xff]  }
 0x165   : > { %3097 = vmatpush1.bf16.msra.mxu1 %v4179_v63  ;;  %v4263_v63 = vld [vmem:[%s5114_s6 + $0x320] ss:$8 sps:$4 sm:$0xff]  }
 0x166   : > { %3269 = vmatpush1.bf16.msra.mxu0 %v4182_v0  ;;  %3098 = vmatprep.subr.bf16.mxu1 %v4187_v1  ;;  %v4266_v0 = vld [vmem:[%s5114_s6 + $0x720] ss:$8 sps:$4 sm:$0xff]   ;;  %v4271_v1 = vld [vmem:[%s5114_s6 + $0x334] ss:$8 sps:$4 sm:$0xff]  }
 0x167   : > { %3270 = vmatprep.subr.bf16.mxu0 %v4190_v2  ;;  %v4274_v2 = vld [vmem:[%s5114_s6 + $0x734] ss:$8 sps:$4 sm:$0xff]  }
 0x169   : > { %3099 = vmatpush1.bf16.msra.mxu1 %v4185_v3  ;;  %v4269_v3 = vld [vmem:[%s5114_s6 + $0x330] ss:$8 sps:$4 sm:$0xff]  }
 0x16a   : > { %3271 = vmatpush1.bf16.msra.mxu0 %v4188_v4  ;;  %3100 = vmatprep.subr.bf16.mxu1 %v4193_v5  ;;  %v4272_v4 = vld [vmem:[%s5114_s6 + $0x730] ss:$8 sps:$4 sm:$0xff]   ;;  %v4277_v5 = vld [vmem:[%s5114_s6 + $0x344] ss:$8 sps:$4 sm:$0xff]  }
 0x16b   : > { %3272 = vmatprep.subr.bf16.mxu0 %v4196_v6  ;;  %v4280_v6 = vld [vmem:[%s5114_s6 + $0x744] ss:$8 sps:$4 sm:$0xff]  }
 0x16d   : > { %3101 = vmatpush1.bf16.msra.mxu1 %v4191_v7  ;;  %v4275_v7 = vld [vmem:[%s5114_s6 + $0x340] ss:$8 sps:$4 sm:$0xff]  }
 0x16e   : > { %3273 = vmatpush1.bf16.msra.mxu0 %v4194_v8  ;;  %3102 = vmatprep.subr.bf16.mxu1 %v4199_v9  ;;  %v4278_v8 = vld [vmem:[%s5114_s6 + $0x740] ss:$8 sps:$4 sm:$0xff]   ;;  %v4283_v9 = vld [vmem:[%s5114_s6 + $0x354] ss:$8 sps:$4 sm:$0xff]  }
 0x16f   : > { %3274 = vmatprep.subr.bf16.mxu0 %v4202_v10  ;;  %v4286_v10 = vld [vmem:[%s5114_s6 + $0x754] ss:$8 sps:$4 sm:$0xff]  }
 0x171   : > { %3103 = vmatpush1.bf16.msra.mxu1 %v4197_v11  ;;  %v4281_v11 = vld [vmem:[%s5114_s6 + $0x350] ss:$8 sps:$4 sm:$0xff]  }
 0x172   : > { %3275 = vmatpush1.bf16.msra.mxu0 %v4200_v12  ;;  %3104 = vmatprep.subr.bf16.mxu1 %v4205_v13  ;;  %v4284_v12 = vld [vmem:[%s5114_s6 + $0x750] ss:$8 sps:$4 sm:$0xff]   ;;  %v4289_v13 = vld [vmem:[%s5114_s6 + $0x364] ss:$8 sps:$4 sm:$0xff]  }
 0x173   : > { %3276 = vmatprep.subr.bf16.mxu0 %v4208_v14  ;;  %v4292_v14 = vld [vmem:[%s5114_s6 + $0x764] ss:$8 sps:$4 sm:$0xff]  }
 0x175   : > { %3105 = vmatpush1.bf16.msra.mxu1 %v4203_v15  ;;  %v4287_v15 = vld [vmem:[%s5114_s6 + $0x360] ss:$8 sps:$4 sm:$0xff]  }
 0x176   : > { %3277 = vmatpush1.bf16.msra.mxu0 %v4206_v16  ;;  %3106 = vmatprep.subr.bf16.mxu1 %v4211_v17  ;;  %v4290_v16 = vld [vmem:[%s5114_s6 + $0x760] ss:$8 sps:$4 sm:$0xff]   ;;  %v4295_v17 = vld [vmem:[%s5114_s6 + $0x374] ss:$8 sps:$4 sm:$0xff]  }
 0x177   : > { %3278 = vmatprep.subr.bf16.mxu0 %v4214_v18  ;;  %v4298_v18 = vld [vmem:[%s5114_s6 + $0x774] ss:$8 sps:$4 sm:$0xff]  }
 0x179   : > { %3107 = vmatpush1.bf16.msra.mxu1 %v4209_v19  ;;  %v4293_v19 = vld [vmem:[%s5114_s6 + $0x370] ss:$8 sps:$4 sm:$0xff]  }
 0x17a   : > { %3279 = vmatpush1.bf16.msra.mxu0 %v4212_v20  ;;  %3108 = vmatprep.subr.bf16.mxu1 %v4217_v21  ;;  %v4296_v20 = vld [vmem:[%s5114_s6 + $0x770] ss:$8 sps:$4 sm:$0xff]   ;;  %v4301_v21 = vld [vmem:[%s5114_s6 + $0x384] ss:$8 sps:$4 sm:$0xff]  }
 0x17b   : > { %3280 = vmatprep.subr.bf16.mxu0 %v4220_v22  ;;  %v4304_v22 = vld [vmem:[%s5114_s6 + $0x784] ss:$8 sps:$4 sm:$0xff]  }
 0x17d   : > { %3109 = vmatpush1.bf16.msra.mxu1 %v4215_v23  ;;  %v4299_v23 = vld [vmem:[%s5114_s6 + $0x380] ss:$8 sps:$4 sm:$0xff]  }
 0x17e   : > { %3281 = vmatpush1.bf16.msra.mxu0 %v4218_v24  ;;  %3110 = vmatprep.subr.bf16.mxu1 %v4223_v25  ;;  %v4302_v24 = vld [vmem:[%s5114_s6 + $0x780] ss:$8 sps:$4 sm:$0xff]   ;;  %v4307_v25 = vld [vmem:[%s5114_s6 + $0x394] ss:$8 sps:$4 sm:$0xff]  }
 0x17f   : > { %3282 = vmatprep.subr.bf16.mxu0 %v4226_v26  ;;  %v4310_v26 = vld [vmem:[%s5114_s6 + $0x794] ss:$8 sps:$4 sm:$0xff]  }
 0x181   : > { %3111 = vmatpush1.bf16.msra.mxu1 %v4221_v27  ;;  %v4305_v27 = vld [vmem:[%s5114_s6 + $0x390] ss:$8 sps:$4 sm:$0xff]  }
 0x182   : > { %3283 = vmatpush1.bf16.msra.mxu0 %v4224_v28  ;;  %3112 = vmatprep.subr.bf16.mxu1 %v4229_v29  ;;  %v4308_v28 = vld [vmem:[%s5114_s6 + $0x790] ss:$8 sps:$4 sm:$0xff]   ;;  %v4313_v29 = vld [vmem:[%s5114_s6 + $0x3a4] ss:$8 sps:$4 sm:$0xff]  }
 0x183   : > { %3284 = vmatprep.subr.bf16.mxu0 %v4232_v30  ;;  %v4316_v30 = vld [vmem:[%s5114_s6 + $0x7a4] ss:$8 sps:$4 sm:$0xff]  }
 0x185   : > { %3113 = vmatpush1.bf16.msra.mxu1 %v4227_v31  ;;  %v4311_v31 = vld [vmem:[%s5114_s6 + $0x3a0] ss:$8 sps:$4 sm:$0xff]  }
 0x186   : > { %3285 = vmatpush1.bf16.msra.mxu0 %v4230_v32  ;;  %3114 = vmatprep.subr.bf16.mxu1 %v4235_v33  ;;  %v4314_v32 = vld [vmem:[%s5114_s6 + $0x7a0] ss:$8 sps:$4 sm:$0xff]   ;;  %v4319_v33 = vld [vmem:[%s5114_s6 + $0x3b4] ss:$8 sps:$4 sm:$0xff]  }
 0x187   : > { %3286 = vmatprep.subr.bf16.mxu0 %v4238_v34  ;;  %v4322_v34 = vld [vmem:[%s5114_s6 + $0x7b4] ss:$8 sps:$4 sm:$0xff]  }
 0x189   : > { %3115 = vmatpush1.bf16.msra.mxu1 %v4233_v35  ;;  %v4317_v35 = vld [vmem:[%s5114_s6 + $0x3b0] ss:$8 sps:$4 sm:$0xff]  }
 0x18a   : > { %3287 = vmatpush1.bf16.msra.mxu0 %v4236_v36  ;;  %3116 = vmatprep.subr.bf16.mxu1 %v4241_v37  ;;  %v4320_v36 = vld [vmem:[%s5114_s6 + $0x7b0] ss:$8 sps:$4 sm:$0xff]   ;;  %v4325_v37 = vld [vmem:[%s5114_s6 + $0x3c4] ss:$8 sps:$4 sm:$0xff]  }
 0x18b   : > { %3288 = vmatprep.subr.bf16.mxu0 %v4244_v38  ;;  %v4328_v38 = vld [vmem:[%s5114_s6 + $0x7c4] ss:$8 sps:$4 sm:$0xff]  }
 0x18d   : > { %3117 = vmatpush1.bf16.msra.mxu1 %v4239_v39  ;;  %v4323_v39 = vld [vmem:[%s5114_s6 + $0x3c0] ss:$8 sps:$4 sm:$0xff]  }
 0x18e   : > { %3289 = vmatpush1.bf16.msra.mxu0 %v4242_v40  ;;  %3118 = vmatprep.subr.bf16.mxu1 %v4247_v41  ;;  %v4326_v40 = vld [vmem:[%s5114_s6 + $0x7c0] ss:$8 sps:$4 sm:$0xff]   ;;  %v4331_v41 = vld [vmem:[%s5114_s6 + $0x3d4] ss:$8 sps:$4 sm:$0xff]  }
 0x18f   : > { %3290 = vmatprep.subr.bf16.mxu0 %v4250_v42  ;;  %v4334_v42 = vld [vmem:[%s5114_s6 + $0x7d4] ss:$8 sps:$4 sm:$0xff]  }
 0x191   : > { %3119 = vmatpush1.bf16.msra.mxu1 %v4245_v43  ;;  %v4329_v43 = vld [vmem:[%s5114_s6 + $0x3d0] ss:$8 sps:$4 sm:$0xff]  }
 0x192   : > { %3291 = vmatpush1.bf16.msra.mxu0 %v4248_v44  ;;  %3131 = vmatprep.subr.bf16.mxu1 %v4253_v45  ;;  %v4332_v44 = vld [vmem:[%s5114_s6 + $0x7d0] ss:$8 sps:$4 sm:$0xff]   ;;  %v4337_v45 = vld [vmem:[%s5114_s6 + $0x3e4] ss:$8 sps:$4 sm:$0xff]  }
 0x193   : > { %3303 = vmatprep.subr.bf16.mxu0 %v4256_v46  ;;  %v4340_v46 = vld [vmem:[%s5114_s6 + $0x7e4] ss:$8 sps:$4 sm:$0xff]  }
 0x194   : > { %3121 = vmatmul.mubr.bf16.vlgmr.msra.gmra.mrb[0].mxu1 %v3566_v50  ;;  %v4335_v50 = vld [vmem:[%s5114_s6 + $0x3e0] ss:$8 sps:$4 sm:$0xff]  }
 0x195   : > { %3293 = vmatmul.mubr.bf16.vlgmr.msra.gmra.mrb[0].mxu0 %v3574_v51  ;;  %3132 = vmatpush1.bf16.msra.mxu1 %v4251_v57  ;;  %v4338_v51 = vld [vmem:[%s5114_s6 + $0x7e0] ss:$8 sps:$4 sm:$0xff]   ;;  %v4343_v57 = vld [vmem:[%s5114_s6 + $0x3f4] ss:$8 sps:$4 sm:$0xff]  }
 0x196   : > { %3304 = vmatpush1.bf16.msra.mxu0 %v4254_v58  ;;  %3133 = vmatprep.subr.bf16.mxu1 %v4259_v47  ;;  %v4346_v58 = vld [vmem:[%s5114_s6 + $0x7f4] ss:$8 sps:$4 sm:$0xff]   ;;  %v4341_v47 = vld [vmem:[%s5114_s6 + $0x3f0] ss:$8 sps:$4 sm:$0xff]  }
 0x197   : > { %3305 = vmatprep.subr.bf16.mxu0 %v4262_v48  ;;  %3163 = vmatprep.mubr.bf16.mxu1 %v3569_v52  ;;  %v4344_v48 = vld [vmem:[%s5114_s6 + $0x7f0] ss:$8 sps:$4 sm:$0xff]   ;;  %v3568_v52 = vcombine.low %v5354_v49, %v5361_v54 }
 0x198   : > { %3335 = vmatprep.mubr.bf16.mxu0 %v3577_v53  ;;  %v3576_v53 = vcombine.low %v5364_v55, %v5367_v56 }
 0x199   : > { %3134 = vmatpush1.bf16.msra.mxu1 %v4257_v59 }
 0x19a   : > { %3306 = vmatpush1.bf16.msra.mxu0 %v4260_v60  ;;  %3135 = vmatprep.subr.bf16.mxu1 %v4265_v61  ;;  %v1366_v60 = vld [vmem:[#allocation2] sm:$0xff] }
 0x19b   : > { %3307 = vmatprep.subr.bf16.mxu0 %v4268_v62 }
 0x19d   : > { %3136 = vmatpush1.bf16.msra.mxu1 %v4263_v63 }
 0x19e   : > { %3308 = vmatpush1.bf16.msra.mxu0 %v4266_v0  ;;  %3137 = vmatprep.subr.bf16.mxu1 %v4271_v1  ;;  %v1367_v0 = vld [vmem:[#allocation2 + $0x8] sm:$0xff] }
 0x19f   : > { %3309 = vmatprep.subr.bf16.mxu0 %v4274_v2 }
 0x1a1   : > { %3138 = vmatpush1.bf16.msra.mxu1 %v4269_v3 }
 0x1a2   : > { %3310 = vmatpush1.bf16.msra.mxu0 %v4272_v4  ;;  %3139 = vmatprep.subr.bf16.mxu1 %v4277_v5  ;;  %v1368_v4 = vld [vmem:[#allocation2 + $0x10] sm:$0xff] }
 0x1a3   : > { %3311 = vmatprep.subr.bf16.mxu0 %v4280_v6 }
 0x1a5   : > { %3140 = vmatpush1.bf16.msra.mxu1 %v4275_v7  ;;  %v1369_v7 = vld [vmem:[#allocation2 + $0x18] sm:$0xff] }
 0x1a6   : > { %3312 = vmatpush1.bf16.msra.mxu0 %v4278_v8  ;;  %3141 = vmatprep.subr.bf16.mxu1 %v4283_v9 }
 0x1a7   : > { %3313 = vmatprep.subr.bf16.mxu0 %v4286_v10 }
 0x1a9   : > { %3142 = vmatpush1.bf16.msra.mxu1 %v4281_v11 }
 0x1aa   : > { %3314 = vmatpush1.bf16.msra.mxu0 %v4284_v12  ;;  %3143 = vmatprep.subr.bf16.mxu1 %v4289_v13 }
 0x1ab   : > { %3315 = vmatprep.subr.bf16.mxu0 %v4292_v14 }
 0x1ad   : > { %3144 = vmatpush1.bf16.msra.mxu1 %v4287_v15 }
 0x1ae   : > { %3316 = vmatpush1.bf16.msra.mxu0 %v4290_v16  ;;  %3145 = vmatprep.subr.bf16.mxu1 %v4295_v17 }
 0x1af   : > { %3317 = vmatprep.subr.bf16.mxu0 %v4298_v18 }
 0x1b1   : > { %3146 = vmatpush1.bf16.msra.mxu1 %v4293_v19 }
 0x1b2   : > { %3318 = vmatpush1.bf16.msra.mxu0 %v4296_v20  ;;  %3147 = vmatprep.subr.bf16.mxu1 %v4301_v21 }
 0x1b3   : > { %3319 = vmatprep.subr.bf16.mxu0 %v4304_v22 }
 0x1b5   : > { %3148 = vmatpush1.bf16.msra.mxu1 %v4299_v23 }
 0x1b6   : > { %3320 = vmatpush1.bf16.msra.mxu0 %v4302_v24  ;;  %3149 = vmatprep.subr.bf16.mxu1 %v4307_v25 }
 0x1b7   : > { %3321 = vmatprep.subr.bf16.mxu0 %v4310_v26 }
 0x1b9   : > { %3150 = vmatpush1.bf16.msra.mxu1 %v4305_v27 }
 0x1ba   : > { %3322 = vmatpush1.bf16.msra.mxu0 %v4308_v28  ;;  %3151 = vmatprep.subr.bf16.mxu1 %v4313_v29 }
 0x1bb   : > { %3323 = vmatprep.subr.bf16.mxu0 %v4316_v30 }
 0x1bd   : > { %3152 = vmatpush1.bf16.msra.mxu1 %v4311_v31 }
 0x1be   : > { %3324 = vmatpush1.bf16.msra.mxu0 %v4314_v32  ;;  %3153 = vmatprep.subr.bf16.mxu1 %v4319_v33 }
 0x1bf   : > { %3325 = vmatprep.subr.bf16.mxu0 %v4322_v34 }
 0x1c1   : > { %3154 = vmatpush1.bf16.msra.mxu1 %v4317_v35 }
 0x1c2   : > { %3326 = vmatpush1.bf16.msra.mxu0 %v4320_v36  ;;  %3155 = vmatprep.subr.bf16.mxu1 %v4325_v37 }
 0x1c3   : > { %3327 = vmatprep.subr.bf16.mxu0 %v4328_v38 }
 0x1c5   : > { %3156 = vmatpush1.bf16.msra.mxu1 %v4323_v39 }
 0x1c6   : > { %3328 = vmatpush1.bf16.msra.mxu0 %v4326_v40  ;;  %3157 = vmatprep.subr.bf16.mxu1 %v4331_v41 }
 0x1c7   : > { %3329 = vmatprep.subr.bf16.mxu0 %v4334_v42 }
 0x1c9   : > { %3158 = vmatpush1.bf16.msra.mxu1 %v4329_v43 }
 0x1ca   : > { %3330 = vmatpush1.bf16.msra.mxu0 %v4332_v44  ;;  %3159 = vmatprep.subr.bf16.mxu1 %v4337_v45 }
 0x1cb   : > { %3331 = vmatprep.subr.bf16.mxu0 %v4340_v46 }
 0x1cd   : > { %3160 = vmatpush1.bf16.msra.mxu1 %v4335_v50 }
 0x1ce   : > { %3332 = vmatpush1.bf16.msra.mxu0 %v4338_v51  ;;  %3161 = vmatprep.subr.bf16.mxu1 %v4343_v57 }
 0x1cf   : > { %3333 = vmatprep.subr.bf16.mxu0 %v4346_v58 }
 0x1d1   : > { %3162 = vmatpush1.bf16.msra.mxu1 %v4341_v47 }
 0x1d2   : > { %3334 = vmatpush1.bf16.msra.mxu0 %v4344_v48 }
 0x1d4   : > { %3164 = vmatmul.mubr.bf16.vlgmr.msra.gmra.mrb[0].mxu1 %v3568_v52 }
 0x1d5   : > { %3336 = vmatmul.mubr.bf16.vlgmr.msra.gmra.mrb[0].mxu0 %v3576_v53 }
 0x2a7   : > { %v3165_v59 = vpop.f32.mrb[0].mxu1 }
 0x2a8   : > { %v3337_v61 = vpop.f32.mrb[0].mxu0  ;;  %v3167_v63 = vpop.f32.mrb[1].mxu1 }
 0x2a9   : > { %v3847_v62 = vadd.f32 %v3337_v61, %v3165_v59  ;;  %v3339_v1 = vpop.f32.mrb[1].mxu0  ;;  %v3169_v3 = vpop.f32.mrb[2].mxu1 }
 0x2aa   : > { %v3848_v2 = vadd.f32 %v3339_v1, %v3167_v63  ;;  %v3341_v5 = vpop.f32.mrb[2].mxu0  ;;  %v3171_v54 = vpop.f32.mrb[3].mxu1  ;;  %3357 = sbr.rel (%p3834_p5) target bundleno = 702 (0x2be), region = 101 }
 0x2ab   : > { %v3346_v6 = vadd.f32 %v3847_v62, %v1366_v60  ;;  %v3849_v49 = vadd.f32 %v3341_v5, %v3169_v3  ;;  %v3343_v55 = vpop.f32.mrb[3].mxu0 }
 0x2ac   : > { %v3347_v56 = vadd.f32 %v3848_v2, %v1367_v0  ;;  %v3850_v8 = vadd.f32 %v3343_v55, %v3171_v54 }
 0x2ad   : > { %3350 = vst [vmem:[#allocation2] sm:$0xff] %v3346_v6  ;;  %v3348_v9 = vadd.f32 %v3849_v49, %v1368_v4 }
 0x2ae   : > { %3351 = vst [vmem:[#allocation2 + $0x8] sm:$0xff] %v3347_v56  ;;  %v3349_v10 = vadd.f32 %v3850_v8, %v1369_v7 }
 0x2af   : > { %3352 = vst [vmem:[#allocation2 + $0x10] sm:$0xff] %v3348_v9 }
 0x2b0   : > { %3353 = vst [vmem:[#allocation2 + $0x18] sm:$0xff] %v3349_v10 }
 0x2b4   : > { %v3358_v11 = vld [vmem:[#allocation2] sm:$0xff] }
 0x2b5   : > { %v3359_v12 = vld [vmem:[#allocation2 + $0x8] sm:$0xff]  ;;  %vm3362_vm0 = vcmp.gt.f32.partialorder %v3358_v11, 0.0  ;;  %v3366_v14 = vmul.f32 0.2, %v3358_v11 }
 0x2b6   : > { %v3360_v13 = vld [vmem:[#allocation2 + $0x10] sm:$0xff]  ;;  %vm3363_vm1 = vcmp.gt.f32.partialorder %v3359_v12, 0.0  ;;  %v3367_v15 = vmul.f32 0.2, %v3359_v12 }
 0x2b7   : > { %v3361_v16 = vld [vmem:[#allocation2 + $0x18] sm:$0xff]  ;;  %vm3364_vm2 = vcmp.gt.f32.partialorder %v3360_v13, 0.0  ;;  %v3368_v17 = vmul.f32 0.2, %v3360_v13  ;;  %v3370_v18 = vsel %vm3362_vm0, %v3358_v11, %v3366_v14 }
 0x2b8   : > { %v3371_v19 = vsel %vm3363_vm1, %v3359_v12, %v3367_v15  ;;  %vm3365_vm3 = vcmp.gt.f32.partialorder %v3361_v16, 0.0  ;;  %v3369_v20 = vmul.f32 0.2, %v3361_v16 }
 0x2b9   : > { %v3844_v21 = vpack.c.bf16 %v3371_v19, %v3370_v18  ;;  %v3372_v22 = vsel %vm3364_vm2, %v3360_v13, %v3368_v17 }
 0x2ba   : > { %v3373_v23 = vsel %vm3365_vm3, %v3361_v16, %v3369_v20 }
 0x2bb   : > { %3386 = vst [vmem:[%s5116_s1] sm:$0xff] %v3844_v21  ;;  %v3845_v24 = vpack.c.bf16 %v3373_v23, %v3372_v22 }
 0x2bd   : > { %3387 = vst [vmem:[%s5116_s1 + $0x8] sm:$0xff] %v3845_v24 }
 0x2be PF: > { %3394 = sbr.rel (!%p4549_p12) target bundleno = 710 (0x2c6), region = 105  ;;  %s3846_s12 = sshll.u32 (%p4549_p12), %s4421_s19, 3 }
 0x2bf   : > { %s3400_s18 = scalar_lea.vmem (%p4549_p12), %s5486_s3, %s3846_s12 }
 0x2c2   : > { %v3430_v25 = vld [vmem:[%s5116_s1] sm:$0xff] (%p4549_p12) }
 0x2c3   : > { %3431 = vst [vmem:[%s3400_s18] sm:$0xff] (%p4549_p12), %v3430_v25 }
 0x2c4   : > { %v3432_v26 = vld [vmem:[%s5116_s1 + $0x8] sm:$0xff] (%p4549_p12) }
 0x2c5   : > { %3433 = vst [vmem:[%s3400_s18 + $0x10] sm:$0xff] %v3432_v26 }
 0x2c6 PF: > { %s13_s22 = sadd.s32 1, %s4433_s22   ;;  %s5496_s1 = sld [smem:[#allocation6_spill]] }
 0x2c7   : > { %p10_p6 = scmp.ge.s32.totalorder %s13_s22, 6   ;;  %s5497_s12 = smov %s4397_s13 }
 0x2c8   : > { %s5498_s13 = smov %s4547_s9  ;;  %s5499_s14 = smov %s4405_s15 }
 0x2c9   : > { %s5500_s15 = smov %s4544_s8  ;;  %s5501_s16 = smov %s4413_s17 }
 0x2ca   : > { %s5502_s17 = smov %s4530_s30  ;;  %s5503_s18 = smov %s4425_s20 }
 0x2cb   : > { %s5504_s19 = smov %s4429_s21  ;;  %s5505_s20 = smov %s5508_s24 }
 0x2cc   : > { %s5506_s21 = smov %s5496_s1  ;;  %12 = sbr.rel (!%p10_p6) target bundleno = 9 (0x9), region = 185 }

</bundles_post_ra>
